<compile_context>
chip_gen: v6e
topology: v6e:2x2x1
jax: 0.10.0
libtpu: 0.0.40
codegen_flags: <defaults>
</compile_context>

<pallas_src>
import jax
import jax.numpy as jnp
from jax.experimental import pallas as pl
from jax.experimental.pallas import tpu as pltpu

FEAT_MAP = 3 * 3 * 512                                  # 4608 (feature-extractor output)
EMB_REAL = 16 + 8                                       # 24   (brush 16 + episode 8)
FEATURES_SIZE = FEAT_MAP + EMB_REAL                     # 4632
H1 = int(FEATURES_SIZE / FEATURES_SIZE ** (1 / 3))      # 277
H2 = int(FEATURES_SIZE / FEATURES_SIZE ** (2 / 3))      # 16

# Padded (lane-dense) sizes.
H1P = 384                                               # 277 -> 3*128
H2P = 128                                               # 16  -> 128
EMB_PAD = 128                                           # 24  -> 128
OUT_PAD = 128                                           # 1   -> 128
SUB = 16                                                # bf16 sublane-pack batch quantum


def _round_up(x, m):
    return (x + m - 1) // m * m


def _critic_kernel(cf_ref, wfe_ref, emb_ref,
                   w1f_ref, w1e_ref, b1_ref,
                   w2_ref, b2_ref, w3_ref, b3_ref,
                   out_ref):
    # TODO(synk): the real feature_extractor is an injected external module
    # (likely a conv net); a single linear projection to 3*3*512 features
    # stands in for it here, so its bias could be folded into b1 host-side.
    fv = jnp.dot(cf_ref[...], wfe_ref[...], preferred_element_type=jnp.float32)

    # fc1: feature half + embedding half + (bias with folded b_fe), ReLU.
    # Dropout(0.4) / Dropout(0.2) are identity in eval mode.
    h1 = (jnp.dot(fv.astype(jnp.bfloat16), w1f_ref[...],
                  preferred_element_type=jnp.float32)
          + jnp.dot(emb_ref[...], w1e_ref[...], preferred_element_type=jnp.float32)
          + b1_ref[...])
    h1 = jnp.maximum(h1, 0.0)

    # fc2 + ReLU.
    h2 = jnp.maximum(
        jnp.dot(h1, w2_ref[...], preferred_element_type=jnp.float32) + b2_ref[...],
        0.0)

    # fc3 + numerically stable, exact sigmoid (stays strictly in [0, 1]).
    logits = jnp.dot(h2, w3_ref[...], preferred_element_type=jnp.float32) + b3_ref[...]
    z = jnp.exp(-jnp.abs(logits))
    out_ref[...] = jnp.where(logits >= 0.0, 1.0 / (1.0 + z), z / (1.0 + z))


def init_params(key, in_flat, num_steps, canvas_length):
    ks = jax.random.split(key, 6)

    def lin(k, fan_in, fan_out):
        bound = 1.0 / float(fan_in) ** 0.5
        kw, kb = jax.random.split(k)
        w = jax.random.uniform(kw, (fan_in, fan_out), jnp.float32, -bound, bound)
        b = jax.random.uniform(kb, (1, fan_out), jnp.float32, -bound, bound)
        return w, b

    w_fe, b_fe = lin(ks[0], in_flat, FEAT_MAP)
    w1, b1 = lin(ks[1], FEATURES_SIZE, H1)
    w2, b2 = lin(ks[2], H1, H2)
    w3, b3 = lin(ks[3], H2, 1)
    ep_emb = jax.random.normal(ks[4], (num_steps, 8), jnp.float32)
    brush_emb = jax.random.normal(ks[5], (canvas_length, 16), jnp.float32)

    # Fold the FE stand-in bias into fc1's bias:
    #   (cf@w_fe + b_fe) @ w1_fv = cf@w_fe@w1_fv + (b_fe @ w1_fv)
    b1_eff = b1 + b_fe @ w1[:FEAT_MAP]                                   # (1, H1) f32

    def pad(a, shape):
        return jnp.pad(a, [(0, s - d) for d, s in zip(a.shape, shape)])

    return dict(
        # Big matrices -> bf16 (halves HBM/VMEM bytes; native MXU width).
        w_fe=w_fe.astype(jnp.bfloat16),                                   # (in_flat, 4608)
        w1_fv=pad(w1[:FEAT_MAP], (FEAT_MAP, H1P)).astype(jnp.bfloat16),   # (4608, 384)
        # Small weights stay f32; padding rows/cols are zero so padded lanes
        # stay exactly zero through the ReLUs.
        w1_emb=pad(w1[FEAT_MAP:], (EMB_PAD, H1P)),                        # (128, 384)
        b1=pad(b1_eff, (1, H1P)),
        w2=pad(w2, (H1P, H2P)),
        b2=pad(b2, (1, H2P)),
        w3=pad(w3, (H2P, OUT_PAD)),
        b3=pad(b3, (1, OUT_PAD)),
        ep_emb=ep_emb, brush_emb=brush_emb)


def _pick_batch_tile(B):
    bp = _round_up(B, SUB)
    if bp <= 128:
        return bp, bp                       # single block
    if bp <= 512:
        return 128, _round_up(B, 128)       # >=2 blocks keeps both v7x TCs busy
    return 256, _round_up(B, 256)


def _vmem_limit_bytes(in_flat, tb):
    bf2, f4 = 2, 4
    block_bytes = (
        tb * in_flat * bf2 +          # cf
        in_flat * FEAT_MAP * bf2 +    # w_fe
        tb * EMB_PAD * f4 +           # emb
        FEAT_MAP * H1P * bf2 +        # w1_fv
        EMB_PAD * H1P * f4 +          # w1_emb
        H1P * f4 + H1P * H2P * f4 + H2P * f4 + H2P * OUT_PAD * f4 + OUT_PAD * f4 +
        tb * OUT_PAD * f4)            # out
    temps = tb * FEAT_MAP * f4 + 2 * tb * H1P * f4     # fv + h1-ish f32 temporaries
    est = 2 * block_bytes + temps                      # x2: BlockSpec double-buffers
    return min(60 << 20, max(16 << 20, int(est * 1.5)))


def critic_forward(params, actual_canvas, objective_canvas,
                   brush_position, episode_percentage):
    B = actual_canvas.shape[0]

    # torch.cat((actualCanvas, objectiveCanvas), dim=1) -- NCHW channel concat.
    feat_maps = jnp.concatenate([actual_canvas, objective_canvas], axis=1)
    cf = feat_maps.reshape(B, -1).astype(jnp.bfloat16)
    in_flat = cf.shape[1]
    # TODO(synk): for production-size canvases, add a reduction tile over
    # in_flat (second grid axis) so the w_fe block stays within VMEM.

    # Embedding lookups (gathers) -- glue in plain JAX.
    brush_emb = jnp.take(params["brush_emb"], brush_position, axis=0)      # (B, 16)
    ep_emb = jnp.take(params["ep_emb"], episode_percentage, axis=0)        # (B, 8)
    emb = jnp.concatenate([brush_emb, ep_emb.reshape(B, -1)], axis=1)      # (B, 24)
    emb = jnp.pad(emb, ((0, 0), (0, EMB_PAD - emb.shape[1])))              # (B, 128)

    # Batch tiling / padding.
    TB, Bp = _pick_batch_tile(B)
    cf = jnp.pad(cf, ((0, Bp - B), (0, 0)))
    emb = jnp.pad(emb, ((0, Bp - B), (0, 0)))

    grid = (Bp // TB,)
    const = lambda b: (0, 0)            # weights: fetched once, reused every block

    out = pl.pallas_call(
        _critic_kernel,
        out_shape=jax.ShapeDtypeStruct((Bp, OUT_PAD), jnp.float32),
        grid=grid,
        in_specs=[
            pl.BlockSpec((TB, in_flat), lambda b: (b, 0)),       # cf (bf16)
            pl.BlockSpec((in_flat, FEAT_MAP), const),            # w_fe (bf16)
            pl.BlockSpec((TB, EMB_PAD), lambda b: (b, 0)),       # emb
            pl.BlockSpec((FEAT_MAP, H1P), const),                # w1_fv (bf16)
            pl.BlockSpec((EMB_PAD, H1P), const),                 # w1_emb
            pl.BlockSpec((1, H1P), const),                       # b1 (with b_fe folded)
            pl.BlockSpec((H1P, H2P), const),                     # w2
            pl.BlockSpec((1, H2P), const),                       # b2
            pl.BlockSpec((H2P, OUT_PAD), const),                 # w3
            pl.BlockSpec((1, OUT_PAD), const),                   # b3
        ],
        out_specs=pl.BlockSpec((TB, OUT_PAD), lambda b: (b, 0)),
        compiler_params=pltpu.CompilerParams(
            dimension_semantics=("parallel",),
            vmem_limit_bytes=_vmem_limit_bytes(in_flat, TB),
        ),
    )(cf, params["w_fe"], emb,
      params["w1_fv"], params["w1_emb"], params["b1"],
      params["w2"], params["b2"], params["w3"], params["b3"])

    # Drop batch padding and the padded output lanes; .view(-1) semantics.
    return out[:B, 0]


if __name__ == "__main__":
    key = jax.random.PRNGKey(0)
    B, C, H, W = 2, 1, 8, 8
    num_steps, canvas_length = 20, 64

    kp, k1, k2, k3, k4 = jax.random.split(key, 5)
    params = init_params(kp, 2 * C * H * W, num_steps, canvas_length)

    actual_canvas = jax.random.normal(k1, (B, C, H, W), jnp.float32)
    objective_canvas = jax.random.normal(k2, (B, C, H, W), jnp.float32)
    brush_position = jax.random.randint(k3, (B,), 0, canvas_length)
    episode_percentage = jax.random.randint(k4, (B,), 0, num_steps)

    out = critic_forward(params, actual_canvas, objective_canvas,
                         brush_position, episode_percentage)
    out = jax.block_until_ready(out)
    assert out.shape == (B,)
    assert bool(jnp.all((out >= 0.0) & (out <= 1.0)))
    print("KERNEL_OK")
</pallas_src>

<mosaic_0001>
module attributes {stable_mosaic.version = 11 : i64} {
  func.func @_critic_kernel(%arg0: i32, %arg1: memref<16x128xbf16, #tpu.memory_space<vmem>>, %arg2: memref<128x4608xbf16, #tpu.memory_space<vmem>>, %arg3: memref<16x128xf32, #tpu.memory_space<vmem>>, %arg4: memref<4608x384xbf16, #tpu.memory_space<vmem>>, %arg5: memref<128x384xf32, #tpu.memory_space<vmem>>, %arg6: memref<1x384xf32, #tpu.memory_space<vmem>>, %arg7: memref<384x128xf32, #tpu.memory_space<vmem>>, %arg8: memref<1x128xf32, #tpu.memory_space<vmem>>, %arg9: memref<128x128xf32, #tpu.memory_space<vmem>>, %arg10: memref<1x128xf32, #tpu.memory_space<vmem>>, %arg11: memref<16x128xf32, #tpu.memory_space<vmem>>) attributes {dimension_semantics = [#tpu.dimension_semantics<parallel>], iteration_bounds = array<i64: 1>, scalar_prefetch = 0 : i64, scratch_operands = 0 : i64, tpu.core_type = #tpu.core_type<tc>, window_params = [{transform_indices = @transform_0, window_bounds = array<i64: 16, 128>}, {pipeline_mode = #tpu.pipeline_mode<synchronous>, transform_indices = @transform_1, window_bounds = array<i64: 128, 4608>}, {transform_indices = @transform_2, window_bounds = array<i64: 16, 128>}, {pipeline_mode = #tpu.pipeline_mode<synchronous>, transform_indices = @transform_3, window_bounds = array<i64: 4608, 384>}, {pipeline_mode = #tpu.pipeline_mode<synchronous>, transform_indices = @transform_4, window_bounds = array<i64: 128, 384>}, {pipeline_mode = #tpu.pipeline_mode<synchronous>, transform_indices = @transform_5, window_bounds = array<i64: 1, 384>}, {pipeline_mode = #tpu.pipeline_mode<synchronous>, transform_indices = @transform_6, window_bounds = array<i64: 384, 128>}, {pipeline_mode = #tpu.pipeline_mode<synchronous>, transform_indices = @transform_7, window_bounds = array<i64: 1, 128>}, {pipeline_mode = #tpu.pipeline_mode<synchronous>, transform_indices = @transform_8, window_bounds = array<i64: 128, 128>}, {pipeline_mode = #tpu.pipeline_mode<synchronous>, transform_indices = @transform_9, window_bounds = array<i64: 1, 128>}, {transform_indices = @transform_10, window_bounds = array<i64: 16, 128>}]} {
    %c0 = arith.constant 0 : index
    %c0_0 = arith.constant 0 : index
    %0 = vector.load %arg1[%c0, %c0_0] : memref<16x128xbf16, #tpu.memory_space<vmem>>, vector<16x128xbf16>
    %c0_1 = arith.constant 0 : index
    %c0_2 = arith.constant 0 : index
    %1 = vector.load %arg2[%c0_1, %c0_2] : memref<128x4608xbf16, #tpu.memory_space<vmem>>, vector<128x4608xbf16>
    %cst = arith.constant dense<0.000000e+00> : vector<16x4608xf32>
    %2 = tpu.matmul %0, %1, %cst {dimension_numbers = #tpu.dot_dimension_numbers<[1], [0], [0], [1], [0, 0, 1, 1], [], []>} : vector<16x128xbf16>, vector<128x4608xbf16>, vector<16x4608xf32> -> vector<16x4608xf32>
    %3 = arith.truncf %2 : vector<16x4608xf32> to vector<16x4608xbf16>
    %c0_3 = arith.constant 0 : index
    %c0_4 = arith.constant 0 : index
    %4 = vector.load %arg4[%c0_3, %c0_4] : memref<4608x384xbf16, #tpu.memory_space<vmem>>, vector<4608x384xbf16>
    %cst_5 = arith.constant dense<0.000000e+00> : vector<16x384xf32>
    %5 = tpu.matmul %3, %4, %cst_5 {dimension_numbers = #tpu.dot_dimension_numbers<[1], [0], [0], [1], [0, 0, 1, 1], [], []>} : vector<16x4608xbf16>, vector<4608x384xbf16>, vector<16x384xf32> -> vector<16x384xf32>
    %c0_6 = arith.constant 0 : index
    %c0_7 = arith.constant 0 : index
    %6 = vector.load %arg3[%c0_6, %c0_7] : memref<16x128xf32, #tpu.memory_space<vmem>>, vector<16x128xf32>
    %c0_8 = arith.constant 0 : index
    %c0_9 = arith.constant 0 : index
    %7 = vector.load %arg5[%c0_8, %c0_9] : memref<128x384xf32, #tpu.memory_space<vmem>>, vector<128x384xf32>
    %cst_10 = arith.constant dense<0.000000e+00> : vector<16x384xf32>
    %8 = tpu.matmul %6, %7, %cst_10 {dimension_numbers = #tpu.dot_dimension_numbers<[1], [0], [0], [1], [0, 0, 1, 1], [], []>} : vector<16x128xf32>, vector<128x384xf32>, vector<16x384xf32> -> vector<16x384xf32>
    %9 = arith.addf %5, %8 : vector<16x384xf32>
    %c0_11 = arith.constant 0 : index
    %c0_12 = arith.constant 0 : index
    %10 = vector.load %arg6[%c0_11, %c0_12] : memref<1x384xf32, #tpu.memory_space<vmem>>, vector<1x384xf32>
    %11 = vector.broadcast %10 : vector<1x384xf32> to vector<16x384xf32>
    %12 = arith.addf %9, %11 : vector<16x384xf32>
    %cst_13 = arith.constant 0.000000e+00 : f32
    %13 = vector.broadcast %cst_13 : f32 to vector<16x384xf32>
    %14 = arith.maximumf %12, %13 : vector<16x384xf32>
    %c0_14 = arith.constant 0 : index
    %c0_15 = arith.constant 0 : index
    %15 = vector.load %arg7[%c0_14, %c0_15] : memref<384x128xf32, #tpu.memory_space<vmem>>, vector<384x128xf32>
    %cst_16 = arith.constant dense<0.000000e+00> : vector<16x128xf32>
    %16 = tpu.matmul %14, %15, %cst_16 {dimension_numbers = #tpu.dot_dimension_numbers<[1], [0], [0], [1], [0, 0, 1, 1], [], []>} : vector<16x384xf32>, vector<384x128xf32>, vector<16x128xf32> -> vector<16x128xf32>
    %c0_17 = arith.constant 0 : index
    %c0_18 = arith.constant 0 : index
    %17 = vector.load %arg8[%c0_17, %c0_18] : memref<1x128xf32, #tpu.memory_space<vmem>>, vector<1x128xf32>
    %18 = vector.broadcast %17 : vector<1x128xf32> to vector<16x128xf32>
    %19 = arith.addf %16, %18 : vector<16x128xf32>
    %cst_19 = arith.constant 0.000000e+00 : f32
    %20 = vector.broadcast %cst_19 : f32 to vector<16x128xf32>
    %21 = arith.maximumf %19, %20 : vector<16x128xf32>
    %c0_20 = arith.constant 0 : index
    %c0_21 = arith.constant 0 : index
    %22 = vector.load %arg9[%c0_20, %c0_21] : memref<128x128xf32, #tpu.memory_space<vmem>>, vector<128x128xf32>
    %cst_22 = arith.constant dense<0.000000e+00> : vector<16x128xf32>
    %23 = tpu.matmul %21, %22, %cst_22 {dimension_numbers = #tpu.dot_dimension_numbers<[1], [0], [0], [1], [0, 0, 1, 1], [], []>} : vector<16x128xf32>, vector<128x128xf32>, vector<16x128xf32> -> vector<16x128xf32>
    %c0_23 = arith.constant 0 : index
    %c0_24 = arith.constant 0 : index
    %24 = vector.load %arg10[%c0_23, %c0_24] : memref<1x128xf32, #tpu.memory_space<vmem>>, vector<1x128xf32>
    %25 = vector.broadcast %24 : vector<1x128xf32> to vector<16x128xf32>
    %26 = arith.addf %23, %25 : vector<16x128xf32>
    %27 = math.absf %26 : vector<16x128xf32>
    %cst_25 = arith.constant 0.000000e+00 : f32
    %28 = vector.broadcast %cst_25 : f32 to vector<16x128xf32>
    %29 = arith.subf %28, %27 : vector<16x128xf32>
    %30 = math.exp %29 : vector<16x128xf32>
    %cst_26 = arith.constant 0.000000e+00 : f32
    %31 = vector.broadcast %cst_26 : f32 to vector<16x128xf32>
    %32 = arith.cmpf oge, %26, %31 : vector<16x128xf32>
    %cst_27 = arith.constant 1.000000e+00 : f32
    %33 = vector.broadcast %cst_27 : f32 to vector<16x128xf32>
    %34 = arith.addf %33, %30 : vector<16x128xf32>
    %cst_28 = arith.constant 1.000000e+00 : f32
    %35 = vector.broadcast %cst_28 : f32 to vector<16x128xf32>
    %36 = arith.divf %35, %34 : vector<16x128xf32>
    %cst_29 = arith.constant 1.000000e+00 : f32
    %37 = vector.broadcast %cst_29 : f32 to vector<16x128xf32>
    %38 = arith.addf %37, %30 : vector<16x128xf32>
    %39 = arith.divf %30, %38 : vector<16x128xf32>
    %40 = arith.select %32, %36, %39 : vector<16x128xi1>, vector<16x128xf32>
    %c0_30 = arith.constant 0 : index
    %c0_31 = arith.constant 0 : index
    %41 = vector.load %arg11[%c0_30, %c0_31] : memref<16x128xf32, #tpu.memory_space<vmem>>, vector<16x128xf32>
    tpu.vector_store %arg11[%c0_30, %c0_31], %40 {strides = array<i32>} : memref<16x128xf32, #tpu.memory_space<vmem>>, vector<16x128xf32>,
    return
  }
  func.func @transform_0(%arg0: i32) -> (i32, i32) {
    %c0_i32 = arith.constant 0 : i32
    %c0_i32_0 = arith.constant 0 : i32
    return %arg0, %c0_i32 : i32, i32
  }
  func.func @transform_1(%arg0: i32) -> (i32, i32) {
    %c0_i32 = arith.constant 0 : i32
    %c0_i32_0 = arith.constant 0 : i32
    %c0_i32_1 = arith.constant 0 : i32
    return %c0_i32, %c0_i32_0 : i32, i32
  }
  func.func @transform_2(%arg0: i32) -> (i32, i32) {
    %c0_i32 = arith.constant 0 : i32
    %c0_i32_0 = arith.constant 0 : i32
    return %arg0, %c0_i32 : i32, i32
  }
  func.func @transform_3(%arg0: i32) -> (i32, i32) {
    %c0_i32 = arith.constant 0 : i32
    %c0_i32_0 = arith.constant 0 : i32
    %c0_i32_1 = arith.constant 0 : i32
    return %c0_i32, %c0_i32_0 : i32, i32
  }
  func.func @transform_4(%arg0: i32) -> (i32, i32) {
    %c0_i32 = arith.constant 0 : i32
    %c0_i32_0 = arith.constant 0 : i32
    %c0_i32_1 = arith.constant 0 : i32
    return %c0_i32, %c0_i32_0 : i32, i32
  }
  func.func @transform_5(%arg0: i32) -> (i32, i32) {
    %c0_i32 = arith.constant 0 : i32
    %c0_i32_0 = arith.constant 0 : i32
    %c0_i32_1 = arith.constant 0 : i32
    return %c0_i32, %c0_i32_0 : i32, i32
  }
  func.func @transform_6(%arg0: i32) -> (i32, i32) {
    %c0_i32 = arith.constant 0 : i32
    %c0_i32_0 = arith.constant 0 : i32
    %c0_i32_1 = arith.constant 0 : i32
    return %c0_i32, %c0_i32_0 : i32, i32
  }
  func.func @transform_7(%arg0: i32) -> (i32, i32) {
    %c0_i32 = arith.constant 0 : i32
    %c0_i32_0 = arith.constant 0 : i32
    %c0_i32_1 = arith.constant 0 : i32
    return %c0_i32, %c0_i32_0 : i32, i32
  }
  func.func @transform_8(%arg0: i32) -> (i32, i32) {
    %c0_i32 = arith.constant 0 : i32
    %c0_i32_0 = arith.constant 0 : i32
    %c0_i32_1 = arith.constant 0 : i32
    return %c0_i32, %c0_i32_0 : i32, i32
  }
  func.func @transform_9(%arg0: i32) -> (i32, i32) {
    %c0_i32 = arith.constant 0 : i32
    %c0_i32_0 = arith.constant 0 : i32
    %c0_i32_1 = arith.constant 0 : i32
    return %c0_i32, %c0_i32_0 : i32, i32
  }
  func.func @transform_10(%arg0: i32) -> (i32, i32) {
    %c0_i32 = arith.constant 0 : i32
    %c0_i32_0 = arith.constant 0 : i32
    return %arg0, %c0_i32 : i32, i32
  }
}

</mosaic_0001>

<bundles_post_ra>
// kernel: tpu_custom_call.1
= control target key start
LH: loop header
LB: loop body
LE: loop exit
PB: predicated region body
PF: predicated region fallthrough
CT: control target
= control target key end

     0   :  { %15 = vsyncpa [#allocation3], 0  ;;  %s14860_s0 = inlined_call_operand.hbm [shape: bf16[16,128], index: 0, kind: input, shape index: {}]   ;;  %s14861_s1 = inlined_call_operand.hbm [shape: bf16[128,4608], index: 1, kind: input, shape index: {}]   ;;  %s14862_s2 = inlined_call_operand.hbm [shape: f32[16,128], index: 2, kind: input, shape index: {}]   ;;  %s14863_s3 = inlined_call_operand.hbm [shape: bf16[4608,384], index: 3, kind: input, shape index: {}]   ;;  %s14864_s4 = inlined_call_operand.hbm [shape: f32[128,384], index: 4, kind: input, shape index: {}]   ;;  %s14865_s5 = inlined_call_operand.hbm [shape: f32[1,384], index: 5, kind: input, shape index: {}]   ;;  %s14866_s6 = inlined_call_operand.hbm [shape: f32[384,128], index: 6, kind: input, shape index: {}]   ;;  %s14867_s7 = inlined_call_operand.hbm [shape: f32[1,128], index: 7, kind: input, shape index: {}]   ;;  %s14868_s8 = inlined_call_operand.hbm [shape: f32[128,128], index: 8, kind: input, shape index: {}]   ;;  %s14869_s9 = inlined_call_operand.hbm [shape: f32[1,128], index: 9, kind: input, shape index: {}]   ;;  %s14870_s10 = inlined_call_operand.hbm [shape: f32[16,128], index: 10, kind: output, shape index: {}]  }
   0x1   :  { %16 = vsyncpa [#allocation6], 0 }
   0x2   :  { %17 = vsyncpa [#allocation9], 0 }
   0x3   :  { %18 = vsyncpa [#allocation12], 0 }
   0x4   :  { %19 = vsyncpa [#allocation15], 0 }
   0x5   :  { %20 = vsyncpa [#allocation18], 0 }
   0x6   :  { %21 = vsyncpa [#allocation4], 0  ;;  %s14164_s13 = smov [#allocation5]  }
   0x7   :  { %s39_s14 = sshll.u32 %s14164_s13, 4  ;;  %s40_s14 = int_to_ptr.vmem [resolvable:$true] %s39_s14 }
   0x8   :  { %s13938_s15 = scalar_lea.vmem %s40_s14, 36864  ;;  %p13943_p1 = scmp.lt.s32.totalorder %s40_s14, %s40_s14 }
   0x9   :  { %p13939_p0 = scmp.ne.s32.totalorder %s40_s14, %s13938_s15  ;;  %p13944_p2 = scmp.lt.s32.totalorder %s13938_s15, %s13938_s15 }
   0xb   :  { %p13945_p3 = por %p13944_p2, %p13943_p1 }
   0xd   :  { %p13946_p4 = pnand %p13945_p3, %p13939_p0 }
   0xf   :  { %13949 = shalt.err (!%p13946_p4)
}
  0x10   :  { %s14165_s16 = smov 2304   ;;  %s14166_s17 = smov 144  }
  0x11   :  { %45 = dma.hbm_to_vmem [thread:$0]  %s14861_s1, 36864, %s40_s14, [#allocation6], %s14165_s16, %s14165_s16, %s14166_s17  }
  0x12   :  { %s14167_s20 = smov [#allocation8]  }
  0x13   :  { %s63_s21 = sshll.u32 %s14167_s20, 4  ;;  %s64_s21 = int_to_ptr.vmem [resolvable:$true] %s63_s21 }
  0x14   :  { %s13958_s22 = scalar_lea.vmem %s64_s21, 110592  ;;  %p13963_p6 = scmp.lt.s32.totalorder %s64_s21, %s64_s21 }
  0x15   :  { %p13959_p5 = scmp.ne.s32.totalorder %s64_s21, %s13958_s22  ;;  %p13964_p7 = scmp.lt.s32.totalorder %s13958_s22, %s13958_s22 }
  0x17   :  { %p13965_p8 = por %p13964_p7, %p13963_p6 }
  0x19   :  { %p13966_p9 = pnand %p13965_p8, %p13959_p5 }
  0x1b   :  { %13969 = shalt.err (!%p13966_p9)
}
  0x1c   :  { %s14168_s23 = smov 192   ;;  %s14169_s24 = smov 12  }
  0x1d   :  { %69 = dma.hbm_to_vmem [thread:$0]  %s14863_s3, 110592, %s64_s21, [#allocation9], %s14168_s23, %s14168_s23, %s14169_s24  }
  0x1e   :  { %s14170_s27 = smov [#allocation11]   ;;  %s14171_s29 = smov [#allocation14]  }
  0x1f   :  { %s88_s28 = sshll.u32 %s14170_s27, 4  ;;  %s110_s1 = sshll.u32 %s14171_s29, 4  ;;  %s89_s28 = int_to_ptr.vmem [resolvable:$true] %s88_s28  ;;  %s111_s1 = int_to_ptr.vmem [resolvable:$true] %s110_s1 }
  0x20   :  { %s13978_s30 = scalar_lea.vmem %s89_s28, 48  ;;  %s13982_s11 = scalar_lea.vmem %s89_s28, 64 }
  0x21   :  { %p13979_p10 = scmp.ne.s32.totalorder %s89_s28, %s13978_s30  ;;  %p13983_p11 = scmp.lt.s32.totalorder %s89_s28, %s89_s28 }
  0x22   :  { %p13984_p12 = scmp.lt.s32.totalorder %s13982_s11, %s13978_s30 }
  0x24   :  { %p13985_p13 = por %p13984_p12, %p13983_p11 }
  0x26   :  { %p13986_p0 = pnand %p13985_p13, %p13979_p10 }
  0x28   :  { %13989 = shalt.err (!%p13986_p0)
}
  0x29   :  { %91 = dma.hbm_to_vmem [thread:$0]  %s14865_s5, 48, %s89_s28, [#allocation12]  }
  0x2a   :  { %s13998_s14 = scalar_lea.vmem %s111_s1, 16  ;;  %s14002_s3 = scalar_lea.vmem %s111_s1, 32 }
  0x2b   :  { %p13999_p1 = scmp.ne.s32.totalorder %s111_s1, %s13998_s14  ;;  %p14003_p2 = scmp.lt.s32.totalorder %s111_s1, %s111_s1 }
  0x2c   :  { %p14004_p3 = scmp.lt.s32.totalorder %s14002_s3, %s13998_s14 }
  0x2e   :  { %p14005_p4 = por %p14004_p3, %p14003_p2 }
  0x30   :  { %p14006_p5 = pnand %p14005_p4, %p13999_p1 }
  0x32   :  { %14009 = shalt.err (!%p14006_p5)
}
  0x33   :  { %113 = dma.hbm_to_vmem [thread:$0]  %s14867_s7, 16, %s111_s1, [#allocation15]  }
  0x34   :  { %s14172_s17 = smov [#allocation2]  }
  0x35   :  { %s27_s18 = sshll.u32 %s14172_s17, 4  ;;  %s28_s18 = int_to_ptr.vmem [resolvable:$true] %s27_s18 }
  0x36   :  { %s14018_s19 = scalar_lea.vmem %s28_s18, 128  ;;  %p14023_p7 = scmp.lt.s32.totalorder %s28_s18, %s28_s18 }
  0x37   :  { %p14019_p6 = scmp.ne.s32.totalorder %s28_s18, %s14018_s19  ;;  %p14024_p8 = scmp.lt.s32.totalorder %s14018_s19, %s14018_s19 }
  0x39   :  { %p14025_p9 = por %p14024_p8, %p14023_p7 }
  0x3b   :  { %p14026_p10 = pnand %p14025_p9, %p14019_p6 }
  0x3d   :  { %14029 = shalt.err (!%p14026_p10)
}
  0x3e   :  { %s14173_s5 = smov 64   ;;  %s14174_s20 = smov 4  }
  0x3f   :  { %33 = dma.hbm_to_vmem [thread:$0]  %s14860_s0, 128, %s28_s18, [#allocation3], %s14173_s5, %s14173_s5, %s14174_s20  }
  0x40   :  { %s14175_s23 = smov [#allocation7]  }
  0x41   :  { %s51_s24 = sshll.u32 %s14175_s23, 4  ;;  %s52_s24 = int_to_ptr.vmem [resolvable:$true] %s51_s24 }
  0x42   :  { %s14038_s7 = scalar_lea.vmem %s52_s24, 256  ;;  %p14043_p12 = scmp.lt.s32.totalorder %s52_s24, %s52_s24 }
  0x43   :  { %p14039_p11 = scmp.ne.s32.totalorder %s52_s24, %s14038_s7  ;;  %p14044_p13 = scmp.lt.s32.totalorder %s14038_s7, %s14038_s7 }
  0x45   :  { %p14045_p0 = por %p14044_p13, %p14043_p12 }
  0x47   :  { %p14046_p1 = pnand %p14045_p0, %p14039_p11 }
  0x49   :  { %14049 = shalt.err (!%p14046_p1)
}
  0x4a   :  { %s14176_s25 = smov 128   ;;  %s14177_s26 = smov 8  }
  0x4b   :  { %57 = dma.hbm_to_vmem [thread:$0]  %s14862_s2, 256, %s52_s24, [#allocation6], %s14176_s25, %s14176_s25, %s14177_s26  }
  0x4c   :  { %s14178_s0 = smov [#allocation10]  }
  0x4d   :  { %s75_s29 = sshll.u32 %s14178_s0, 4  ;;  %s76_s29 = int_to_ptr.vmem [resolvable:$true] %s75_s29 }
  0x4e   :  { %s14058_s1 = scalar_lea.vmem %s76_s29, 6144  ;;  %p14063_p3 = scmp.lt.s32.totalorder %s76_s29, %s76_s29 }
  0x4f   :  { %p14059_p2 = scmp.ne.s32.totalorder %s76_s29, %s14058_s1  ;;  %p14064_p4 = scmp.lt.s32.totalorder %s14058_s1, %s14058_s1 }
  0x51   :  { %p14065_p5 = por %p14064_p4, %p14063_p3 }
  0x53   :  { %p14066_p6 = pnand %p14065_p5, %p14059_p2 }
  0x55   :  { %14069 = shalt.err (!%p14066_p6)
}
  0x56   :  { %s14179_s30 = smov 384   ;;  %s14180_s11 = smov 24  }
  0x57   :  { %81 = dma.hbm_to_vmem [thread:$0]  %s14864_s4, 6144, %s76_s29, [#allocation9], %s14179_s30, %s14179_s30, %s14180_s11  }
  0x58   :  { %s14181_s14 = smov [#allocation13]   ;;  %s14182_s2 = smov [#allocation16]  }
  0x59   :  { %s97_s3 = sshll.u32 %s14181_s14, 4  ;;  %s119_s15 = sshll.u32 %s14182_s2, 4  ;;  %s98_s3 = int_to_ptr.vmem [resolvable:$true] %s97_s3  ;;  %s120_s15 = int_to_ptr.vmem [resolvable:$true] %s119_s15 }
  0x5a   :  { %s14078_s16 = scalar_lea.vmem %s98_s3, 6144  ;;  %p14083_p8 = scmp.lt.s32.totalorder %s98_s3, %s98_s3 }
  0x5b   :  { %p14079_p7 = scmp.ne.s32.totalorder %s98_s3, %s14078_s16  ;;  %p14084_p9 = scmp.lt.s32.totalorder %s14078_s16, %s14078_s16 }
  0x5d   :  { %p14085_p10 = por %p14084_p9, %p14083_p8 }
  0x5f   :  { %p14086_p11 = pnand %p14085_p10, %p14079_p7 }
  0x61   :  { %14089 = shalt.err (!%p14086_p11)
}
  0x62   :  { %103 = dma.hbm_to_vmem [thread:$0]  %s14866_s6, 6144, %s98_s3, [#allocation12], %s14176_s25, %s14176_s25, %s14177_s26  }
  0x63   :  { %s14098_s4 = scalar_lea.vmem %s120_s15, 2048  ;;  %p14103_p13 = scmp.lt.s32.totalorder %s120_s15, %s120_s15 }
  0x64   :  { %p14099_p12 = scmp.ne.s32.totalorder %s120_s15, %s14098_s4  ;;  %p14104_p0 = scmp.lt.s32.totalorder %s14098_s4, %s14098_s4 }
  0x66   :  { %p14105_p1 = por %p14104_p0, %p14103_p13 }
  0x68   :  { %p14106_p2 = pnand %p14105_p1, %p14099_p12 }
  0x6a   :  { %14109 = shalt.err (!%p14106_p2)
}
  0x6b   :  { %125 = dma.hbm_to_vmem [thread:$0]  %s14868_s8, 2048, %s120_s15, [#allocation15], %s14176_s25, %s14176_s25, %s14177_s26  }
  0x6c   :  { %s14183_s20 = smov [#allocation17]  }
  0x6d   :  { %s132_s21 = sshll.u32 %s14183_s20, 4  ;;  %s133_s21 = int_to_ptr.vmem [resolvable:$true] %s132_s21 }
  0x6e   :  { %s14118_s22 = scalar_lea.vmem %s133_s21, 16  ;;  %s14122_s6 = scalar_lea.vmem %s133_s21, 32 }
  0x6f   :  { %p14119_p3 = scmp.ne.s32.totalorder %s133_s21, %s14118_s22  ;;  %p14123_p4 = scmp.lt.s32.totalorder %s133_s21, %s133_s21 }
  0x70   :  { %p14124_p5 = scmp.lt.s32.totalorder %s14122_s6, %s14118_s22 }
  0x72   :  { %p14125_p6 = por %p14124_p5, %p14123_p4 }
  0x74   :  { %p14126_p7 = pnand %p14125_p6, %p14119_p3 }
  0x76   :  { %14129 = shalt.err (!%p14126_p7)
}
  0x77   :  { %135 = dma.hbm_to_vmem [thread:$0]  %s14869_s9, 16, %s133_s21, [#allocation18]  }
  0x78   :  { %14150 = dma.done.wait [#allocation3], 128  }
  0x79   :  { %14151 = vsyncadd [#allocation3], 4294967168 }
  0x7a   :  { %14152 = dma.done.wait [#allocation6], 37120  }
  0x7b   :  { %14153 = vsyncadd [#allocation6], 4294930176 }
  0x7c   :  { %14154 = dma.done.wait [#allocation9], 116736  }
  0x7d   :  { %14155 = vsyncadd [#allocation9], 4294850560 }
  0x7e   :  { %14156 = dma.done.wait [#allocation12], 6192  }
  0x7f   :  { %14157 = vsyncadd [#allocation12], 4294961104 }
  0x80   :  { %14158 = dma.done.wait [#allocation15], 2064  }
  0x81   :  { %14159 = vsyncadd [#allocation15], 4294965232 }
  0x82   :  { %14160 = dma.done.wait [#allocation18], 16  }
  0x83   :  { %14161 = vsyncadd [#allocation18], 4294967280  ;;  %v14184_v0 = vmov 0   ;;  %v12336_v1 = vld [vmem:[#allocation5 + $0x7e4] ss:$144 sps:$4 sm:$0xff]   ;;  %v14283_v35 = vld [vmem:[#allocation2] sm:$0xff]  }
  0x84   :  { %1935 = vmatprep.mubr.bf16.mxu0 %v14184_v0  ;;  %1978 = vmatprep.mubr.bf16.mxu1 %v14184_v0  ;;  %v12338_v2 = vld [vmem:[#allocation5 + $0x7ec] ss:$144 sps:$4 sm:$0xff]   ;;  %v12340_v3 = vld [vmem:[#allocation5 + $0x7e0] ss:$144 sps:$4 sm:$0xff]   ;;  %v12341_v4 = vld [vmem:[#allocation5 + $0x7e8] ss:$144 sps:$4 sm:$0xff]  }
  0x85   :  { %1903 = vmatprep.subr.bf16.mxu0 %v12336_v1  ;;  %1946 = vmatprep.subr.bf16.mxu1 %v12338_v2  ;;  %v12342_v5 = vld [vmem:[#allocation5 + $0x6c4] ss:$144 sps:$4 sm:$0xff]   ;;  %v12344_v6 = vld [vmem:[#allocation5 + $0x6cc] ss:$144 sps:$4 sm:$0xff]   ;;  %v12346_v7 = vld [vmem:[#allocation5 + $0x6c0] ss:$144 sps:$4 sm:$0xff]  }
  0x86   :  { %1904 = vmatpush1.bf16.msra.mxu0 %v12340_v3  ;;  %1947 = vmatpush1.bf16.msra.mxu1 %v12341_v4  ;;  %v12347_v8 = vld [vmem:[#allocation5 + $0x6c8] ss:$144 sps:$4 sm:$0xff]   ;;  %v12348_v9 = vld [vmem:[#allocation5 + $0x5a4] ss:$144 sps:$4 sm:$0xff]   ;;  %v12350_v10 = vld [vmem:[#allocation5 + $0x5ac] ss:$144 sps:$4 sm:$0xff]  }
  0x87   :  { %1905 = vmatprep.subr.bf16.mxu0 %v12342_v5  ;;  %1948 = vmatprep.subr.bf16.mxu1 %v12344_v6  ;;  %v12352_v11 = vld [vmem:[#allocation5 + $0x5a0] ss:$144 sps:$4 sm:$0xff]   ;;  %v12353_v12 = vld [vmem:[#allocation5 + $0x5a8] ss:$144 sps:$4 sm:$0xff]   ;;  %v12354_v13 = vld [vmem:[#allocation5 + $0x484] ss:$144 sps:$4 sm:$0xff]  }
  0x88   :  { %v12356_v14 = vld [vmem:[#allocation5 + $0x48c] ss:$144 sps:$4 sm:$0xff]   ;;  %v12358_v15 = vld [vmem:[#allocation5 + $0x480] ss:$144 sps:$4 sm:$0xff]   ;;  %v12359_v16 = vld [vmem:[#allocation5 + $0x488] ss:$144 sps:$4 sm:$0xff]  }
  0x89   :  { %v12360_v17 = vld [vmem:[#allocation5 + $0x364] ss:$144 sps:$4 sm:$0xff]   ;;  %v12362_v18 = vld [vmem:[#allocation5 + $0x36c] ss:$144 sps:$4 sm:$0xff]   ;;  %v12364_v19 = vld [vmem:[#allocation5 + $0x360] ss:$144 sps:$4 sm:$0xff]  }
  0x8a   :  { %1906 = vmatpush1.bf16.msra.mxu0 %v12346_v7  ;;  %1949 = vmatpush1.bf16.msra.mxu1 %v12347_v8  ;;  %v12365_v20 = vld [vmem:[#allocation5 + $0x368] ss:$144 sps:$4 sm:$0xff]   ;;  %v12366_v21 = vld [vmem:[#allocation5 + $0x244] ss:$144 sps:$4 sm:$0xff]   ;;  %v12368_v22 = vld [vmem:[#allocation5 + $0x24c] ss:$144 sps:$4 sm:$0xff]  }
  0x8b   :  { %1907 = vmatprep.subr.bf16.mxu0 %v12348_v9  ;;  %1950 = vmatprep.subr.bf16.mxu1 %v12350_v10  ;;  %v12370_v23 = vld [vmem:[#allocation5 + $0x240] ss:$144 sps:$4 sm:$0xff]   ;;  %v12371_v24 = vld [vmem:[#allocation5 + $0x248] ss:$144 sps:$4 sm:$0xff]   ;;  %v12372_v25 = vld [vmem:[#allocation5 + $0x124] ss:$144 sps:$4 sm:$0xff]  }
  0x8c   :  { %v12374_v26 = vld [vmem:[#allocation5 + $0x12c] ss:$144 sps:$4 sm:$0xff]   ;;  %v12376_v27 = vld [vmem:[#allocation5 + $0x120] ss:$144 sps:$4 sm:$0xff]   ;;  %v12377_v28 = vld [vmem:[#allocation5 + $0x128] ss:$144 sps:$4 sm:$0xff]  }
  0x8d   :  { %v12378_v29 = vld [vmem:[#allocation5 + $0x4] ss:$144 sps:$4 sm:$0xff]   ;;  %v12380_v30 = vld [vmem:[#allocation5 + $0xc] ss:$144 sps:$4 sm:$0xff]   ;;  %v12382_v31 = vld [vmem:[#allocation5] ss:$144 sps:$4 sm:$0xff]  }
  0x8e   :  { %1908 = vmatpush1.bf16.msra.mxu0 %v12352_v11  ;;  %1951 = vmatpush1.bf16.msra.mxu1 %v12353_v12  ;;  %v12383_v32 = vld [vmem:[#allocation5 + $0x8] ss:$144 sps:$4 sm:$0xff]   ;;  %v12387_v33 = vld [vmem:[#allocation5 + $0x7f4] ss:$144 sps:$4 sm:$0xff]   ;;  %v12390_v34 = vld [vmem:[#allocation5 + $0x7fc] ss:$144 sps:$4 sm:$0xff]  }
  0x8f   :  { %1909 = vmatprep.subr.bf16.mxu0 %v12354_v13  ;;  %1952 = vmatprep.subr.bf16.mxu1 %v12356_v14  ;;  %v12385_v36 = vld [vmem:[#allocation5 + $0x7f0] ss:$144 sps:$4 sm:$0xff]   ;;  %v12388_v37 = vld [vmem:[#allocation5 + $0x7f8] ss:$144 sps:$4 sm:$0xff]   ;;  %v12393_v38 = vld [vmem:[#allocation5 + $0x6d4] ss:$144 sps:$4 sm:$0xff]  }
  0x90   :  { %v12396_v39 = vld [vmem:[#allocation5 + $0x6dc] ss:$144 sps:$4 sm:$0xff]   ;;  %v12391_v40 = vld [vmem:[#allocation5 + $0x6d0] ss:$144 sps:$4 sm:$0xff]   ;;  %v12394_v41 = vld [vmem:[#allocation5 + $0x6d8] ss:$144 sps:$4 sm:$0xff]  }
  0x91   :  { %v12399_v42 = vld [vmem:[#allocation5 + $0x5b4] ss:$144 sps:$4 sm:$0xff]   ;;  %v12402_v43 = vld [vmem:[#allocation5 + $0x5bc] ss:$144 sps:$4 sm:$0xff]   ;;  %v12397_v44 = vld [vmem:[#allocation5 + $0x5b0] ss:$144 sps:$4 sm:$0xff]  }
  0x92   :  { %1910 = vmatpush1.bf16.msra.mxu0 %v12358_v15  ;;  %1953 = vmatpush1.bf16.msra.mxu1 %v12359_v16  ;;  %v12400_v45 = vld [vmem:[#allocation5 + $0x5b8] ss:$144 sps:$4 sm:$0xff]   ;;  %v12405_v46 = vld [vmem:[#allocation5 + $0x494] ss:$144 sps:$4 sm:$0xff]   ;;  %v12408_v47 = vld [vmem:[#allocation5 + $0x49c] ss:$144 sps:$4 sm:$0xff]  }
  0x93   :  { %1911 = vmatprep.subr.bf16.mxu0 %v12360_v17  ;;  %1954 = vmatprep.subr.bf16.mxu1 %v12362_v18  ;;  %v12403_v48 = vld [vmem:[#allocation5 + $0x490] ss:$144 sps:$4 sm:$0xff]   ;;  %v12406_v49 = vld [vmem:[#allocation5 + $0x498] ss:$144 sps:$4 sm:$0xff]   ;;  %v12411_v50 = vld [vmem:[#allocation5 + $0x374] ss:$144 sps:$4 sm:$0xff]  }
  0x94   :  { %v12414_v51 = vld [vmem:[#allocation5 + $0x37c] ss:$144 sps:$4 sm:$0xff]   ;;  %v12409_v52 = vld [vmem:[#allocation5 + $0x370] ss:$144 sps:$4 sm:$0xff]   ;;  %v12412_v53 = vld [vmem:[#allocation5 + $0x378] ss:$144 sps:$4 sm:$0xff]  }
  0x95   :  { %v12417_v54 = vld [vmem:[#allocation5 + $0x254] ss:$144 sps:$4 sm:$0xff]   ;;  %v12420_v55 = vld [vmem:[#allocation5 + $0x25c] ss:$144 sps:$4 sm:$0xff]   ;;  %v12415_v56 = vld [vmem:[#allocation5 + $0x250] ss:$144 sps:$4 sm:$0xff]  }
  0x96   :  { %1912 = vmatpush1.bf16.msra.mxu0 %v12364_v19  ;;  %1955 = vmatpush1.bf16.msra.mxu1 %v12365_v20  ;;  %v12418_v57 = vld [vmem:[#allocation5 + $0x258] ss:$144 sps:$4 sm:$0xff]   ;;  %v12423_v58 = vld [vmem:[#allocation5 + $0x134] ss:$144 sps:$4 sm:$0xff]   ;;  %v12426_v59 = vld [vmem:[#allocation5 + $0x13c] ss:$144 sps:$4 sm:$0xff]  }
  0x97   :  { %1913 = vmatprep.subr.bf16.mxu0 %v12366_v21  ;;  %1956 = vmatprep.subr.bf16.mxu1 %v12368_v22  ;;  %v12421_v60 = vld [vmem:[#allocation5 + $0x130] ss:$144 sps:$4 sm:$0xff]   ;;  %v12424_v61 = vld [vmem:[#allocation5 + $0x138] ss:$144 sps:$4 sm:$0xff]   ;;  %v12429_v62 = vld [vmem:[#allocation5 + $0x14] ss:$144 sps:$4 sm:$0xff]  }
  0x98   :  { %v12432_v63 = vld [vmem:[#allocation5 + $0x1c] ss:$144 sps:$4 sm:$0xff]   ;;  %v12427_v1 = vld [vmem:[#allocation5 + $0x10] ss:$144 sps:$4 sm:$0xff]   ;;  %v12430_v2 = vld [vmem:[#allocation5 + $0x18] ss:$144 sps:$4 sm:$0xff]  }
  0x99   :  { %v12435_v3 = vld [vmem:[#allocation5 + $0x804] ss:$144 sps:$4 sm:$0xff]   ;;  %v12438_v4 = vld [vmem:[#allocation5 + $0x80c] ss:$144 sps:$4 sm:$0xff]   ;;  %v12433_v5 = vld [vmem:[#allocation5 + $0x800] ss:$144 sps:$4 sm:$0xff]  }
  0x9a   :  { %1914 = vmatpush1.bf16.msra.mxu0 %v12370_v23  ;;  %1957 = vmatpush1.bf16.msra.mxu1 %v12371_v24  ;;  %v12436_v6 = vld [vmem:[#allocation5 + $0x808] ss:$144 sps:$4 sm:$0xff]   ;;  %v12441_v7 = vld [vmem:[#allocation5 + $0x6e4] ss:$144 sps:$4 sm:$0xff]   ;;  %v12444_v8 = vld [vmem:[#allocation5 + $0x6ec] ss:$144 sps:$4 sm:$0xff]  }
  0x9b   :  { %1915 = vmatprep.subr.bf16.mxu0 %v12372_v25  ;;  %1958 = vmatprep.subr.bf16.mxu1 %v12374_v26  ;;  %v12439_v9 = vld [vmem:[#allocation5 + $0x6e0] ss:$144 sps:$4 sm:$0xff]   ;;  %v12442_v10 = vld [vmem:[#allocation5 + $0x6e8] ss:$144 sps:$4 sm:$0xff]   ;;  %v12447_v11 = vld [vmem:[#allocation5 + $0x5c4] ss:$144 sps:$4 sm:$0xff]  }
  0x9c   :  { %v12450_v12 = vld [vmem:[#allocation5 + $0x5cc] ss:$144 sps:$4 sm:$0xff]   ;;  %v12445_v13 = vld [vmem:[#allocation5 + $0x5c0] ss:$144 sps:$4 sm:$0xff]   ;;  %v12448_v14 = vld [vmem:[#allocation5 + $0x5c8] ss:$144 sps:$4 sm:$0xff]  }
  0x9d   :  { %v12453_v15 = vld [vmem:[#allocation5 + $0x4a4] ss:$144 sps:$4 sm:$0xff]   ;;  %v12456_v16 = vld [vmem:[#allocation5 + $0x4ac] ss:$144 sps:$4 sm:$0xff]   ;;  %v12451_v17 = vld [vmem:[#allocation5 + $0x4a0] ss:$144 sps:$4 sm:$0xff]  }
  0x9e   :  { %1916 = vmatpush1.bf16.msra.mxu0 %v12376_v27  ;;  %1959 = vmatpush1.bf16.msra.mxu1 %v12377_v28  ;;  %v12454_v18 = vld [vmem:[#allocation5 + $0x4a8] ss:$144 sps:$4 sm:$0xff]   ;;  %v12459_v19 = vld [vmem:[#allocation5 + $0x384] ss:$144 sps:$4 sm:$0xff]   ;;  %v12462_v20 = vld [vmem:[#allocation5 + $0x38c] ss:$144 sps:$4 sm:$0xff]  }
  0x9f   :  { %1917 = vmatprep.subr.bf16.mxu0 %v12378_v29  ;;  %1960 = vmatprep.subr.bf16.mxu1 %v12380_v30  ;;  %v12457_v21 = vld [vmem:[#allocation5 + $0x380] ss:$144 sps:$4 sm:$0xff]   ;;  %v12460_v22 = vld [vmem:[#allocation5 + $0x388] ss:$144 sps:$4 sm:$0xff]   ;;  %v12465_v23 = vld [vmem:[#allocation5 + $0x264] ss:$144 sps:$4 sm:$0xff]  }
  0xa0   :  { %v12468_v24 = vld [vmem:[#allocation5 + $0x26c] ss:$144 sps:$4 sm:$0xff]   ;;  %v12463_v25 = vld [vmem:[#allocation5 + $0x260] ss:$144 sps:$4 sm:$0xff]   ;;  %v12466_v26 = vld [vmem:[#allocation5 + $0x268] ss:$144 sps:$4 sm:$0xff]  }
  0xa1   :  { %v12471_v27 = vld [vmem:[#allocation5 + $0x144] ss:$144 sps:$4 sm:$0xff]   ;;  %v12474_v28 = vld [vmem:[#allocation5 + $0x14c] ss:$144 sps:$4 sm:$0xff]   ;;  %v12469_v29 = vld [vmem:[#allocation5 + $0x140] ss:$144 sps:$4 sm:$0xff]  }
  0xa2   :  { %1918 = vmatpush1.bf16.msra.mxu0 %v12382_v31  ;;  %1961 = vmatpush1.bf16.msra.mxu1 %v12383_v32  ;;  %v12472_v30 = vld [vmem:[#allocation5 + $0x148] ss:$144 sps:$4 sm:$0xff]   ;;  %v12477_v31 = vld [vmem:[#allocation5 + $0x24] ss:$144 sps:$4 sm:$0xff]   ;;  %v12480_v32 = vld [vmem:[#allocation5 + $0x2c] ss:$144 sps:$4 sm:$0xff]  }
  0xa3   :  { %1989 = vmatprep.subr.bf16.mxu0 %v12387_v33  ;;  %2032 = vmatprep.subr.bf16.mxu1 %v12390_v34  ;;  %v12475_v33 = vld [vmem:[#allocation5 + $0x20] ss:$144 sps:$4 sm:$0xff]   ;;  %v12478_v34 = vld [vmem:[#allocation5 + $0x28] ss:$144 sps:$4 sm:$0xff]   ;;  %s14186_s8 = smov [#allocation19]  }
  0xa4   :  { %s10548_s9 = sshll.u32 %s14186_s8, 4  ;;  %s10549_s9 = int_to_ptr.vmem [resolvable:$true] %s10548_s9 }
  0xa5   :  { %1936 = vmatmul.mubr.bf16.vlgmr.msra.gmra.mxu0 %v14283_v35  ;;  %1979 = vmatmul.mubr.bf16.vlgmr.msra.gmra.mxu1 %v14283_v35  ;;  %s14130_s7 = scalar_lea.vmem %s10549_s9, 256  ;;  %p14135_p9 = scmp.lt.s32.totalorder %s10549_s9, %s10549_s9 }
  0xa6   :  { %1990 = vmatpush1.bf16.msra.mxu0 %v12385_v36  ;;  %2033 = vmatpush1.bf16.msra.mxu1 %v12388_v37  ;;  %v12483_v36 = vld [vmem:[#allocation5 + $0x814] ss:$144 sps:$4 sm:$0xff]   ;;  %v12486_v37 = vld [vmem:[#allocation5 + $0x81c] ss:$144 sps:$4 sm:$0xff]   ;;  %p14131_p8 = scmp.ne.s32.totalorder %s10549_s9, %s14130_s7  ;;  %p14136_p10 = scmp.lt.s32.totalorder %s14130_s7, %s14130_s7 }
  0xa7   :  { %1991 = vmatprep.subr.bf16.mxu0 %v12393_v38  ;;  %2034 = vmatprep.subr.bf16.mxu1 %v12396_v39  ;;  %v12481_v38 = vld [vmem:[#allocation5 + $0x810] ss:$144 sps:$4 sm:$0xff]   ;;  %v12484_v39 = vld [vmem:[#allocation5 + $0x818] ss:$144 sps:$4 sm:$0xff]  }
  0xa8   :  { %2021 = vmatprep.mubr.bf16.mxu0 %v14184_v0  ;;  %2064 = vmatprep.mubr.bf16.mxu1 %v14184_v0  ;;  %p14137_p11 = por %p14136_p10, %p14135_p9 }
  0xaa   :  { %1992 = vmatpush1.bf16.msra.mxu0 %v12391_v40  ;;  %2035 = vmatpush1.bf16.msra.mxu1 %v12394_v41  ;;  %v12489_v40 = vld [vmem:[#allocation5 + $0x6f4] ss:$144 sps:$4 sm:$0xff]   ;;  %v12492_v41 = vld [vmem:[#allocation5 + $0x6fc] ss:$144 sps:$4 sm:$0xff]   ;;  %p14138_p12 = pnand %p14137_p11, %p14131_p8 }
  0xab   :  { %1993 = vmatprep.subr.bf16.mxu0 %v12399_v42  ;;  %2036 = vmatprep.subr.bf16.mxu1 %v12402_v43  ;;  %v12487_v42 = vld [vmem:[#allocation5 + $0x6f0] ss:$144 sps:$4 sm:$0xff]   ;;  %v12490_v43 = vld [vmem:[#allocation5 + $0x6f8] ss:$144 sps:$4 sm:$0xff]  }
  0xae   :  { %1994 = vmatpush1.bf16.msra.mxu0 %v12397_v44  ;;  %2037 = vmatpush1.bf16.msra.mxu1 %v12400_v45  ;;  %v12495_v44 = vld [vmem:[#allocation5 + $0x5d4] ss:$144 sps:$4 sm:$0xff]   ;;  %v12498_v45 = vld [vmem:[#allocation5 + $0x5dc] ss:$144 sps:$4 sm:$0xff]  }
  0xaf   :  { %1995 = vmatprep.subr.bf16.mxu0 %v12405_v46  ;;  %2038 = vmatprep.subr.bf16.mxu1 %v12408_v47  ;;  %v12493_v46 = vld [vmem:[#allocation5 + $0x5d0] ss:$144 sps:$4 sm:$0xff]   ;;  %v12496_v47 = vld [vmem:[#allocation5 + $0x5d8] ss:$144 sps:$4 sm:$0xff]  }
  0xb2   :  { %1996 = vmatpush1.bf16.msra.mxu0 %v12403_v48  ;;  %2039 = vmatpush1.bf16.msra.mxu1 %v12406_v49  ;;  %v12501_v48 = vld [vmem:[#allocation5 + $0x4b4] ss:$144 sps:$4 sm:$0xff]   ;;  %v12504_v49 = vld [vmem:[#allocation5 + $0x4bc] ss:$144 sps:$4 sm:$0xff]  }
  0xb3   :  { %1997 = vmatprep.subr.bf16.mxu0 %v12411_v50  ;;  %2040 = vmatprep.subr.bf16.mxu1 %v12414_v51  ;;  %v12499_v50 = vld [vmem:[#allocation5 + $0x4b0] ss:$144 sps:$4 sm:$0xff]   ;;  %v12502_v51 = vld [vmem:[#allocation5 + $0x4b8] ss:$144 sps:$4 sm:$0xff]  }
  0xb6   :  { %1998 = vmatpush1.bf16.msra.mxu0 %v12409_v52  ;;  %2041 = vmatpush1.bf16.msra.mxu1 %v12412_v53  ;;  %v12507_v52 = vld [vmem:[#allocation5 + $0x394] ss:$144 sps:$4 sm:$0xff]   ;;  %v12510_v53 = vld [vmem:[#allocation5 + $0x39c] ss:$144 sps:$4 sm:$0xff]  }
  0xb7   :  { %1999 = vmatprep.subr.bf16.mxu0 %v12417_v54  ;;  %2042 = vmatprep.subr.bf16.mxu1 %v12420_v55  ;;  %v12505_v54 = vld [vmem:[#allocation5 + $0x390] ss:$144 sps:$4 sm:$0xff]   ;;  %v12508_v55 = vld [vmem:[#allocation5 + $0x398] ss:$144 sps:$4 sm:$0xff]  }
  0xba   :  { %2000 = vmatpush1.bf16.msra.mxu0 %v12415_v56  ;;  %2043 = vmatpush1.bf16.msra.mxu1 %v12418_v57  ;;  %v12513_v56 = vld [vmem:[#allocation5 + $0x274] ss:$144 sps:$4 sm:$0xff]   ;;  %v12516_v57 = vld [vmem:[#allocation5 + $0x27c] ss:$144 sps:$4 sm:$0xff]  }
  0xbb   :  { %2001 = vmatprep.subr.bf16.mxu0 %v12423_v58  ;;  %2044 = vmatprep.subr.bf16.mxu1 %v12426_v59  ;;  %v12511_v58 = vld [vmem:[#allocation5 + $0x270] ss:$144 sps:$4 sm:$0xff]   ;;  %v12514_v59 = vld [vmem:[#allocation5 + $0x278] ss:$144 sps:$4 sm:$0xff]  }
  0xbe   :  { %2002 = vmatpush1.bf16.msra.mxu0 %v12421_v60  ;;  %2045 = vmatpush1.bf16.msra.mxu1 %v12424_v61  ;;  %v12519_v60 = vld [vmem:[#allocation5 + $0x154] ss:$144 sps:$4 sm:$0xff]   ;;  %v12522_v61 = vld [vmem:[#allocation5 + $0x15c] ss:$144 sps:$4 sm:$0xff]  }
  0xbf   :  { %2003 = vmatprep.subr.bf16.mxu0 %v12429_v62  ;;  %2046 = vmatprep.subr.bf16.mxu1 %v12432_v63  ;;  %v12517_v62 = vld [vmem:[#allocation5 + $0x150] ss:$144 sps:$4 sm:$0xff]   ;;  %v12520_v63 = vld [vmem:[#allocation5 + $0x158] ss:$144 sps:$4 sm:$0xff]  }
  0xc2   :  { %2004 = vmatpush1.bf16.msra.mxu0 %v12427_v1  ;;  %2047 = vmatpush1.bf16.msra.mxu1 %v12430_v2  ;;  %v12525_v1 = vld [vmem:[#allocation5 + $0x34] ss:$144 sps:$4 sm:$0xff]   ;;  %v12528_v2 = vld [vmem:[#allocation5 + $0x3c] ss:$144 sps:$4 sm:$0xff]  }
  0xc3   :  { %2075 = vmatprep.subr.bf16.mxu0 %v12435_v3  ;;  %2118 = vmatprep.subr.bf16.mxu1 %v12438_v4  ;;  %v12523_v3 = vld [vmem:[#allocation5 + $0x30] ss:$144 sps:$4 sm:$0xff]   ;;  %v12526_v4 = vld [vmem:[#allocation5 + $0x38] ss:$144 sps:$4 sm:$0xff]  }
  0xc5   :  { %2022 = vmatmul.mubr.bf16.vlgmr.msra.gmra.mxu0 %v14283_v35  ;;  %2065 = vmatmul.mubr.bf16.vlgmr.msra.gmra.mxu1 %v14283_v35 }
  0xc6   :  { %2076 = vmatpush1.bf16.msra.mxu0 %v12433_v5  ;;  %2119 = vmatpush1.bf16.msra.mxu1 %v12436_v6  ;;  %v12531_v5 = vld [vmem:[#allocation5 + $0x824] ss:$144 sps:$4 sm:$0xff]   ;;  %v12534_v6 = vld [vmem:[#allocation5 + $0x82c] ss:$144 sps:$4 sm:$0xff]  }
  0xc7   :  { %2077 = vmatprep.subr.bf16.mxu0 %v12441_v7  ;;  %2120 = vmatprep.subr.bf16.mxu1 %v12444_v8  ;;  %v12529_v7 = vld [vmem:[#allocation5 + $0x820] ss:$144 sps:$4 sm:$0xff]   ;;  %v12532_v8 = vld [vmem:[#allocation5 + $0x828] ss:$144 sps:$4 sm:$0xff]  }
  0xc8   :  { %2107 = vmatprep.mubr.bf16.mxu0 %v14184_v0  ;;  %2150 = vmatprep.mubr.bf16.mxu1 %v14184_v0 }
  0xca   :  { %2078 = vmatpush1.bf16.msra.mxu0 %v12439_v9  ;;  %2121 = vmatpush1.bf16.msra.mxu1 %v12442_v10  ;;  %v12537_v9 = vld [vmem:[#allocation5 + $0x704] ss:$144 sps:$4 sm:$0xff]   ;;  %v12540_v10 = vld [vmem:[#allocation5 + $0x70c] ss:$144 sps:$4 sm:$0xff]  }
  0xcb   :  { %2079 = vmatprep.subr.bf16.mxu0 %v12447_v11  ;;  %2122 = vmatprep.subr.bf16.mxu1 %v12450_v12  ;;  %v12535_v11 = vld [vmem:[#allocation5 + $0x700] ss:$144 sps:$4 sm:$0xff]   ;;  %v12538_v12 = vld [vmem:[#allocation5 + $0x708] ss:$144 sps:$4 sm:$0xff]  }
  0xce   :  { %2080 = vmatpush1.bf16.msra.mxu0 %v12445_v13  ;;  %2123 = vmatpush1.bf16.msra.mxu1 %v12448_v14  ;;  %v12543_v13 = vld [vmem:[#allocation5 + $0x5e4] ss:$144 sps:$4 sm:$0xff]   ;;  %v12546_v14 = vld [vmem:[#allocation5 + $0x5ec] ss:$144 sps:$4 sm:$0xff]  }
  0xcf   :  { %2081 = vmatprep.subr.bf16.mxu0 %v12453_v15  ;;  %2124 = vmatprep.subr.bf16.mxu1 %v12456_v16  ;;  %v12541_v15 = vld [vmem:[#allocation5 + $0x5e0] ss:$144 sps:$4 sm:$0xff]   ;;  %v12544_v16 = vld [vmem:[#allocation5 + $0x5e8] ss:$144 sps:$4 sm:$0xff]  }
  0xd2   :  { %2082 = vmatpush1.bf16.msra.mxu0 %v12451_v17  ;;  %2125 = vmatpush1.bf16.msra.mxu1 %v12454_v18  ;;  %v12549_v17 = vld [vmem:[#allocation5 + $0x4c4] ss:$144 sps:$4 sm:$0xff]   ;;  %v12552_v18 = vld [vmem:[#allocation5 + $0x4cc] ss:$144 sps:$4 sm:$0xff]  }
  0xd3   :  { %2083 = vmatprep.subr.bf16.mxu0 %v12459_v19  ;;  %2126 = vmatprep.subr.bf16.mxu1 %v12462_v20  ;;  %v12547_v19 = vld [vmem:[#allocation5 + $0x4c0] ss:$144 sps:$4 sm:$0xff]   ;;  %v12550_v20 = vld [vmem:[#allocation5 + $0x4c8] ss:$144 sps:$4 sm:$0xff]  }
  0xd6   :  { %2084 = vmatpush1.bf16.msra.mxu0 %v12457_v21  ;;  %2127 = vmatpush1.bf16.msra.mxu1 %v12460_v22  ;;  %v12555_v21 = vld [vmem:[#allocation5 + $0x3a4] ss:$144 sps:$4 sm:$0xff]   ;;  %v12558_v22 = vld [vmem:[#allocation5 + $0x3ac] ss:$144 sps:$4 sm:$0xff]  }
  0xd7   :  { %2085 = vmatprep.subr.bf16.mxu0 %v12465_v23  ;;  %2128 = vmatprep.subr.bf16.mxu1 %v12468_v24  ;;  %v12553_v23 = vld [vmem:[#allocation5 + $0x3a0] ss:$144 sps:$4 sm:$0xff]   ;;  %v12556_v24 = vld [vmem:[#allocation5 + $0x3a8] ss:$144 sps:$4 sm:$0xff]  }
  0xda   :  { %2086 = vmatpush1.bf16.msra.mxu0 %v12463_v25  ;;  %2129 = vmatpush1.bf16.msra.mxu1 %v12466_v26  ;;  %v12561_v25 = vld [vmem:[#allocation5 + $0x284] ss:$144 sps:$4 sm:$0xff]   ;;  %v12564_v26 = vld [vmem:[#allocation5 + $0x28c] ss:$144 sps:$4 sm:$0xff]  }
  0xdb   :  { %2087 = vmatprep.subr.bf16.mxu0 %v12471_v27  ;;  %2130 = vmatprep.subr.bf16.mxu1 %v12474_v28  ;;  %v12559_v27 = vld [vmem:[#allocation5 + $0x280] ss:$144 sps:$4 sm:$0xff]   ;;  %v12562_v28 = vld [vmem:[#allocation5 + $0x288] ss:$144 sps:$4 sm:$0xff]  }
  0xde   :  { %2088 = vmatpush1.bf16.msra.mxu0 %v12469_v29  ;;  %2131 = vmatpush1.bf16.msra.mxu1 %v12472_v30  ;;  %v12567_v29 = vld [vmem:[#allocation5 + $0x164] ss:$144 sps:$4 sm:$0xff]   ;;  %v12570_v30 = vld [vmem:[#allocation5 + $0x16c] ss:$144 sps:$4 sm:$0xff]  }
  0xdf   :  { %2089 = vmatprep.subr.bf16.mxu0 %v12477_v31  ;;  %2132 = vmatprep.subr.bf16.mxu1 %v12480_v32  ;;  %v12565_v31 = vld [vmem:[#allocation5 + $0x160] ss:$144 sps:$4 sm:$0xff]   ;;  %v12568_v32 = vld [vmem:[#allocation5 + $0x168] ss:$144 sps:$4 sm:$0xff]  }
  0xe2   :  { %2090 = vmatpush1.bf16.msra.mxu0 %v12475_v33  ;;  %2133 = vmatpush1.bf16.msra.mxu1 %v12478_v34  ;;  %v12573_v33 = vld [vmem:[#allocation5 + $0x44] ss:$144 sps:$4 sm:$0xff]   ;;  %v12576_v34 = vld [vmem:[#allocation5 + $0x4c] ss:$144 sps:$4 sm:$0xff]  }
  0xe3   :  { %2161 = vmatprep.subr.bf16.mxu0 %v12483_v36  ;;  %2204 = vmatprep.subr.bf16.mxu1 %v12486_v37  ;;  %v12571_v36 = vld [vmem:[#allocation5 + $0x40] ss:$144 sps:$4 sm:$0xff]   ;;  %v12574_v37 = vld [vmem:[#allocation5 + $0x48] ss:$144 sps:$4 sm:$0xff]  }
  0xe5   :  { %2108 = vmatmul.mubr.bf16.vlgmr.msra.gmra.mxu0 %v14283_v35  ;;  %2151 = vmatmul.mubr.bf16.vlgmr.msra.gmra.mxu1 %v14283_v35 }
  0xe6   :  { %2162 = vmatpush1.bf16.msra.mxu0 %v12481_v38  ;;  %2205 = vmatpush1.bf16.msra.mxu1 %v12484_v39  ;;  %v12579_v38 = vld [vmem:[#allocation5 + $0x834] ss:$144 sps:$4 sm:$0xff]   ;;  %v12582_v39 = vld [vmem:[#allocation5 + $0x83c] ss:$144 sps:$4 sm:$0xff]  }
  0xe7   :  { %2163 = vmatprep.subr.bf16.mxu0 %v12489_v40  ;;  %2206 = vmatprep.subr.bf16.mxu1 %v12492_v41  ;;  %v12577_v40 = vld [vmem:[#allocation5 + $0x830] ss:$144 sps:$4 sm:$0xff]   ;;  %v12580_v41 = vld [vmem:[#allocation5 + $0x838] ss:$144 sps:$4 sm:$0xff]  }
  0xe8   :  { %2193 = vmatprep.mubr.bf16.mxu0 %v14184_v0  ;;  %2236 = vmatprep.mubr.bf16.mxu1 %v14184_v0 }
  0xea   :  { %2164 = vmatpush1.bf16.msra.mxu0 %v12487_v42  ;;  %2207 = vmatpush1.bf16.msra.mxu1 %v12490_v43  ;;  %v12585_v42 = vld [vmem:[#allocation5 + $0x714] ss:$144 sps:$4 sm:$0xff]   ;;  %v12588_v43 = vld [vmem:[#allocation5 + $0x71c] ss:$144 sps:$4 sm:$0xff]  }
  0xeb   :  { %2165 = vmatprep.subr.bf16.mxu0 %v12495_v44  ;;  %2208 = vmatprep.subr.bf16.mxu1 %v12498_v45  ;;  %v12583_v44 = vld [vmem:[#allocation5 + $0x710] ss:$144 sps:$4 sm:$0xff]   ;;  %v12586_v45 = vld [vmem:[#allocation5 + $0x718] ss:$144 sps:$4 sm:$0xff]  }
  0xee   :  { %2166 = vmatpush1.bf16.msra.mxu0 %v12493_v46  ;;  %2209 = vmatpush1.bf16.msra.mxu1 %v12496_v47  ;;  %v12591_v46 = vld [vmem:[#allocation5 + $0x5f4] ss:$144 sps:$4 sm:$0xff]   ;;  %v12594_v47 = vld [vmem:[#allocation5 + $0x5fc] ss:$144 sps:$4 sm:$0xff]  }
  0xef   :  { %2167 = vmatprep.subr.bf16.mxu0 %v12501_v48  ;;  %2210 = vmatprep.subr.bf16.mxu1 %v12504_v49  ;;  %v12589_v48 = vld [vmem:[#allocation5 + $0x5f0] ss:$144 sps:$4 sm:$0xff]   ;;  %v12592_v49 = vld [vmem:[#allocation5 + $0x5f8] ss:$144 sps:$4 sm:$0xff]  }
  0xf2   :  { %2168 = vmatpush1.bf16.msra.mxu0 %v12499_v50  ;;  %2211 = vmatpush1.bf16.msra.mxu1 %v12502_v51  ;;  %v12597_v50 = vld [vmem:[#allocation5 + $0x4d4] ss:$144 sps:$4 sm:$0xff]   ;;  %v12595_v51 = vld [vmem:[#allocation5 + $0x4d0] ss:$144 sps:$4 sm:$0xff]  }
  0xf3   :  { %2169 = vmatprep.subr.bf16.mxu0 %v12507_v52  ;;  %2212 = vmatprep.subr.bf16.mxu1 %v12510_v53  ;;  %v12598_v52 = vld [vmem:[#allocation5 + $0x4d8] ss:$144 sps:$4 sm:$0xff]   ;;  %v12603_v53 = vld [vmem:[#allocation5 + $0x3b4] ss:$144 sps:$4 sm:$0xff]  }
  0xf6   :  { %2170 = vmatpush1.bf16.msra.mxu0 %v12505_v54  ;;  %2213 = vmatpush1.bf16.msra.mxu1 %v12508_v55  ;;  %v12606_v54 = vld [vmem:[#allocation5 + $0x3bc] ss:$144 sps:$4 sm:$0xff]   ;;  %v12601_v55 = vld [vmem:[#allocation5 + $0x3b0] ss:$144 sps:$4 sm:$0xff]  }
  0xf7   :  { %2171 = vmatprep.subr.bf16.mxu0 %v12513_v56  ;;  %2214 = vmatprep.subr.bf16.mxu1 %v12516_v57  ;;  %v12604_v56 = vld [vmem:[#allocation5 + $0x3b8] ss:$144 sps:$4 sm:$0xff]   ;;  %v12609_v57 = vld [vmem:[#allocation5 + $0x294] ss:$144 sps:$4 sm:$0xff]  }
  0xfa   :  { %2172 = vmatpush1.bf16.msra.mxu0 %v12511_v58  ;;  %2215 = vmatpush1.bf16.msra.mxu1 %v12514_v59  ;;  %v12612_v58 = vld [vmem:[#allocation5 + $0x29c] ss:$144 sps:$4 sm:$0xff]   ;;  %v12607_v59 = vld [vmem:[#allocation5 + $0x290] ss:$144 sps:$4 sm:$0xff]  }
  0xfb   :  { %2173 = vmatprep.subr.bf16.mxu0 %v12519_v60  ;;  %2216 = vmatprep.subr.bf16.mxu1 %v12522_v61  ;;  %v12610_v60 = vld [vmem:[#allocation5 + $0x298] ss:$144 sps:$4 sm:$0xff]   ;;  %v12615_v61 = vld [vmem:[#allocation5 + $0x174] ss:$144 sps:$4 sm:$0xff]  }
  0xfe   :  { %2174 = vmatpush1.bf16.msra.mxu0 %v12517_v62  ;;  %2217 = vmatpush1.bf16.msra.mxu1 %v12520_v63  ;;  %v12618_v62 = vld [vmem:[#allocation5 + $0x17c] ss:$144 sps:$4 sm:$0xff]   ;;  %v12613_v63 = vld [vmem:[#allocation5 + $0x170] ss:$144 sps:$4 sm:$0xff]  }
  0xff   :  { %2175 = vmatprep.subr.bf16.mxu0 %v12525_v1  ;;  %2218 = vmatprep.subr.bf16.mxu1 %v12528_v2  ;;  %v12616_v1 = vld [vmem:[#allocation5 + $0x178] ss:$144 sps:$4 sm:$0xff]   ;;  %v12621_v2 = vld [vmem:[#allocation5 + $0x54] ss:$144 sps:$4 sm:$0xff]  }
 0x102   :  { %2176 = vmatpush1.bf16.msra.mxu0 %v12523_v3  ;;  %2219 = vmatpush1.bf16.msra.mxu1 %v12526_v4  ;;  %v12624_v3 = vld [vmem:[#allocation5 + $0x5c] ss:$144 sps:$4 sm:$0xff]   ;;  %v12619_v4 = vld [vmem:[#allocation5 + $0x50] ss:$144 sps:$4 sm:$0xff]  }
 0x103   :  { %2247 = vmatprep.subr.bf16.mxu0 %v12531_v5  ;;  %2290 = vmatprep.subr.bf16.mxu1 %v12534_v6  ;;  %v12622_v5 = vld [vmem:[#allocation5 + $0x58] ss:$144 sps:$4 sm:$0xff]   ;;  %v12627_v6 = vld [vmem:[#allocation5 + $0x844] ss:$144 sps:$4 sm:$0xff]  }
 0x105   :  { %2194 = vmatmul.mubr.bf16.vlgmr.msra.gmra.mxu0 %v14283_v35  ;;  %2237 = vmatmul.mubr.bf16.vlgmr.msra.gmra.mxu1 %v14283_v35 }
 0x106   :  { %2248 = vmatpush1.bf16.msra.mxu0 %v12529_v7  ;;  %2291 = vmatpush1.bf16.msra.mxu1 %v12532_v8  ;;  %v12630_v7 = vld [vmem:[#allocation5 + $0x84c] ss:$144 sps:$4 sm:$0xff]   ;;  %v12625_v8 = vld [vmem:[#allocation5 + $0x840] ss:$144 sps:$4 sm:$0xff]  }
 0x107   :  { %2249 = vmatprep.subr.bf16.mxu0 %v12537_v9  ;;  %2292 = vmatprep.subr.bf16.mxu1 %v12540_v10  ;;  %v12628_v9 = vld [vmem:[#allocation5 + $0x848] ss:$144 sps:$4 sm:$0xff]   ;;  %v12633_v10 = vld [vmem:[#allocation5 + $0x724] ss:$144 sps:$4 sm:$0xff]  }
 0x108   :  { %2279 = vmatprep.mubr.bf16.mxu0 %v14184_v0  ;;  %2322 = vmatprep.mubr.bf16.mxu1 %v14184_v0 }
 0x10a   :  { %2250 = vmatpush1.bf16.msra.mxu0 %v12535_v11  ;;  %2293 = vmatpush1.bf16.msra.mxu1 %v12538_v12  ;;  %v12636_v11 = vld [vmem:[#allocation5 + $0x72c] ss:$144 sps:$4 sm:$0xff]  }
 0x10b   :  { %2251 = vmatprep.subr.bf16.mxu0 %v12543_v13  ;;  %2294 = vmatprep.subr.bf16.mxu1 %v12546_v14  ;;  %v14305_v12 = vld [vmem:[#allocation2] sm:$0xff]   ;;  %v12631_v13 = vld [vmem:[#allocation5 + $0x720] ss:$144 sps:$4 sm:$0xff]  }
 0x10c   :  { %v12634_v14 = vld [vmem:[#allocation5 + $0x728] ss:$144 sps:$4 sm:$0xff]  }
 0x10e   :  { %2252 = vmatpush1.bf16.msra.mxu0 %v12541_v15  ;;  %2295 = vmatpush1.bf16.msra.mxu1 %v12544_v16  ;;  %v12639_v15 = vld [vmem:[#allocation5 + $0x604] ss:$144 sps:$4 sm:$0xff]   ;;  %v12642_v16 = vld [vmem:[#allocation5 + $0x60c] ss:$144 sps:$4 sm:$0xff]  }
 0x10f   :  { %2253 = vmatprep.subr.bf16.mxu0 %v12549_v17  ;;  %2296 = vmatprep.subr.bf16.mxu1 %v12552_v18  ;;  %v12637_v17 = vld [vmem:[#allocation5 + $0x600] ss:$144 sps:$4 sm:$0xff]   ;;  %v12640_v18 = vld [vmem:[#allocation5 + $0x608] ss:$144 sps:$4 sm:$0xff]  }
 0x112   :  { %2254 = vmatpush1.bf16.msra.mxu0 %v12547_v19  ;;  %2297 = vmatpush1.bf16.msra.mxu1 %v12550_v20  ;;  %v12645_v19 = vld [vmem:[#allocation5 + $0x4e4] ss:$144 sps:$4 sm:$0xff]   ;;  %v12648_v20 = vld [vmem:[#allocation5 + $0x4ec] ss:$144 sps:$4 sm:$0xff]  }
 0x113   :  { %2255 = vmatprep.subr.bf16.mxu0 %v12555_v21  ;;  %2298 = vmatprep.subr.bf16.mxu1 %v12558_v22  ;;  %v12643_v21 = vld [vmem:[#allocation5 + $0x4e0] ss:$144 sps:$4 sm:$0xff]   ;;  %v12646_v22 = vld [vmem:[#allocation5 + $0x4e8] ss:$144 sps:$4 sm:$0xff]  }
 0x116   :  { %2256 = vmatpush1.bf16.msra.mxu0 %v12553_v23  ;;  %2299 = vmatpush1.bf16.msra.mxu1 %v12556_v24  ;;  %v12651_v23 = vld [vmem:[#allocation5 + $0x3c4] ss:$144 sps:$4 sm:$0xff]   ;;  %v12654_v24 = vld [vmem:[#allocation5 + $0x3cc] ss:$144 sps:$4 sm:$0xff]  }
 0x117   :  { %2257 = vmatprep.subr.bf16.mxu0 %v12561_v25  ;;  %2300 = vmatprep.subr.bf16.mxu1 %v12564_v26  ;;  %v12649_v25 = vld [vmem:[#allocation5 + $0x3c0] ss:$144 sps:$4 sm:$0xff]   ;;  %v12652_v26 = vld [vmem:[#allocation5 + $0x3c8] ss:$144 sps:$4 sm:$0xff]  }
 0x11a   :  { %2258 = vmatpush1.bf16.msra.mxu0 %v12559_v27  ;;  %2301 = vmatpush1.bf16.msra.mxu1 %v12562_v28  ;;  %v12657_v27 = vld [vmem:[#allocation5 + $0x2a4] ss:$144 sps:$4 sm:$0xff]   ;;  %v12660_v28 = vld [vmem:[#allocation5 + $0x2ac] ss:$144 sps:$4 sm:$0xff]  }
 0x11b   :  { %2259 = vmatprep.subr.bf16.mxu0 %v12567_v29  ;;  %2302 = vmatprep.subr.bf16.mxu1 %v12570_v30  ;;  %v12655_v29 = vld [vmem:[#allocation5 + $0x2a0] ss:$144 sps:$4 sm:$0xff]   ;;  %v12658_v30 = vld [vmem:[#allocation5 + $0x2a8] ss:$144 sps:$4 sm:$0xff]  }
 0x11e   :  { %2260 = vmatpush1.bf16.msra.mxu0 %v12565_v31  ;;  %2303 = vmatpush1.bf16.msra.mxu1 %v12568_v32  ;;  %v12663_v31 = vld [vmem:[#allocation5 + $0x184] ss:$144 sps:$4 sm:$0xff]   ;;  %v12666_v32 = vld [vmem:[#allocation5 + $0x18c] ss:$144 sps:$4 sm:$0xff]  }
 0x11f   :  { %2261 = vmatprep.subr.bf16.mxu0 %v12573_v33  ;;  %2304 = vmatprep.subr.bf16.mxu1 %v12576_v34  ;;  %v12661_v33 = vld [vmem:[#allocation5 + $0x180] ss:$144 sps:$4 sm:$0xff]   ;;  %v12664_v34 = vld [vmem:[#allocation5 + $0x188] ss:$144 sps:$4 sm:$0xff]  }
 0x122   :  { %2262 = vmatpush1.bf16.msra.mxu0 %v12571_v36  ;;  %2305 = vmatpush1.bf16.msra.mxu1 %v12574_v37  ;;  %v12669_v36 = vld [vmem:[#allocation5 + $0x64] ss:$144 sps:$4 sm:$0xff]   ;;  %v12672_v37 = vld [vmem:[#allocation5 + $0x6c] ss:$144 sps:$4 sm:$0xff]  }
 0x123   :  { %2333 = vmatprep.subr.bf16.mxu0 %v12579_v38  ;;  %2376 = vmatprep.subr.bf16.mxu1 %v12582_v39  ;;  %v12667_v38 = vld [vmem:[#allocation5 + $0x60] ss:$144 sps:$4 sm:$0xff]   ;;  %v12670_v39 = vld [vmem:[#allocation5 + $0x68] ss:$144 sps:$4 sm:$0xff]  }
 0x125   :  { %2280 = vmatmul.mubr.bf16.vlgmr.msra.gmra.mxu0 %v14283_v35  ;;  %2323 = vmatmul.mubr.bf16.vlgmr.msra.gmra.mxu1 %v14283_v35  ;;  %v12600_v35 = vld [vmem:[#allocation5 + $0x4dc] ss:$144 sps:$4 sm:$0xff]  }
 0x126   :  { %2334 = vmatpush1.bf16.msra.mxu0 %v12577_v40  ;;  %2377 = vmatpush1.bf16.msra.mxu1 %v12580_v41  ;;  %v12675_v40 = vld [vmem:[#allocation5 + $0x854] ss:$144 sps:$4 sm:$0xff]   ;;  %v12678_v41 = vld [vmem:[#allocation5 + $0x85c] ss:$144 sps:$4 sm:$0xff]  }
 0x127   :  { %2335 = vmatprep.subr.bf16.mxu0 %v12585_v42  ;;  %2378 = vmatprep.subr.bf16.mxu1 %v12588_v43  ;;  %v12673_v42 = vld [vmem:[#allocation5 + $0x850] ss:$144 sps:$4 sm:$0xff]   ;;  %v12676_v43 = vld [vmem:[#allocation5 + $0x858] ss:$144 sps:$4 sm:$0xff]  }
 0x128   :  { %2365 = vmatprep.mubr.bf16.mxu0 %v14184_v0  ;;  %2408 = vmatprep.mubr.bf16.mxu1 %v14184_v0 }
 0x12a   :  { %2336 = vmatpush1.bf16.msra.mxu0 %v12583_v44  ;;  %2379 = vmatpush1.bf16.msra.mxu1 %v12586_v45  ;;  %v12681_v44 = vld [vmem:[#allocation5 + $0x734] ss:$144 sps:$4 sm:$0xff]   ;;  %v12684_v45 = vld [vmem:[#allocation5 + $0x73c] ss:$144 sps:$4 sm:$0xff]  }
 0x12b   :  { %2337 = vmatprep.subr.bf16.mxu0 %v12591_v46  ;;  %2380 = vmatprep.subr.bf16.mxu1 %v12594_v47  ;;  %v12679_v47 = vld [vmem:[#allocation5 + $0x730] ss:$144 sps:$4 sm:$0xff]  }
 0x12e   :  { %2338 = vmatpush1.bf16.msra.mxu0 %v12589_v48  ;;  %2381 = vmatpush1.bf16.msra.mxu1 %v12592_v49  ;;  %v12682_v48 = vld [vmem:[#allocation5 + $0x738] ss:$144 sps:$4 sm:$0xff]  }
 0x12f   :  { %2339 = vmatprep.subr.bf16.mxu0 %v12597_v50  ;;  %2382 = vmatprep.subr.bf16.mxu1 %v12600_v35  ;;  %v12687_v50 = vld [vmem:[#allocation5 + $0x614] ss:$144 sps:$4 sm:$0xff]   ;;  %v12690_v35 = vld [vmem:[#allocation5 + $0x61c] ss:$144 sps:$4 sm:$0xff]  }
 0x132   :  { %2340 = vmatpush1.bf16.msra.mxu0 %v12595_v51  ;;  %2383 = vmatpush1.bf16.msra.mxu1 %v12598_v52  ;;  %v12685_v52 = vld [vmem:[#allocation5 + $0x610] ss:$144 sps:$4 sm:$0xff]  }
 0x133   :  { %2341 = vmatprep.subr.bf16.mxu0 %v12603_v53  ;;  %2384 = vmatprep.subr.bf16.mxu1 %v12606_v54  ;;  %v12688_v54 = vld [vmem:[#allocation5 + $0x618] ss:$144 sps:$4 sm:$0xff]  }
 0x136   :  { %2342 = vmatpush1.bf16.msra.mxu0 %v12601_v55  ;;  %2385 = vmatpush1.bf16.msra.mxu1 %v12604_v56  ;;  %v12693_v55 = vld [vmem:[#allocation5 + $0x4f4] ss:$144 sps:$4 sm:$0xff]   ;;  %v12696_v56 = vld [vmem:[#allocation5 + $0x4fc] ss:$144 sps:$4 sm:$0xff]  }
 0x137   :  { %2343 = vmatprep.subr.bf16.mxu0 %v12609_v57  ;;  %2386 = vmatprep.subr.bf16.mxu1 %v12612_v58  ;;  %v12691_v57 = vld [vmem:[#allocation5 + $0x4f0] ss:$144 sps:$4 sm:$0xff]   ;;  %v12694_v58 = vld [vmem:[#allocation5 + $0x4f8] ss:$144 sps:$4 sm:$0xff]  }
 0x13a   :  { %2344 = vmatpush1.bf16.msra.mxu0 %v12607_v59  ;;  %2387 = vmatpush1.bf16.msra.mxu1 %v12610_v60  ;;  %v12699_v59 = vld [vmem:[#allocation5 + $0x3d4] ss:$144 sps:$4 sm:$0xff]   ;;  %v12702_v60 = vld [vmem:[#allocation5 + $0x3dc] ss:$144 sps:$4 sm:$0xff]  }
 0x13b   :  { %2345 = vmatprep.subr.bf16.mxu0 %v12615_v61  ;;  %2388 = vmatprep.subr.bf16.mxu1 %v12618_v62  ;;  %v12697_v61 = vld [vmem:[#allocation5 + $0x3d0] ss:$144 sps:$4 sm:$0xff]   ;;  %v12700_v62 = vld [vmem:[#allocation5 + $0x3d8] ss:$144 sps:$4 sm:$0xff]  }
 0x13e   :  { %2346 = vmatpush1.bf16.msra.mxu0 %v12613_v63  ;;  %2389 = vmatpush1.bf16.msra.mxu1 %v12616_v1  ;;  %v12705_v63 = vld [vmem:[#allocation5 + $0x2b4] ss:$144 sps:$4 sm:$0xff]   ;;  %v12708_v1 = vld [vmem:[#allocation5 + $0x2bc] ss:$144 sps:$4 sm:$0xff]  }
 0x13f   :  { %2347 = vmatprep.subr.bf16.mxu0 %v12621_v2  ;;  %2390 = vmatprep.subr.bf16.mxu1 %v12624_v3  ;;  %v12703_v2 = vld [vmem:[#allocation5 + $0x2b0] ss:$144 sps:$4 sm:$0xff]   ;;  %v12706_v3 = vld [vmem:[#allocation5 + $0x2b8] ss:$144 sps:$4 sm:$0xff]  }
 0x142   :  { %2348 = vmatpush1.bf16.msra.mxu0 %v12619_v4  ;;  %2391 = vmatpush1.bf16.msra.mxu1 %v12622_v5  ;;  %v12711_v4 = vld [vmem:[#allocation5 + $0x194] ss:$144 sps:$4 sm:$0xff]   ;;  %v12714_v5 = vld [vmem:[#allocation5 + $0x19c] ss:$144 sps:$4 sm:$0xff]  }
 0x143   :  { %2419 = vmatprep.subr.bf16.mxu0 %v12627_v6  ;;  %2462 = vmatprep.subr.bf16.mxu1 %v12630_v7  ;;  %v12709_v7 = vld [vmem:[#allocation5 + $0x190] ss:$144 sps:$4 sm:$0xff]  }
 0x145   :  { %2366 = vmatmul.mubr.bf16.vlgmr.msra.gmra.mxu0 %v14305_v12  ;;  %2409 = vmatmul.mubr.bf16.vlgmr.msra.gmra.mxu1 %v14305_v12 }
 0x146   :  { %2420 = vmatpush1.bf16.msra.mxu0 %v12625_v8  ;;  %2463 = vmatpush1.bf16.msra.mxu1 %v12628_v9  ;;  %v12712_v8 = vld [vmem:[#allocation5 + $0x198] ss:$144 sps:$4 sm:$0xff]   ;;  %v12717_v9 = vld [vmem:[#allocation5 + $0x74] ss:$144 sps:$4 sm:$0xff]  }
 0x147   :  { %2421 = vmatprep.subr.bf16.mxu0 %v12633_v10  ;;  %2464 = vmatprep.subr.bf16.mxu1 %v12636_v11  ;;  %v12720_v10 = vld [vmem:[#allocation5 + $0x7c] ss:$144 sps:$4 sm:$0xff]  }
 0x148   :  { %2451 = vmatprep.mubr.bf16.mxu0 %v14184_v0  ;;  %2494 = vmatprep.mubr.bf16.mxu1 %v14184_v0 }
 0x14a   :  { %2422 = vmatpush1.bf16.msra.mxu0 %v12631_v13  ;;  %2465 = vmatpush1.bf16.msra.mxu1 %v12634_v14  ;;  %v12715_v13 = vld [vmem:[#allocation5 + $0x70] ss:$144 sps:$4 sm:$0xff]   ;;  %v12718_v14 = vld [vmem:[#allocation5 + $0x78] ss:$144 sps:$4 sm:$0xff]  }
 0x14b   :  { %2423 = vmatprep.subr.bf16.mxu0 %v12639_v15  ;;  %2466 = vmatprep.subr.bf16.mxu1 %v12642_v16  ;;  %v12723_v15 = vld [vmem:[#allocation5 + $0x864] ss:$144 sps:$4 sm:$0xff]   ;;  %v12726_v16 = vld [vmem:[#allocation5 + $0x86c] ss:$144 sps:$4 sm:$0xff]  }
 0x14e   :  { %2424 = vmatpush1.bf16.msra.mxu0 %v12637_v17  ;;  %2467 = vmatpush1.bf16.msra.mxu1 %v12640_v18  ;;  %v12721_v18 = vld [vmem:[#allocation5 + $0x860] ss:$144 sps:$4 sm:$0xff]  }
 0x14f   :  { %2425 = vmatprep.subr.bf16.mxu0 %v12645_v19  ;;  %2468 = vmatprep.subr.bf16.mxu1 %v12648_v20  ;;  %v12724_v19 = vld [vmem:[#allocation5 + $0x868] ss:$144 sps:$4 sm:$0xff]   ;;  %v12729_v20 = vld [vmem:[#allocation5 + $0x744] ss:$144 sps:$4 sm:$0xff]  }
 0x152   :  { %2426 = vmatpush1.bf16.msra.mxu0 %v12643_v21  ;;  %2469 = vmatpush1.bf16.msra.mxu1 %v12646_v22  ;;  %v12732_v21 = vld [vmem:[#allocation5 + $0x74c] ss:$144 sps:$4 sm:$0xff]  }
 0x153   :  { %2427 = vmatprep.subr.bf16.mxu0 %v12651_v23  ;;  %2470 = vmatprep.subr.bf16.mxu1 %v12654_v24 }
 0x156   :  { %2428 = vmatpush1.bf16.msra.mxu0 %v12649_v25  ;;  %2471 = vmatpush1.bf16.msra.mxu1 %v12652_v26  ;;  %v12727_v26 = vld [vmem:[#allocation5 + $0x740] ss:$144 sps:$4 sm:$0xff]  }
 0x157   :  { %2429 = vmatprep.subr.bf16.mxu0 %v12657_v27  ;;  %2472 = vmatprep.subr.bf16.mxu1 %v12660_v28  ;;  %v12730_v27 = vld [vmem:[#allocation5 + $0x748] ss:$144 sps:$4 sm:$0xff]  }
 0x15a   :  { %2430 = vmatpush1.bf16.msra.mxu0 %v12655_v29  ;;  %2473 = vmatpush1.bf16.msra.mxu1 %v12658_v30  ;;  %v12735_v30 = vld [vmem:[#allocation5 + $0x624] ss:$144 sps:$4 sm:$0xff]  }
 0x15b   :  { %2431 = vmatprep.subr.bf16.mxu0 %v12663_v31  ;;  %2474 = vmatprep.subr.bf16.mxu1 %v12666_v32  ;;  %v12738_v31 = vld [vmem:[#allocation5 + $0x62c] ss:$144 sps:$4 sm:$0xff]  }
 0x15e   :  { %2432 = vmatpush1.bf16.msra.mxu0 %v12661_v33  ;;  %2475 = vmatpush1.bf16.msra.mxu1 %v12664_v34 }
 0x15f   :  { %2433 = vmatprep.subr.bf16.mxu0 %v12669_v36  ;;  %2476 = vmatprep.subr.bf16.mxu1 %v12672_v37  ;;  %v12733_v37 = vld [vmem:[#allocation5 + $0x620] ss:$144 sps:$4 sm:$0xff]  }
 0x162   :  { %2434 = vmatpush1.bf16.msra.mxu0 %v12667_v38  ;;  %2477 = vmatpush1.bf16.msra.mxu1 %v12670_v39  ;;  %v12736_v38 = vld [vmem:[#allocation5 + $0x628] ss:$144 sps:$4 sm:$0xff]   ;;  %v12741_v39 = vld [vmem:[#allocation5 + $0x504] ss:$144 sps:$4 sm:$0xff]  }
 0x163   :  { %2505 = vmatprep.subr.bf16.mxu0 %v12675_v40  ;;  %2548 = vmatprep.subr.bf16.mxu1 %v12678_v41  ;;  %v12744_v40 = vld [vmem:[#allocation5 + $0x50c] ss:$144 sps:$4 sm:$0xff]   ;;  %v12739_v41 = vld [vmem:[#allocation5 + $0x500] ss:$144 sps:$4 sm:$0xff]  }
 0x165   :  { %v1980_v46 = vpop.f32.mrf.mxu1  ;;  %2452 = vmatmul.mubr.bf16.vlgmr.msra.gmra.mxu0 %v14305_v12  ;;  %2495 = vmatmul.mubr.bf16.vlgmr.msra.gmra.mxu1 %v14305_v12  ;;  %v14319_v6 = vpop.f32.mrf.mxu0 }
 0x166   :  { %2506 = vmatpush1.bf16.msra.mxu0 %v12673_v42  ;;  %2549 = vmatpush1.bf16.msra.mxu1 %v12676_v43  ;;  %v12742_v42 = vld [vmem:[#allocation5 + $0x508] ss:$144 sps:$4 sm:$0xff]   ;;  %v12747_v43 = vld [vmem:[#allocation5 + $0x3e4] ss:$144 sps:$4 sm:$0xff]  }
 0x167   :  { %v14313_v49 = vpop.f32.mrf.mxu1  ;;  %2507 = vmatprep.subr.bf16.mxu0 %v12681_v44  ;;  %2550 = vmatprep.subr.bf16.mxu1 %v12684_v45  ;;  %v14321_v11 = vpop.f32.mrf.mxu0  ;;  %v12745_v44 = vld [vmem:[#allocation5 + $0x3e0] ss:$144 sps:$4 sm:$0xff]   ;;  %v12748_v45 = vld [vmem:[#allocation5 + $0x3e8] ss:$144 sps:$4 sm:$0xff]  }
 0x168   :  { %2537 = vmatprep.mubr.bf16.mxu0 %v14184_v0  ;;  %2580 = vmatprep.mubr.bf16.mxu1 %v14184_v0 }
 0x169   :  { %v1984_v51 = vpop.f32.mrf.mxu1  ;;  %v14323_v17 = vpop.f32.mrf.mxu0 }
 0x16a   :  { %v14317_v53 = vpack.c.bf16 %v1984_v51, %v1980_v46  ;;  %2508 = vmatpush1.bf16.msra.mxu0 %v12679_v47  ;;  %2551 = vmatpush1.bf16.msra.mxu1 %v12682_v48  ;;  %v12753_v46 = vld [vmem:[#allocation5 + $0x2c4] ss:$144 sps:$4 sm:$0xff]   ;;  %v12756_v47 = vld [vmem:[#allocation5 + $0x2cc] ss:$144 sps:$4 sm:$0xff]   ;;  %v12751_v48 = vld [vmem:[#allocation5 + $0x2c0] ss:$144 sps:$4 sm:$0xff]  }
 0x16b   :  { %2509 = vmatprep.subr.bf16.mxu0 %v12687_v50  ;;  %2552 = vmatprep.subr.bf16.mxu1 %v12690_v35  ;;  %v14325_v22 = vpop.f32.mrf.mxu0  ;;  %v14327_v23 = vpop.f32.mrf.mxu1  ;;  %v12754_v50 = vld [vmem:[#allocation5 + $0x2c8] ss:$144 sps:$4 sm:$0xff]   ;;  %v12759_v35 = vld [vmem:[#allocation5 + $0x1a4] ss:$144 sps:$4 sm:$0xff]   ;;  %v12762_v51 = vld [vmem:[#allocation5 + $0x1ac] ss:$144 sps:$4 sm:$0xff]  }
 0x16e   :  { %2510 = vmatpush1.bf16.msra.mxu0 %v12685_v52  ;;  %2553 = vmatpush1.bf16.msra.mxu1 %v12688_v54  ;;  %v12757_v52 = vld [vmem:[#allocation5 + $0x1a0] ss:$144 sps:$4 sm:$0xff]   ;;  %v12760_v54 = vld [vmem:[#allocation5 + $0x1a8] ss:$144 sps:$4 sm:$0xff]  }
 0x16f   :  { %2511 = vmatprep.subr.bf16.mxu0 %v12693_v55  ;;  %2554 = vmatprep.subr.bf16.mxu1 %v12696_v56  ;;  %v12765_v55 = vld [vmem:[#allocation5 + $0x84] ss:$144 sps:$4 sm:$0xff]   ;;  %v12768_v56 = vld [vmem:[#allocation5 + $0x8c] ss:$144 sps:$4 sm:$0xff]  }
 0x172   :  { %2512 = vmatpush1.bf16.msra.mxu0 %v12691_v57  ;;  %2555 = vmatpush1.bf16.msra.mxu1 %v12694_v58  ;;  %v12763_v57 = vld [vmem:[#allocation5 + $0x80] ss:$144 sps:$4 sm:$0xff]   ;;  %v12766_v58 = vld [vmem:[#allocation5 + $0x88] ss:$144 sps:$4 sm:$0xff]  }
 0x173   :  { %2513 = vmatprep.subr.bf16.mxu0 %v12699_v59  ;;  %2556 = vmatprep.subr.bf16.mxu1 %v12702_v60  ;;  %v3913_v59 = vld [vmem:[#allocation10 + $0x170] sm:$0xff]  ;;  %v3914_v60 = vld [vmem:[#allocation10 + $0x178] sm:$0xff] }
 0x176   :  { %2514 = vmatpush1.bf16.msra.mxu0 %v12697_v61  ;;  %2557 = vmatpush1.bf16.msra.mxu1 %v12700_v62  ;;  %v3912_v61 = vld [vmem:[#allocation10 + $0x168] sm:$0xff]  ;;  %v3910_v62 = vld [vmem:[#allocation10 + $0x158] sm:$0xff] }
 0x177   :  { %2515 = vmatprep.subr.bf16.mxu0 %v12705_v63  ;;  %2558 = vmatprep.subr.bf16.mxu1 %v12708_v1  ;;  %v3911_v63 = vld [vmem:[#allocation10 + $0x160] sm:$0xff] }
 0x17a   :  { %2516 = vmatpush1.bf16.msra.mxu0 %v12703_v2  ;;  %2559 = vmatpush1.bf16.msra.mxu1 %v12706_v3  ;;  %v3909_v3 = vld [vmem:[#allocation10 + $0x150] sm:$0xff] }
 0x17b   :  { %2517 = vmatprep.subr.bf16.mxu0 %v12711_v4  ;;  %2560 = vmatprep.subr.bf16.mxu1 %v12714_v5 }
 0x17e   :  { %2518 = vmatpush1.bf16.msra.mxu0 %v12709_v7  ;;  %2561 = vmatpush1.bf16.msra.mxu1 %v12712_v8  ;;  %v3907_v7 = vld [vmem:[#allocation10 + $0x140] sm:$0xff]  ;;  %v3908_v8 = vld [vmem:[#allocation10 + $0x148] sm:$0xff] }
 0x17f   :  { %2519 = vmatprep.subr.bf16.mxu0 %v12717_v9  ;;  %2562 = vmatprep.subr.bf16.mxu1 %v12720_v10  ;;  %v3906_v9 = vld [vmem:[#allocation10 + $0x138] sm:$0xff]  ;;  %v3904_v10 = vld [vmem:[#allocation10 + $0x128] sm:$0xff] }
 0x182   :  { %2520 = vmatpush1.bf16.msra.mxu0 %v12715_v13  ;;  %2563 = vmatpush1.bf16.msra.mxu1 %v12718_v14  ;;  %v3905_v13 = vld [vmem:[#allocation10 + $0x130] sm:$0xff] }
 0x183   :  { %2591 = vmatprep.subr.bf16.mxu0 %v12723_v15  ;;  %2634 = vmatprep.subr.bf16.mxu1 %v12726_v16  ;;  %v3903_v16 = vld [vmem:[#allocation10 + $0x120] sm:$0xff] }
 0x185   :  { %v2023_v24 = vpop.f32.mrf.mxu0  ;;  %v2066_v25 = vpop.f32.mrf.mxu1  ;;  %2538 = vmatmul.mubr.bf16.vlgmr.msra.gmra.mxu0 %v14305_v12  ;;  %2581 = vmatmul.mubr.bf16.vlgmr.msra.gmra.mxu1 %v14305_v12 }
 0x186   :  { %2592 = vmatpush1.bf16.msra.mxu0 %v12721_v18  ;;  %2635 = vmatpush1.bf16.msra.mxu1 %v12724_v19  ;;  %v3901_v18 = vld [vmem:[#allocation10 + $0x110] sm:$0xff]  ;;  %v3902_v19 = vld [vmem:[#allocation10 + $0x118] sm:$0xff] }
 0x187   :  { %v14331_v28 = vpop.f32.mrf.mxu0  ;;  %v14333_v29 = vpop.f32.mrf.mxu1  ;;  %2593 = vmatprep.subr.bf16.mxu0 %v12729_v20  ;;  %2636 = vmatprep.subr.bf16.mxu1 %v12732_v21 }
 0x188   :  { %2623 = vmatprep.mubr.bf16.mxu0 %v14184_v0  ;;  %2666 = vmatprep.mubr.bf16.mxu1 %v14184_v0  ;;  %v12750_v0 = vld [vmem:[#allocation5 + $0x3ec] ss:$144 sps:$4 sm:$0xff]  }
 0x189   :  { %v2027_v32 = vpop.f32.mrf.mxu0  ;;  %v2070_v33 = vpop.f32.mrf.mxu1 }
 0x18a   :  { %v14337_v34 = vpack.c.bf16 %v2027_v32, %v2023_v24  ;;  %v14339_v36 = vpack.c.bf16 %v2070_v33, %v2066_v25  ;;  %2594 = vmatpush1.bf16.msra.mxu0 %v12727_v26  ;;  %2637 = vmatpush1.bf16.msra.mxu1 %v12730_v27  ;;  %v3900_v25 = vld [vmem:[#allocation10 + $0x108] sm:$0xff]  ;;  %v3898_v26 = vld [vmem:[#allocation10 + $0xf8] sm:$0xff]  ;;  %v3899_v27 = vld [vmem:[#allocation10 + $0x100] sm:$0xff] }
 0x18b   :  { %2595 = vmatprep.subr.bf16.mxu0 %v12735_v30  ;;  %2638 = vmatprep.subr.bf16.mxu1 %v12738_v31  ;;  %v14341_v1 = vpop.f32.mrf.mxu0  ;;  %v14343_v2 = vpop.f32.mrf.mxu1  ;;  %v3897_v30 = vld [vmem:[#allocation10 + $0xf0] sm:$0xff]  ;;  %v3895_v31 = vld [vmem:[#allocation10 + $0xe0] sm:$0xff]  ;;  %v3896_v32 = vld [vmem:[#allocation10 + $0xe8] sm:$0xff] }
 0x18c   :  { %v3894_v33 = vld [vmem:[#allocation10 + $0xd8] sm:$0xff] }
 0x18e   :  { %2596 = vmatpush1.bf16.msra.mxu0 %v12733_v37  ;;  %2639 = vmatpush1.bf16.msra.mxu1 %v12736_v38  ;;  %v3892_v37 = vld [vmem:[#allocation10 + $0xc8] sm:$0xff]  ;;  %v3893_v38 = vld [vmem:[#allocation10 + $0xd0] sm:$0xff] }
 0x18f   :  { %2597 = vmatprep.subr.bf16.mxu0 %v12741_v39  ;;  %2640 = vmatprep.subr.bf16.mxu1 %v12744_v40  ;;  %v3891_v39 = vld [vmem:[#allocation10 + $0xc0] sm:$0xff]  ;;  %v3889_v40 = vld [vmem:[#allocation10 + $0xb0] sm:$0xff] }
 0x192   :  { %2598 = vmatpush1.bf16.msra.mxu0 %v12739_v41  ;;  %2641 = vmatpush1.bf16.msra.mxu1 %v12742_v42  ;;  %v3890_v41 = vld [vmem:[#allocation10 + $0xb8] sm:$0xff]  ;;  %v3888_v42 = vld [vmem:[#allocation10 + $0xa8] sm:$0xff] }
 0x193   :  { %2599 = vmatprep.subr.bf16.mxu0 %v12747_v43  ;;  %2642 = vmatprep.subr.bf16.mxu1 %v12750_v0  ;;  %v3886_v43 = vld [vmem:[#allocation10 + $0x98] sm:$0xff]  ;;  %v3887_v0 = vld [vmem:[#allocation10 + $0xa0] sm:$0xff] }
 0x196   :  { %2600 = vmatpush1.bf16.msra.mxu0 %v12745_v44  ;;  %2643 = vmatpush1.bf16.msra.mxu1 %v12748_v45  ;;  %v3885_v44 = vld [vmem:[#allocation10 + $0x90] sm:$0xff]  ;;  %v3883_v45 = vld [vmem:[#allocation10 + $0x80] sm:$0xff] }
 0x197   :  { %2601 = vmatprep.subr.bf16.mxu0 %v12753_v46  ;;  %2644 = vmatprep.subr.bf16.mxu1 %v12756_v47  ;;  %v3884_v46 = vld [vmem:[#allocation10 + $0x88] sm:$0xff]  ;;  %v3882_v47 = vld [vmem:[#allocation10 + $0x78] sm:$0xff] }
 0x19a   :  { %2602 = vmatpush1.bf16.msra.mxu0 %v12751_v48  ;;  %2645 = vmatpush1.bf16.msra.mxu1 %v12754_v50  ;;  %v3880_v48 = vld [vmem:[#allocation10 + $0x68] sm:$0xff]  ;;  %v3881_v50 = vld [vmem:[#allocation10 + $0x70] sm:$0xff] }
 0x19b   :  { %2603 = vmatprep.subr.bf16.mxu0 %v12759_v35  ;;  %2646 = vmatprep.subr.bf16.mxu1 %v12762_v51  ;;  %v3879_v35 = vld [vmem:[#allocation10 + $0x60] sm:$0xff]  ;;  %v3877_v51 = vld [vmem:[#allocation10 + $0x50] sm:$0xff] }
 0x19e   :  { %2604 = vmatpush1.bf16.msra.mxu0 %v12757_v52  ;;  %2647 = vmatpush1.bf16.msra.mxu1 %v12760_v54  ;;  %v3878_v52 = vld [vmem:[#allocation10 + $0x58] sm:$0xff]  ;;  %v3876_v54 = vld [vmem:[#allocation10 + $0x48] sm:$0xff] }
 0x19f   :  { %2605 = vmatprep.subr.bf16.mxu0 %v12765_v55  ;;  %2648 = vmatprep.subr.bf16.mxu1 %v12768_v56  ;;  %v3874_v55 = vld [vmem:[#allocation10 + $0x38] sm:$0xff]  ;;  %v3875_v56 = vld [vmem:[#allocation10 + $0x40] sm:$0xff] }
 0x1a2   :  { %2606 = vmatpush1.bf16.msra.mxu0 %v12763_v57  ;;  %2649 = vmatpush1.bf16.msra.mxu1 %v12766_v58  ;;  %v3873_v57 = vld [vmem:[#allocation10 + $0x30] sm:$0xff]  ;;  %v3871_v58 = vld [vmem:[#allocation10 + $0x20] sm:$0xff] }
 0x1a3   :  { %3915 = vmatprep.subr.mxu0 %v3913_v59  ;;  %12208 = vmatprep.subr.mxu1 %v3914_v60  ;;  %v3872_v59 = vld [vmem:[#allocation10 + $0x28] sm:$0xff] }
 0x1a5   :  { %v2109_v4 = vpop.f32.mrf.mxu0  ;;  %v2152_v5 = vpop.f32.mrf.mxu1  ;;  %2624 = vmatmul.mubr.bf16.vlgmr.msra.gmra.mxu0 %v14305_v12  ;;  %2667 = vmatmul.mubr.bf16.vlgmr.msra.gmra.mxu1 %v14305_v12 }
 0x1a6   :  { %3916 = vmatpush1.msra.mxu0 %v3912_v61  ;;  %12209 = vmatpush3.msra.mxu1 %v3914_v60  ;;  %v3870_v60 = vld [vmem:[#allocation10 + $0x18] sm:$0xff]  ;;  %v3868_v61 = vld [vmem:[#allocation10 + $0x8] sm:$0xff] }
 0x1a7   :  { %v14347_v14 = vpop.f32.mrf.mxu0  ;;  %v14349_v15 = vpop.f32.mrf.mxu1  ;;  %3917 = vmatprep.subr.mxu0 %v3910_v62  ;;  %12210 = vmatprep.subr.mxu1 %v3911_v63  ;;  %v3869_v62 = vld [vmem:[#allocation10 + $0x10] sm:$0xff] }
 0x1a8   :  { %3918 = vmatpush1.msra.mxu0 %v3909_v3  ;;  %12211 = vmatpush3.msra.mxu1 %v3911_v63  ;;  %v3867_v63 = vld [vmem:[#allocation10] sm:$0xff]  ;;  %v3865_v3 = vld [vmem:[#allocation7] sm:$0xff] }
 0x1a9   :  { %v2113_v20 = vpop.f32.mrf.mxu0  ;;  %v2156_v12 = vpop.f32.mrf.mxu1  ;;  %3919 = vmatprep.subr.mxu0 %v3907_v7  ;;  %12212 = vmatprep.subr.mxu1 %v3908_v8  ;;  %v12769_v7 = vld [vmem:[#allocation8 + $0xa8] ss:$12 sps:$4 sm:$0xff]  }
 0x1aa   :  { %v14351_v21 = vpack.c.bf16 %v2113_v20, %v2109_v4  ;;  %v14353_v24 = vpack.c.bf16 %v2156_v12, %v2152_v5  ;;  %3920 = vmatpush1.msra.mxu0 %v3906_v9  ;;  %12213 = vmatpush3.msra.mxu1 %v3908_v8  ;;  %v3866_v4 = vld [vmem:[#allocation7 + $0x8] sm:$0xff]  ;;  %v12772_v8 = vld [vmem:[#allocation8 + $0x228] ss:$12 sps:$4 sm:$0xff]  }
 0x1ab   :  { %3921 = vmatprep.subr.mxu0 %v3904_v10  ;;  %12214 = vmatprep.subr.mxu1 %v3905_v13  ;;  %v12771_v5 = vld [vmem:[#allocation8 + $0xac] ss:$12 sps:$4 sm:$0xff]   ;;  %v14355_v10 = vpop.f32.mrf.mxu0  ;;  %v12775_v12 = vld [vmem:[#allocation8 + $0x90] ss:$12 sps:$4 sm:$0xff]  }
 0x1ac   :  { %3922 = vmatpush1.msra.mxu0 %v3903_v16  ;;  %12215 = vmatpush3.msra.mxu1 %v3905_v13  ;;  %v12774_v9 = vld [vmem:[#allocation8 + $0x22c] ss:$12 sps:$4 sm:$0xff]   ;;  %v14357_v13 = vpop.f32.mrf.mxu1  ;;  %v14185_v16 = vmov 0.0  }
 0x1ad   :  { %3923 = vmatprep.subr.mxu0 %v3901_v18  ;;  %12216 = vmatprep.subr.mxu1 %v3902_v19  ;;  %v12777_v18 = vld [vmem:[#allocation8 + $0x94] ss:$12 sps:$4 sm:$0xff]  }
 0x1ae   :  { %3924 = vmatpush1.msra.mxu0 %v3900_v25  ;;  %12217 = vmatpush3.msra.mxu1 %v3902_v19  ;;  %v12778_v25 = vld [vmem:[#allocation8 + $0x210] ss:$12 sps:$4 sm:$0xff]  }
 0x1af   :  { %3925 = vmatprep.subr.mxu0 %v3898_v26  ;;  %12218 = vmatprep.subr.mxu1 %v3899_v27  ;;  %v12780_v26 = vld [vmem:[#allocation8 + $0x214] ss:$12 sps:$4 sm:$0xff]  }
 0x1b0   :  { %3926 = vmatpush1.msra.mxu0 %v3897_v30  ;;  %12219 = vmatpush3.msra.mxu1 %v3899_v27  ;;  %v14361_v27 = vpack.c.bf16 %v14327_v23, %v14313_v49 }
 0x1b1   :  { %3927 = vmatprep.subr.mxu0 %v3895_v31  ;;  %12220 = vmatprep.subr.mxu1 %v3896_v32 }
 0x1b2   :  { %3928 = vmatpush1.msra.mxu0 %v3894_v33  ;;  %12221 = vmatpush3.msra.mxu1 %v3896_v32  ;;  %v12783_v32 = vld [vmem:[#allocation8 + $0x7c] ss:$12 sps:$4 sm:$0xff]  }
 0x1b3   :  { %3929 = vmatprep.subr.mxu0 %v3892_v37  ;;  %12222 = vmatprep.subr.mxu1 %v3893_v38  ;;  %v12786_v33 = vld [vmem:[#allocation8 + $0x1fc] ss:$12 sps:$4 sm:$0xff]   ;;  %v14369_v37 = vpack.c.bf16 %v14325_v22, %v14321_v11  ;;  %v12789_v11 = vld [vmem:[#allocation8 + $0x64] ss:$12 sps:$4 sm:$0xff]  }
 0x1b4   :  { %3930 = vmatpush1.msra.mxu0 %v3891_v39  ;;  %12223 = vmatpush3.msra.mxu1 %v3893_v38  ;;  %v12792_v22 = vld [vmem:[#allocation8 + $0x1e4] ss:$12 sps:$4 sm:$0xff]  }
 0x1b5   :  { %3931 = vmatprep.subr.mxu0 %v3889_v40  ;;  %12224 = vmatprep.subr.mxu1 %v3890_v41  ;;  %v12781_v40 = vld [vmem:[#allocation8 + $0x78] ss:$12 sps:$4 sm:$0xff]  }
 0x1b6   :  { %3932 = vmatpush1.msra.mxu0 %v3888_v42  ;;  %12225 = vmatpush3.msra.mxu1 %v3890_v41  ;;  %v12784_v41 = vld [vmem:[#allocation8 + $0x1f8] ss:$12 sps:$4 sm:$0xff]   ;;  %v12787_v42 = vld [vmem:[#allocation8 + $0x60] ss:$12 sps:$4 sm:$0xff]  }
 0x1b7   :  { %3933 = vmatprep.subr.mxu0 %v3886_v43  ;;  %12226 = vmatprep.subr.mxu1 %v3887_v0  ;;  %v12790_v43 = vld [vmem:[#allocation8 + $0x1e0] ss:$12 sps:$4 sm:$0xff]  }
 0x1b8   :  { %3934 = vmatpush1.msra.mxu0 %v3885_v44  ;;  %12227 = vmatpush3.msra.mxu1 %v3887_v0  ;;  %v12795_v0 = vld [vmem:[#allocation8 + $0x4c] ss:$12 sps:$4 sm:$0xff]  }
 0x1b9   :  { %3935 = vmatprep.subr.mxu0 %v3883_v45  ;;  %12228 = vmatprep.subr.mxu1 %v3884_v46  ;;  %v12798_v44 = vld [vmem:[#allocation8 + $0x1cc] ss:$12 sps:$4 sm:$0xff]   ;;  %v12793_v45 = vld [vmem:[#allocation8 + $0x48] ss:$12 sps:$4 sm:$0xff]  }
 0x1ba   :  { %3936 = vmatpush1.msra.mxu0 %v3882_v47  ;;  %12229 = vmatpush3.msra.mxu1 %v3884_v46  ;;  %v12796_v46 = vld [vmem:[#allocation8 + $0x1c8] ss:$12 sps:$4 sm:$0xff]  }
 0x1bb   :  { %3937 = vmatprep.subr.mxu0 %v3880_v48  ;;  %12230 = vmatprep.subr.mxu1 %v3881_v50  ;;  %v12801_v47 = vld [vmem:[#allocation8 + $0x34] ss:$12 sps:$4 sm:$0xff]  }
 0x1bc   :  { %3938 = vmatpush1.msra.mxu0 %v3879_v35  ;;  %12231 = vmatpush3.msra.mxu1 %v3881_v50  ;;  %v12804_v48 = vld [vmem:[#allocation8 + $0x1b4] ss:$12 sps:$4 sm:$0xff]   ;;  %v12799_v50 = vld [vmem:[#allocation8 + $0x30] ss:$12 sps:$4 sm:$0xff]  }
 0x1bd   :  { %3939 = vmatprep.subr.mxu0 %v3877_v51  ;;  %12232 = vmatprep.subr.mxu1 %v3878_v52  ;;  %v12802_v35 = vld [vmem:[#allocation8 + $0x1b0] ss:$12 sps:$4 sm:$0xff]  }
 0x1be   :  { %3940 = vmatpush1.msra.mxu0 %v3876_v54  ;;  %12233 = vmatpush3.msra.mxu1 %v3878_v52  ;;  %v12807_v51 = vld [vmem:[#allocation8 + $0x1c] ss:$12 sps:$4 sm:$0xff]   ;;  %v12805_v54 = vld [vmem:[#allocation8 + $0x18] ss:$12 sps:$4 sm:$0xff]  }
 0x1bf   :  { %3941 = vmatprep.subr.mxu0 %v3874_v55  ;;  %12234 = vmatprep.subr.mxu1 %v3875_v56  ;;  %v12810_v52 = vld [vmem:[#allocation8 + $0x19c] ss:$12 sps:$4 sm:$0xff]   ;;  %v12808_v55 = vld [vmem:[#allocation8 + $0x198] ss:$12 sps:$4 sm:$0xff]  }
 0x1c0   :  { %3942 = vmatpush1.msra.mxu0 %v3873_v57  ;;  %12235 = vmatpush3.msra.mxu1 %v3875_v56  ;;  %v12813_v56 = vld [vmem:[#allocation8 + $0x4] ss:$12 sps:$4 sm:$0xff]  }
 0x1c1   :  { %3943 = vmatprep.subr.mxu0 %v3871_v58  ;;  %12236 = vmatprep.subr.mxu1 %v3872_v59  ;;  %v12816_v57 = vld [vmem:[#allocation8 + $0x184] ss:$12 sps:$4 sm:$0xff]   ;;  %v12811_v58 = vld [vmem:[#allocation8] ss:$12 sps:$4 sm:$0xff]  }
 0x1c2   :  { %3944 = vmatpush1.msra.mxu0 %v3870_v60  ;;  %12237 = vmatpush3.msra.mxu1 %v3872_v59  ;;  %v12814_v59 = vld [vmem:[#allocation8 + $0x180] ss:$12 sps:$4 sm:$0xff]  }
 0x1c3   :  { %3945 = vmatprep.subr.mxu0 %v3868_v61  ;;  %12238 = vmatprep.subr.mxu1 %v3869_v62  ;;  %v12819_v60 = vld [vmem:[#allocation8 + $0x16c] ss:$12 sps:$4 sm:$0xff]  }
 0x1c4   :  { %3946 = vmatpush1.msra.mxu0 %v3867_v63  ;;  %3979 = vmatprep.mubr.f32.mxu0 %v14185_v16  ;;  %v12822_v61 = vld [vmem:[#allocation8 + $0x2ec] ss:$12 sps:$4 sm:$0xff]   ;;  %v12820_v63 = vld [vmem:[#allocation8 + $0x2e8] ss:$12 sps:$4 sm:$0xff]  }
 0x1c5   :  { %12239 = vmatpush3.msra.mxu1 %v3869_v62  ;;  %12240 = vmatprep.mubr.f32.mxu1 %v3865_v3  ;;  %v2195_v19 = vpop.f32.mrf.mxu0  ;;  %v2238_v20 = vpop.f32.mrf.mxu1  ;;  %v12817_v62 = vld [vmem:[#allocation8 + $0x168] ss:$12 sps:$4 sm:$0xff]  }
 0x1c6   :  { %3980 = vmatmul.mubr.f32.vlgmr.msra.gmra.mxu0 %v3865_v3  ;;  %12241 = vmatmul.mubr.f32.vlgmr.msra.gmra.mxu1 %v3866_v4 }
 0x1c7   :  { %8675 = vmatprep.subr.bf16.mxu0 %v12771_v5  ;;  %8718 = vmatprep.subr.bf16.mxu1 %v12774_v9  ;;  %v14363_v30 = vpop.f32.mrf.mxu0  ;;  %v14365_v31 = vpop.f32.mrf.mxu1  ;;  %v12828_v9 = vld [vmem:[#allocation8 + $0x2d4] ss:$12 sps:$4 sm:$0xff]  }
 0x1c8   :  { %8676 = vmatpush1.bf16.msra.mxu0 %v12769_v7  ;;  %8719 = vmatpush1.bf16.msra.mxu1 %v12772_v8  ;;  %v12825_v8 = vld [vmem:[#allocation8 + $0x154] ss:$12 sps:$4 sm:$0xff]  }
 0x1c9   :  { %8750 = vmatprep.mubr.bf16.mxu1 %v14361_v27  ;;  %3985 = vmatprep.mubr.f32.mxu0 %v14185_v16  ;;  %v2199_v38 = vpop.f32.mrf.mxu0  ;;  %v2242_v49 = vpop.f32.mrf.mxu1  ;;  %v12823_v16 = vld [vmem:[#allocation8 + $0x150] ss:$12 sps:$4 sm:$0xff]  }
 0x1ca   :  { %v14372_v23 = vpack.c.bf16 %v2199_v38, %v2195_v19  ;;  %v14374_v39 = vpack.c.bf16 %v2242_v49, %v2238_v20  ;;  %3986 = vmatmul.mubr.f32.gmra.mxu0 %v3866_v4  ;;  %8677 = vmatprep.subr.bf16.mxu0 %v12777_v18  ;;  %v12826_v18 = vld [vmem:[#allocation8 + $0x2d0] ss:$12 sps:$4 sm:$0xff]   ;;  %v12829_v49 = vld [vmem:[#allocation8 + $0x138] ss:$12 sps:$4 sm:$0xff]  }
 0x1cb   :  { %8720 = vmatprep.subr.bf16.mxu1 %v12780_v26  ;;  %8707 = vmatprep.mubr.bf16.mxu0 %v14369_v37  ;;  %v14377_v3 = vpop.f32.mrf.mxu0  ;;  %v14379_v4 = vpop.f32.mrf.mxu1 }
 0x1cc   :  { %8678 = vmatpush1.bf16.msra.mxu0 %v12775_v12  ;;  %8721 = vmatpush1.bf16.msra.mxu1 %v12778_v25  ;;  %v12831_v12 = vld [vmem:[#allocation8 + $0x13c] ss:$12 sps:$4 sm:$0xff]  }
 0x1cd   :  { %8679 = vmatprep.subr.bf16.mxu0 %v12783_v32  ;;  %8722 = vmatprep.subr.bf16.mxu1 %v12786_v33  ;;  %v12834_v25 = vld [vmem:[#allocation8 + $0x2bc] ss:$12 sps:$4 sm:$0xff]  }
 0x1d0   :  { %8680 = vmatpush1.bf16.msra.mxu0 %v12781_v40  ;;  %8723 = vmatpush1.bf16.msra.mxu1 %v12784_v41  ;;  %v12832_v40 = vld [vmem:[#allocation8 + $0x2b8] ss:$12 sps:$4 sm:$0xff]  }
 0x1d1   :  { %8681 = vmatprep.subr.bf16.mxu0 %v12789_v11  ;;  %8724 = vmatprep.subr.bf16.mxu1 %v12792_v22  ;;  %v12837_v41 = vld [vmem:[#allocation8 + $0x124] ss:$12 sps:$4 sm:$0xff]   ;;  %v12835_v22 = vld [vmem:[#allocation8 + $0x120] ss:$12 sps:$4 sm:$0xff]  }
 0x1d2   :  { %v12840_v11 = vld [vmem:[#allocation8 + $0x2a4] ss:$12 sps:$4 sm:$0xff]  }
 0x1d4   :  { %8682 = vmatpush1.bf16.msra.mxu0 %v12787_v42  ;;  %8725 = vmatpush1.bf16.msra.mxu1 %v12790_v43  ;;  %v12838_v42 = vld [vmem:[#allocation8 + $0x2a0] ss:$12 sps:$4 sm:$0xff]  }
 0x1d5   :  { %8683 = vmatprep.subr.bf16.mxu0 %v12795_v0  ;;  %8726 = vmatprep.subr.bf16.mxu1 %v12798_v44  ;;  %v12843_v43 = vld [vmem:[#allocation8 + $0x10c] ss:$12 sps:$4 sm:$0xff]   ;;  %v12841_v44 = vld [vmem:[#allocation8 + $0x108] ss:$12 sps:$4 sm:$0xff]  }
 0x1d6   :  { %v12846_v0 = vld [vmem:[#allocation8 + $0x28c] ss:$12 sps:$4 sm:$0xff]  }
 0x1d8   :  { %8684 = vmatpush1.bf16.msra.mxu0 %v12793_v45  ;;  %8727 = vmatpush1.bf16.msra.mxu1 %v12796_v46  ;;  %v12844_v45 = vld [vmem:[#allocation8 + $0x288] ss:$12 sps:$4 sm:$0xff]  }
 0x1d9   :  { %8685 = vmatprep.subr.bf16.mxu0 %v12801_v47  ;;  %8728 = vmatprep.subr.bf16.mxu1 %v12804_v48  ;;  %v12849_v46 = vld [vmem:[#allocation8 + $0xf4] ss:$12 sps:$4 sm:$0xff]   ;;  %v12847_v48 = vld [vmem:[#allocation8 + $0xf0] ss:$12 sps:$4 sm:$0xff]  }
 0x1da   :  { %v12852_v47 = vld [vmem:[#allocation8 + $0x274] ss:$12 sps:$4 sm:$0xff]  }
 0x1dc   :  { %8686 = vmatpush1.bf16.msra.mxu0 %v12799_v50  ;;  %8729 = vmatpush1.bf16.msra.mxu1 %v12802_v35  ;;  %v12850_v50 = vld [vmem:[#allocation8 + $0x270] ss:$12 sps:$4 sm:$0xff]  }
 0x1dd   :  { %8687 = vmatprep.subr.bf16.mxu0 %v12807_v51  ;;  %8730 = vmatprep.subr.bf16.mxu1 %v12810_v52  ;;  %v12855_v35 = vld [vmem:[#allocation8 + $0xdc] ss:$12 sps:$4 sm:$0xff]   ;;  %v12853_v52 = vld [vmem:[#allocation8 + $0xd8] ss:$12 sps:$4 sm:$0xff]  }
 0x1de   :  { %v12858_v51 = vld [vmem:[#allocation8 + $0x25c] ss:$12 sps:$4 sm:$0xff]  }
 0x1e0   :  { %8688 = vmatpush1.bf16.msra.mxu0 %v12805_v54  ;;  %8731 = vmatpush1.bf16.msra.mxu1 %v12808_v55  ;;  %v12856_v54 = vld [vmem:[#allocation8 + $0x258] ss:$12 sps:$4 sm:$0xff]  }
 0x1e1   :  { %8689 = vmatprep.subr.bf16.mxu0 %v12813_v56  ;;  %8732 = vmatprep.subr.bf16.mxu1 %v12816_v57  ;;  %v12861_v55 = vld [vmem:[#allocation8 + $0xc4] ss:$12 sps:$4 sm:$0xff]   ;;  %v12859_v57 = vld [vmem:[#allocation8 + $0xc0] ss:$12 sps:$4 sm:$0xff]  }
 0x1e2   :  { %v12864_v56 = vld [vmem:[#allocation8 + $0x244] ss:$12 sps:$4 sm:$0xff]  }
 0x1e4   :  { %8690 = vmatpush1.bf16.msra.mxu0 %v12811_v58  ;;  %8733 = vmatpush1.bf16.msra.mxu1 %v12814_v59  ;;  %v12862_v58 = vld [vmem:[#allocation8 + $0x240] ss:$12 sps:$4 sm:$0xff]  }
 0x1e5   :  { %v2281_v5 = vpop.f32.mrf.mxu0  ;;  %v2324_v7 = vpop.f32.mrf.mxu1  ;;  %8691 = vmatprep.subr.bf16.mxu0 %v12819_v60  ;;  %8734 = vmatprep.subr.bf16.mxu1 %v12822_v61  ;;  %v12867_v59 = vld [vmem:[#allocation8 + $0x3ac] ss:$12 sps:$4 sm:$0xff]   ;;  %v12865_v61 = vld [vmem:[#allocation8 + $0x3a8] ss:$12 sps:$4 sm:$0xff]  }
 0x1e6   :  { %v12870_v60 = vld [vmem:[#allocation8 + $0x52c] ss:$12 sps:$4 sm:$0xff]  }
 0x1e7   :  { %v14381_v19 = vpop.f32.mrf.mxu0  ;;  %v14383_v20 = vpop.f32.mrf.mxu1 }
 0x1e8   :  { %8692 = vmatpush2.bf16.msra.mxu0 %v12817_v62  ;;  %8735 = vmatpush2.bf16.msra.mxu1 %v12820_v63 }
 0x1e9   :  { %v2285_v26 = vpop.f32.mrf.mxu0  ;;  %v2328_v32 = vpop.f32.mrf.mxu1  ;;  %8693 = vmatprep.subr.bf16.mxu0 %v12825_v8  ;;  %8736 = vmatprep.subr.bf16.mxu1 %v12828_v9  ;;  %v12876_v8 = vld [vmem:[#allocation8 + $0x514] ss:$12 sps:$4 sm:$0xff]   ;;  %v14395_v9 = vpack.c.bf16 %v14323_v17, %v14319_v6  ;;  %v12871_v17 = vld [vmem:[#allocation8 + $0x390] ss:$12 sps:$4 sm:$0xff]  }
 0x1ea   :  { %v14385_v33 = vpack.c.bf16 %v2285_v26, %v2281_v5  ;;  %v14387_v38 = vpack.c.bf16 %v2328_v32, %v2324_v7  ;;  %v12868_v5 = vld [vmem:[#allocation8 + $0x528] ss:$12 sps:$4 sm:$0xff]   ;;  %v12874_v32 = vld [vmem:[#allocation8 + $0x510] ss:$12 sps:$4 sm:$0xff]  }
 0x1eb   :  { %v14389_v62 = vpop.f32.mrf.mxu0  ;;  %v14391_v63 = vpop.f32.mrf.mxu1  ;;  %v12873_v7 = vld [vmem:[#allocation8 + $0x394] ss:$12 sps:$4 sm:$0xff]  }
 0x1ec   :  { %8694 = vmatpush2.bf16.msra.mxu0 %v12823_v16  ;;  %8737 = vmatpush2.bf16.msra.mxu1 %v12826_v18 }
 0x1ed   :  { %8695 = vmatprep.subr.bf16.mxu0 %v12831_v12  ;;  %8738 = vmatprep.subr.bf16.mxu1 %v12834_v25  ;;  %v14399_v12 = vpack.c.bf16 %v14341_v1, %v14331_v28  ;;  %v14403_v25 = vpack.c.bf16 %v14343_v2, %v14333_v29 }
 0x1f0   :  { %8696 = vmatpush2.bf16.msra.mxu0 %v12829_v49  ;;  %8739 = vmatpush2.bf16.msra.mxu1 %v12832_v40  ;;  %v12879_v49 = vld [vmem:[#allocation8 + $0x37c] ss:$12 sps:$4 sm:$0xff]  }
 0x1f1   :  { %8697 = vmatprep.subr.bf16.mxu0 %v12837_v41  ;;  %8740 = vmatprep.subr.bf16.mxu1 %v12840_v11  ;;  %v12882_v40 = vld [vmem:[#allocation8 + $0x4fc] ss:$12 sps:$4 sm:$0xff]   ;;  %v12877_v41 = vld [vmem:[#allocation8 + $0x378] ss:$12 sps:$4 sm:$0xff]  }
 0x1f2   :  { %v12880_v11 = vld [vmem:[#allocation8 + $0x4f8] ss:$12 sps:$4 sm:$0xff]  }
 0x1f4   :  { %8698 = vmatpush2.bf16.msra.mxu0 %v12835_v22  ;;  %8741 = vmatpush2.bf16.msra.mxu1 %v12838_v42  ;;  %v12885_v22 = vld [vmem:[#allocation8 + $0x364] ss:$12 sps:$4 sm:$0xff]   ;;  %v12883_v42 = vld [vmem:[#allocation8 + $0x360] ss:$12 sps:$4 sm:$0xff]  }
 0x1f5   :  { %8699 = vmatprep.subr.bf16.mxu0 %v12843_v43  ;;  %8742 = vmatprep.subr.bf16.mxu1 %v12846_v0  ;;  %v12888_v43 = vld [vmem:[#allocation8 + $0x4e4] ss:$12 sps:$4 sm:$0xff]   ;;  %v12886_v0 = vld [vmem:[#allocation8 + $0x4e0] ss:$12 sps:$4 sm:$0xff]  }
 0x1f8   :  { %8700 = vmatpush2.bf16.msra.mxu0 %v12841_v44  ;;  %8743 = vmatpush2.bf16.msra.mxu1 %v12844_v45  ;;  %v12891_v44 = vld [vmem:[#allocation8 + $0x34c] ss:$12 sps:$4 sm:$0xff]   ;;  %v12889_v45 = vld [vmem:[#allocation8 + $0x348] ss:$12 sps:$4 sm:$0xff]  }
 0x1f9   :  { %8701 = vmatprep.subr.bf16.mxu0 %v12849_v46  ;;  %8744 = vmatprep.subr.bf16.mxu1 %v12852_v47  ;;  %v12894_v46 = vld [vmem:[#allocation8 + $0x4cc] ss:$12 sps:$4 sm:$0xff]   ;;  %v12892_v47 = vld [vmem:[#allocation8 + $0x4c8] ss:$12 sps:$4 sm:$0xff]  }
 0x1fc   :  { %8702 = vmatpush2.bf16.msra.mxu0 %v12847_v48  ;;  %8745 = vmatpush2.bf16.msra.mxu1 %v12850_v50  ;;  %v12897_v48 = vld [vmem:[#allocation8 + $0x334] ss:$12 sps:$4 sm:$0xff]   ;;  %v12895_v50 = vld [vmem:[#allocation8 + $0x330] ss:$12 sps:$4 sm:$0xff]  }
 0x1fd   :  { %8703 = vmatprep.subr.bf16.mxu0 %v12855_v35  ;;  %8746 = vmatprep.subr.bf16.mxu1 %v12858_v51  ;;  %v12900_v35 = vld [vmem:[#allocation8 + $0x4b4] ss:$12 sps:$4 sm:$0xff]   ;;  %v12898_v51 = vld [vmem:[#allocation8 + $0x4b0] ss:$12 sps:$4 sm:$0xff]  }
 0x200   :  { %8704 = vmatpush2.bf16.msra.mxu0 %v12853_v52  ;;  %8747 = vmatpush2.bf16.msra.mxu1 %v12856_v54  ;;  %v12903_v52 = vld [vmem:[#allocation8 + $0x31c] ss:$12 sps:$4 sm:$0xff]   ;;  %v12901_v54 = vld [vmem:[#allocation8 + $0x318] ss:$12 sps:$4 sm:$0xff]  }
 0x201   :  { %8705 = vmatprep.subr.bf16.mxu0 %v12861_v55  ;;  %8748 = vmatprep.subr.bf16.mxu1 %v12864_v56  ;;  %v12906_v55 = vld [vmem:[#allocation8 + $0x49c] ss:$12 sps:$4 sm:$0xff]   ;;  %v12904_v56 = vld [vmem:[#allocation8 + $0x498] ss:$12 sps:$4 sm:$0xff]  }
 0x204   :  { %8706 = vmatpush2.bf16.msra.mxu0 %v12859_v57  ;;  %8749 = vmatpush2.bf16.msra.mxu1 %v12862_v58  ;;  %v12909_v57 = vld [vmem:[#allocation8 + $0x304] ss:$12 sps:$4 sm:$0xff]   ;;  %v12907_v58 = vld [vmem:[#allocation8 + $0x300] ss:$12 sps:$4 sm:$0xff]  }
 0x205   :  { %v2367_v16 = vpop.f32.mrf.mxu0  ;;  %v2410_v18 = vpop.f32.mrf.mxu1  ;;  %8761 = vmatprep.subr.bf16.mxu0 %v12867_v59  ;;  %8804 = vmatprep.subr.bf16.mxu1 %v12870_v60  ;;  %v12912_v59 = vld [vmem:[#allocation8 + $0x484] ss:$12 sps:$4 sm:$0xff]   ;;  %v12910_v60 = vld [vmem:[#allocation8 + $0x480] ss:$12 sps:$4 sm:$0xff]  }
 0x207   :  { %8708 = vmatmul.mubr.bf16.vlgmr.msra.gmra.mxu0 %v14395_v9  ;;  %8751 = vmatmul.mubr.bf16.vlgmr.msra.gmra.mxu1 %v14317_v53  ;;  %v14407_v26 = vpop.f32.mrf.mxu0  ;;  %v14409_v6 = vpop.f32.mrf.mxu1 }
 0x208   :  { %8762 = vmatpush1.bf16.msra.mxu0 %v12865_v61  ;;  %8793 = vmatprep.mubr.bf16.mxu0 %v14399_v12  ;;  %v12915_v61 = vld [vmem:[#allocation8 + $0x46c] ss:$12 sps:$4 sm:$0xff]  }
 0x209   :  { %8805 = vmatpush1.bf16.msra.mxu1 %v12868_v5  ;;  %8836 = vmatprep.mubr.bf16.mxu1 %v14403_v25  ;;  %v2371_v28 = vpop.f32.mrf.mxu0  ;;  %v2414_v29 = vpop.f32.mrf.mxu1  ;;  %v12913_v5 = vld [vmem:[#allocation8 + $0x468] ss:$12 sps:$4 sm:$0xff]  }
 0x20a   :  { %v14413_v1 = vpack.c.bf16 %v2371_v28, %v2367_v16  ;;  %v14415_v2 = vpack.c.bf16 %v2414_v29, %v2410_v18  ;;  %8763 = vmatprep.subr.bf16.mxu0 %v12873_v7  ;;  %8806 = vmatprep.subr.bf16.mxu1 %v12876_v8  ;;  %v12918_v7 = vld [vmem:[#allocation8 + $0x5ec] ss:$12 sps:$4 sm:$0xff]   ;;  %v12919_v28 = vld [vmem:[#allocation8 + $0x450] ss:$12 sps:$4 sm:$0xff]   ;;  %v12924_v29 = vld [vmem:[#allocation8 + $0x5d4] ss:$12 sps:$4 sm:$0xff]  }
 0x20b   :  { %v14417_v8 = vpop.f32.mrf.mxu0  ;;  %v14419_v16 = vpop.f32.mrf.mxu1 }
 0x20c   :  { %8764 = vmatpush1.bf16.msra.mxu0 %v12871_v17 }
 0x20d   :  { %8807 = vmatpush1.bf16.msra.mxu1 %v12874_v32  ;;  %8765 = vmatprep.subr.bf16.mxu0 %v12879_v49  ;;  %v12916_v32 = vld [vmem:[#allocation8 + $0x5e8] ss:$12 sps:$4 sm:$0xff]  }
 0x20e   :  { %8808 = vmatprep.subr.bf16.mxu1 %v12882_v40  ;;  %v12921_v49 = vld [vmem:[#allocation8 + $0x454] ss:$12 sps:$4 sm:$0xff]  }
 0x210   :  { %8766 = vmatpush1.bf16.msra.mxu0 %v12877_v41 }
 0x211   :  { %8809 = vmatpush1.bf16.msra.mxu1 %v12880_v11  ;;  %8767 = vmatprep.subr.bf16.mxu0 %v12885_v22 }
 0x212   :  { %8810 = vmatprep.subr.bf16.mxu1 %v12888_v43  ;;  %v12927_v43 = vld [vmem:[#allocation8 + $0x43c] ss:$12 sps:$4 sm:$0xff]  }
 0x214   :  { %8768 = vmatpush1.bf16.msra.mxu0 %v12883_v42  ;;  %v12922_v42 = vld [vmem:[#allocation8 + $0x5d0] ss:$12 sps:$4 sm:$0xff]  }
 0x215   :  { %8811 = vmatpush1.bf16.msra.mxu1 %v12886_v0  ;;  %8769 = vmatprep.subr.bf16.mxu0 %v12891_v44 }
 0x216   :  { %8812 = vmatprep.subr.bf16.mxu1 %v12894_v46  ;;  %v12930_v46 = vld [vmem:[#allocation8 + $0x5bc] ss:$12 sps:$4 sm:$0xff]  }
 0x218   :  { %8770 = vmatpush1.bf16.msra.mxu0 %v12889_v45  ;;  %v12925_v45 = vld [vmem:[#allocation8 + $0x438] ss:$12 sps:$4 sm:$0xff]  }
 0x219   :  { %8813 = vmatpush1.bf16.msra.mxu1 %v12892_v47  ;;  %8771 = vmatprep.subr.bf16.mxu0 %v12897_v48  ;;  %v12928_v47 = vld [vmem:[#allocation8 + $0x5b8] ss:$12 sps:$4 sm:$0xff]  }
 0x21a   :  { %8814 = vmatprep.subr.bf16.mxu1 %v12900_v35  ;;  %v12933_v48 = vld [vmem:[#allocation8 + $0x424] ss:$12 sps:$4 sm:$0xff]  }
 0x21b   :  { %v12936_v35 = vld [vmem:[#allocation8 + $0x5a4] ss:$12 sps:$4 sm:$0xff]  }
 0x21c   :  { %8772 = vmatpush1.bf16.msra.mxu0 %v12895_v50  ;;  %v12931_v50 = vld [vmem:[#allocation8 + $0x420] ss:$12 sps:$4 sm:$0xff]  }
 0x21d   :  { %8815 = vmatpush1.bf16.msra.mxu1 %v12898_v51  ;;  %8773 = vmatprep.subr.bf16.mxu0 %v12903_v52  ;;  %v12934_v51 = vld [vmem:[#allocation8 + $0x5a0] ss:$12 sps:$4 sm:$0xff]  }
 0x21e   :  { %8816 = vmatprep.subr.bf16.mxu1 %v12906_v55  ;;  %v12939_v52 = vld [vmem:[#allocation8 + $0x40c] ss:$12 sps:$4 sm:$0xff]  }
 0x21f   :  { %v12942_v55 = vld [vmem:[#allocation8 + $0x58c] ss:$12 sps:$4 sm:$0xff]  }
 0x220   :  { %8774 = vmatpush1.bf16.msra.mxu0 %v12901_v54  ;;  %v12937_v54 = vld [vmem:[#allocation8 + $0x408] ss:$12 sps:$4 sm:$0xff]  }
 0x221   :  { %8817 = vmatpush1.bf16.msra.mxu1 %v12904_v56  ;;  %8775 = vmatprep.subr.bf16.mxu0 %v12909_v57  ;;  %v12940_v56 = vld [vmem:[#allocation8 + $0x588] ss:$12 sps:$4 sm:$0xff]  }
 0x222   :  { %8818 = vmatprep.subr.bf16.mxu1 %v12912_v59  ;;  %v12945_v57 = vld [vmem:[#allocation8 + $0x3f4] ss:$12 sps:$4 sm:$0xff]  }
 0x223   :  { %v12948_v59 = vld [vmem:[#allocation8 + $0x574] ss:$12 sps:$4 sm:$0xff]  }
 0x224   :  { %8776 = vmatpush1.bf16.msra.mxu0 %v12907_v58  ;;  %v12943_v58 = vld [vmem:[#allocation8 + $0x3f0] ss:$12 sps:$4 sm:$0xff]  }
 0x225   :  { %8819 = vmatpush1.bf16.msra.mxu1 %v12910_v60  ;;  %v2453_v18 = vpop.f32.mrf.mxu0  ;;  %v2496_v17 = vpop.f32.mrf.mxu1  ;;  %8777 = vmatprep.subr.bf16.mxu0 %v12915_v61  ;;  %v12946_v60 = vld [vmem:[#allocation8 + $0x570] ss:$12 sps:$4 sm:$0xff]  }
 0x226   :  { %8820 = vmatprep.subr.bf16.mxu1 %v12918_v7  ;;  %v12951_v61 = vld [vmem:[#allocation8 + $0x3dc] ss:$12 sps:$4 sm:$0xff]  }
 0x227   :  { %v14421_v40 = vpop.f32.mrf.mxu0  ;;  %v14423_v41 = vpop.f32.mrf.mxu1  ;;  %v12954_v7 = vld [vmem:[#allocation8 + $0x55c] ss:$12 sps:$4 sm:$0xff]  }
 0x228   :  { %8778 = vmatpush2.bf16.msra.mxu0 %v12913_v5  ;;  %v12949_v5 = vld [vmem:[#allocation8 + $0x3d8] ss:$12 sps:$4 sm:$0xff]  }
 0x229   :  { %8821 = vmatpush2.bf16.msra.mxu1 %v12916_v32  ;;  %v2457_v11 = vpop.f32.mrf.mxu0  ;;  %v2500_v22 = vpop.f32.mrf.mxu1  ;;  %8779 = vmatprep.subr.bf16.mxu0 %v12921_v49  ;;  %v12955_v32 = vld [vmem:[#allocation8 + $0x3c0] ss:$12 sps:$4 sm:$0xff]   ;;  %v12960_v49 = vld [vmem:[#allocation8 + $0x544] ss:$12 sps:$4 sm:$0xff]  }
 0x22a   :  { %v14425_v0 = vpack.c.bf16 %v2457_v11, %v2453_v18  ;;  %v14427_v44 = vpack.c.bf16 %v2500_v22, %v2496_v17  ;;  %8822 = vmatprep.subr.bf16.mxu1 %v12924_v29  ;;  %v12952_v18 = vld [vmem:[#allocation8 + $0x558] ss:$12 sps:$4 sm:$0xff]   ;;  %v12961_v22 = vld [vmem:[#allocation8 + $0x6a8] ss:$12 sps:$4 sm:$0xff]  }
 0x22b   :  { %v12957_v17 = vld [vmem:[#allocation8 + $0x3c4] ss:$12 sps:$4 sm:$0xff]   ;;  %v12963_v29 = vld [vmem:[#allocation8 + $0x6ac] ss:$12 sps:$4 sm:$0xff]  }
 0x22c   :  { %8780 = vmatpush2.bf16.msra.mxu0 %v12919_v28  ;;  %v12958_v28 = vld [vmem:[#allocation8 + $0x540] ss:$12 sps:$4 sm:$0xff]  }
 0x22d   :  { %8823 = vmatpush2.bf16.msra.mxu1 %v12922_v42  ;;  %8781 = vmatprep.subr.bf16.mxu0 %v12927_v43  ;;  %v12966_v11 = vld [vmem:[#allocation8 + $0x82c] ss:$12 sps:$4 sm:$0xff]   ;;  %v14429_v42 = vpop.f32.mrf.mxu0  ;;  %v14431_v43 = vpop.f32.mrf.mxu1 }
 0x22e   :  { %8824 = vmatprep.subr.bf16.mxu1 %v12930_v46  ;;  %v12969_v46 = vld [vmem:[#allocation8 + $0x694] ss:$12 sps:$4 sm:$0xff]  }
 0x230   :  { %8782 = vmatpush2.bf16.msra.mxu0 %v12925_v45  ;;  %v12964_v45 = vld [vmem:[#allocation8 + $0x828] ss:$12 sps:$4 sm:$0xff]  }
 0x231   :  { %8825 = vmatpush2.bf16.msra.mxu1 %v12928_v47  ;;  %8783 = vmatprep.subr.bf16.mxu0 %v12933_v48 }
 0x232   :  { %8826 = vmatprep.subr.bf16.mxu1 %v12936_v35  ;;  %v14435_v35 = vpack.c.bf16 %v14355_v10, %v14347_v14 }
 0x234   :  { %8784 = vmatpush2.bf16.msra.mxu0 %v12931_v50  ;;  %v12967_v50 = vld [vmem:[#allocation8 + $0x690] ss:$12 sps:$4 sm:$0xff]  }
 0x235   :  { %8827 = vmatpush2.bf16.msra.mxu1 %v12934_v51  ;;  %8785 = vmatprep.subr.bf16.mxu0 %v12939_v52 }
 0x236   :  { %8828 = vmatprep.subr.bf16.mxu1 %v12942_v55  ;;  %v12972_v55 = vld [vmem:[#allocation8 + $0x814] ss:$12 sps:$4 sm:$0xff]  }
 0x238   :  { %8786 = vmatpush2.bf16.msra.mxu0 %v12937_v54  ;;  %v12970_v54 = vld [vmem:[#allocation8 + $0x810] ss:$12 sps:$4 sm:$0xff]  }
 0x239   :  { %8829 = vmatpush2.bf16.msra.mxu1 %v12940_v56  ;;  %8787 = vmatprep.subr.bf16.mxu0 %v12945_v57  ;;  %v14444_v56 = vpack.c.bf16 %v14357_v13, %v14349_v15  ;;  %v12975_v57 = vld [vmem:[#allocation8 + $0x67c] ss:$12 sps:$4 sm:$0xff]   ;;  %v12973_v15 = vld [vmem:[#allocation8 + $0x678] ss:$12 sps:$4 sm:$0xff]  }
 0x23a   :  { %8830 = vmatprep.subr.bf16.mxu1 %v12948_v59  ;;  %v12976_v13 = vld [vmem:[#allocation8 + $0x7f8] ss:$12 sps:$4 sm:$0xff]  }
 0x23c   :  { %8788 = vmatpush2.bf16.msra.mxu0 %v12943_v58  ;;  %v12978_v58 = vld [vmem:[#allocation8 + $0x7fc] ss:$12 sps:$4 sm:$0xff]  }
 0x23d   :  { %8831 = vmatpush2.bf16.msra.mxu1 %v12946_v60  ;;  %8789 = vmatprep.subr.bf16.mxu0 %v12951_v61  ;;  %v12981_v61 = vld [vmem:[#allocation8 + $0x664] ss:$12 sps:$4 sm:$0xff]  }
 0x23e   :  { %8832 = vmatprep.subr.bf16.mxu1 %v12954_v7  ;;  %v12979_v7 = vld [vmem:[#allocation8 + $0x660] ss:$12 sps:$4 sm:$0xff]  }
 0x240   :  { %8790 = vmatpush2.bf16.msra.mxu0 %v12949_v5  ;;  %v12984_v5 = vld [vmem:[#allocation8 + $0x7e4] ss:$12 sps:$4 sm:$0xff]  }
 0x241   :  { %8833 = vmatpush2.bf16.msra.mxu1 %v12952_v18  ;;  %8791 = vmatprep.subr.bf16.mxu0 %v12957_v17  ;;  %v12982_v18 = vld [vmem:[#allocation8 + $0x7e0] ss:$12 sps:$4 sm:$0xff]  }
 0x242   :  { %8834 = vmatprep.subr.bf16.mxu1 %v12960_v49  ;;  %v12987_v17 = vld [vmem:[#allocation8 + $0x64c] ss:$12 sps:$4 sm:$0xff]  }
 0x243   :  { %v12990_v49 = vld [vmem:[#allocation8 + $0x7cc] ss:$12 sps:$4 sm:$0xff]  }
 0x244   :  { %8792 = vmatpush2.bf16.msra.mxu0 %v12955_v32  ;;  %v12985_v32 = vld [vmem:[#allocation8 + $0x648] ss:$12 sps:$4 sm:$0xff]  }
 0x245   :  { %8835 = vmatpush2.bf16.msra.mxu1 %v12958_v28  ;;  %v2539_v47 = vpop.f32.mrf.mxu0  ;;  %v2582_v48 = vpop.f32.mrf.mxu1  ;;  %8847 = vmatprep.subr.bf16.mxu0 %v12963_v29  ;;  %v12988_v28 = vld [vmem:[#allocation8 + $0x7c8] ss:$12 sps:$4 sm:$0xff]  }
 0x246   :  { %8890 = vmatprep.subr.bf16.mxu1 %v12966_v11  ;;  %v12993_v29 = vld [vmem:[#allocation8 + $0x634] ss:$12 sps:$4 sm:$0xff]   ;;  %v12991_v11 = vld [vmem:[#allocation8 + $0x630] ss:$12 sps:$4 sm:$0xff]  }
 0x247   :  { %8794 = vmatmul.mubr.bf16.vlgmr.msra.gmra.mxu0 %v14337_v34  ;;  %v14438_v51 = vpop.f32.mrf.mxu0  ;;  %v14440_v52 = vpop.f32.mrf.mxu1 }
 0x248   :  { %8837 = vmatmul.mubr.bf16.vlgmr.msra.gmra.mxu1 %v14339_v36  ;;  %8848 = vmatpush1.bf16.msra.mxu0 %v12961_v22  ;;  %v12996_v22 = vld [vmem:[#allocation8 + $0x7b4] ss:$12 sps:$4 sm:$0xff]  }
 0x249   :  { %8879 = vmatprep.mubr.bf16.mxu0 %v14435_v35  ;;  %8891 = vmatpush1.bf16.msra.mxu1 %v12964_v45  ;;  %v2543_v14 = vpop.f32.mrf.mxu0  ;;  %v2586_v10 = vpop.f32.mrf.mxu1  ;;  %v12994_v45 = vld [vmem:[#allocation8 + $0x7b0] ss:$12 sps:$4 sm:$0xff]  }
 0x24a   :  { %8922 = vmatprep.mubr.bf16.mxu1 %v14444_v56  ;;  %v14449_v59 = vpack.c.bf16 %v2543_v14, %v2539_v47  ;;  %v14451_v60 = vpack.c.bf16 %v2586_v10, %v2582_v48  ;;  %8849 = vmatprep.subr.bf16.mxu0 %v12969_v46  ;;  %v12999_v46 = vld [vmem:[#allocation8 + $0x61c] ss:$12 sps:$4 sm:$0xff]   ;;  %v12997_v47 = vld [vmem:[#allocation8 + $0x618] ss:$12 sps:$4 sm:$0xff]  }
 0x24b   :  { %8892 = vmatprep.subr.bf16.mxu1 %v12972_v55  ;;  %v13002_v48 = vld [vmem:[#allocation8 + $0x79c] ss:$12 sps:$4 sm:$0xff]   ;;  %v13003_v55 = vld [vmem:[#allocation8 + $0x600] ss:$12 sps:$4 sm:$0xff]  }
 0x24c   :  { %8850 = vmatpush1.bf16.msra.mxu0 %v12967_v50  ;;  %v13000_v50 = vld [vmem:[#allocation8 + $0x798] ss:$12 sps:$4 sm:$0xff]   ;;  %v13009_v10 = vld [vmem:[#allocation8 + $0x768] ss:$12 sps:$4 sm:$0xff]  }
 0x24d   :  { %8893 = vmatpush1.bf16.msra.mxu1 %v12970_v54  ;;  %8851 = vmatprep.subr.bf16.mxu0 %v12975_v57  ;;  %v13005_v54 = vld [vmem:[#allocation8 + $0x604] ss:$12 sps:$4 sm:$0xff]   ;;  %v13011_v14 = vld [vmem:[#allocation8 + $0x76c] ss:$12 sps:$4 sm:$0xff]  }
 0x24e   :  { %8894 = vmatprep.subr.bf16.mxu1 %v12978_v58  ;;  %v13008_v57 = vld [vmem:[#allocation8 + $0x784] ss:$12 sps:$4 sm:$0xff]   ;;  %v13006_v58 = vld [vmem:[#allocation8 + $0x780] ss:$12 sps:$4 sm:$0xff]  }
 0x250   :  { %8852 = vmatpush1.bf16.msra.mxu0 %v12973_v15  ;;  %v13014_v15 = vld [vmem:[#allocation8 + $0x8ec] ss:$12 sps:$4 sm:$0xff]  }
 0x251   :  { %8895 = vmatpush1.bf16.msra.mxu1 %v12976_v13  ;;  %8853 = vmatprep.subr.bf16.mxu0 %v12981_v61  ;;  %v14453_v13 = vpop.f32.mrf.mxu0  ;;  %v14455_v61 = vpop.f32.mrf.mxu1 }
 0x252   :  { %8896 = vmatprep.subr.bf16.mxu1 %v12984_v5 }
 0x254   :  { %8854 = vmatpush1.bf16.msra.mxu0 %v12979_v7 }
 0x255   :  { %8897 = vmatpush1.bf16.msra.mxu1 %v12982_v18  ;;  %8855 = vmatprep.subr.bf16.mxu0 %v12987_v17  ;;  %v13012_v18 = vld [vmem:[#allocation8 + $0x8e8] ss:$12 sps:$4 sm:$0xff]  }
 0x256   :  { %8898 = vmatprep.subr.bf16.mxu1 %v12990_v49  ;;  %v13017_v17 = vld [vmem:[#allocation8 + $0x754] ss:$12 sps:$4 sm:$0xff]  }
 0x257   :  { %v13020_v49 = vld [vmem:[#allocation8 + $0x8d4] ss:$12 sps:$4 sm:$0xff]  }
 0x258   :  { %8856 = vmatpush1.bf16.msra.mxu0 %v12985_v32  ;;  %v13015_v32 = vld [vmem:[#allocation8 + $0x750] ss:$12 sps:$4 sm:$0xff]  }
 0x259   :  { %8899 = vmatpush1.bf16.msra.mxu1 %v12988_v28  ;;  %8857 = vmatprep.subr.bf16.mxu0 %v12993_v29 }
 0x25a   :  { %8900 = vmatprep.subr.bf16.mxu1 %v12996_v22 }
 0x25c   :  { %8858 = vmatpush1.bf16.msra.mxu0 %v12991_v11 }
 0x25d   :  { %8901 = vmatpush1.bf16.msra.mxu1 %v12994_v45  ;;  %8859 = vmatprep.subr.bf16.mxu0 %v12999_v46  ;;  %v13018_v45 = vld [vmem:[#allocation8 + $0x8d0] ss:$12 sps:$4 sm:$0xff]  }
 0x25e   :  { %8902 = vmatprep.subr.bf16.mxu1 %v13002_v48  ;;  %v13023_v46 = vld [vmem:[#allocation8 + $0x73c] ss:$12 sps:$4 sm:$0xff]  }
 0x260   :  { %8860 = vmatpush1.bf16.msra.mxu0 %v12997_v47 }
 0x261   :  { %8903 = vmatpush1.bf16.msra.mxu1 %v13000_v50  ;;  %8861 = vmatprep.subr.bf16.mxu0 %v13005_v54  ;;  %v13021_v50 = vld [vmem:[#allocation8 + $0x738] ss:$12 sps:$4 sm:$0xff]   ;;  %v13026_v54 = vld [vmem:[#allocation8 + $0x8bc] ss:$12 sps:$4 sm:$0xff]  }
 0x262   :  { %8904 = vmatprep.subr.bf16.mxu1 %v13008_v57  ;;  %v13029_v57 = vld [vmem:[#allocation8 + $0x724] ss:$12 sps:$4 sm:$0xff]  }
 0x264   :  { %8862 = vmatpush1.bf16.msra.mxu0 %v13003_v55  ;;  %v13024_v55 = vld [vmem:[#allocation8 + $0x8b8] ss:$12 sps:$4 sm:$0xff]  }
 0x265   :  { %8905 = vmatpush1.bf16.msra.mxu1 %v13006_v58  ;;  %v2625_v5 = vpop.f32.mrf.mxu0  ;;  %v2668_v7 = vpop.f32.mrf.mxu1  ;;  %8863 = vmatprep.subr.bf16.mxu0 %v13011_v14  ;;  %v13027_v58 = vld [vmem:[#allocation8 + $0x720] ss:$12 sps:$4 sm:$0xff]   ;;  %v13032_v14 = vld [vmem:[#allocation8 + $0x8a4] ss:$12 sps:$4 sm:$0xff]  }
 0x266   :  { %8906 = vmatprep.subr.bf16.mxu1 %v13014_v15  ;;  %v13035_v15 = vld [vmem:[#allocation8 + $0x70c] ss:$12 sps:$4 sm:$0xff]  }
 0x267   :  { %v14457_v28 = vpop.f32.mrf.mxu0  ;;  %v14459_v29 = vpop.f32.mrf.mxu1 }
 0x268   :  { %8864 = vmatpush2.bf16.msra.mxu0 %v13009_v10  ;;  %v13030_v10 = vld [vmem:[#allocation8 + $0x8a0] ss:$12 sps:$4 sm:$0xff]  }
 0x269   :  { %8907 = vmatpush2.bf16.msra.mxu1 %v13012_v18  ;;  %v2629_v11 = vpop.f32.mrf.mxu0  ;;  %v2672_v22 = vpop.f32.mrf.mxu1  ;;  %8865 = vmatprep.subr.bf16.mxu0 %v13017_v17  ;;  %v13036_v18 = vld [vmem:[#allocation8 + $0x888] ss:$12 sps:$4 sm:$0xff]  }
 0x26a   :  { %v14461_v47 = vpack.c.bf16 %v2629_v11, %v2625_v5  ;;  %v14463_v48 = vpack.c.bf16 %v2672_v22, %v2668_v7  ;;  %8908 = vmatprep.subr.bf16.mxu1 %v13020_v49  ;;  %v13033_v5 = vld [vmem:[#allocation8 + $0x708] ss:$12 sps:$4 sm:$0xff]   ;;  %v13038_v7 = vld [vmem:[#allocation8 + $0x88c] ss:$12 sps:$4 sm:$0xff]   ;;  %v13042_v11 = vld [vmem:[#allocation8 + $0x870] ss:$12 sps:$4 sm:$0xff]  }
 0x26b   :  { %v13041_v17 = vld [vmem:[#allocation8 + $0x6f4] ss:$12 sps:$4 sm:$0xff]   ;;  %v13047_v22 = vld [vmem:[#allocation8 + $0x6dc] ss:$12 sps:$4 sm:$0xff]  }
 0x26c   :  { %8866 = vmatpush2.bf16.msra.mxu0 %v13015_v32  ;;  %v13039_v32 = vld [vmem:[#allocation8 + $0x6f0] ss:$12 sps:$4 sm:$0xff]   ;;  %v13044_v49 = vld [vmem:[#allocation8 + $0x874] ss:$12 sps:$4 sm:$0xff]  }
 0x26d   :  { %8909 = vmatpush2.bf16.msra.mxu1 %v13018_v45  ;;  %8867 = vmatprep.subr.bf16.mxu0 %v13023_v46  ;;  %v13045_v45 = vld [vmem:[#allocation8 + $0x6d8] ss:$12 sps:$4 sm:$0xff]   ;;  %v13050_v46 = vld [vmem:[#allocation8 + $0x85c] ss:$12 sps:$4 sm:$0xff]  }
 0x26e   :  { %8910 = vmatprep.subr.bf16.mxu1 %v13026_v54  ;;  %v13053_v54 = vld [vmem:[#allocation8 + $0x6c4] ss:$12 sps:$4 sm:$0xff]  }
 0x270   :  { %8868 = vmatpush2.bf16.msra.mxu0 %v13021_v50  ;;  %v13048_v50 = vld [vmem:[#allocation8 + $0x858] ss:$12 sps:$4 sm:$0xff]  }
 0x271   :  { %8911 = vmatpush2.bf16.msra.mxu1 %v13024_v55  ;;  %8869 = vmatprep.subr.bf16.mxu0 %v13029_v57  ;;  %v13051_v55 = vld [vmem:[#allocation8 + $0x6c0] ss:$12 sps:$4 sm:$0xff]   ;;  %v13056_v57 = vld [vmem:[#allocation8 + $0x844] ss:$12 sps:$4 sm:$0xff]  }
 0x272   :  { %8912 = vmatprep.subr.bf16.mxu1 %v13032_v14  ;;  %v13059_v14 = vld [vmem:[#allocation8 + $0x9ac] ss:$12 sps:$4 sm:$0xff]  }
 0x274   :  { %8870 = vmatpush2.bf16.msra.mxu0 %v13027_v58  ;;  %v13054_v58 = vld [vmem:[#allocation8 + $0x840] ss:$12 sps:$4 sm:$0xff]  }
 0x275   :  { %8913 = vmatpush2.bf16.msra.mxu1 %v13030_v10  ;;  %8871 = vmatprep.subr.bf16.mxu0 %v13035_v15  ;;  %v13062_v10 = vld [vmem:[#allocation8 + $0xb2c] ss:$12 sps:$4 sm:$0xff]   ;;  %v13057_v15 = vld [vmem:[#allocation8 + $0x9a8] ss:$12 sps:$4 sm:$0xff]  }
 0x276   :  { %8914 = vmatprep.subr.bf16.mxu1 %v13038_v7  ;;  %v13065_v7 = vld [vmem:[#allocation8 + $0x994] ss:$12 sps:$4 sm:$0xff]  }
 0x278   :  { %8872 = vmatpush2.bf16.msra.mxu0 %v13033_v5  ;;  %v13060_v5 = vld [vmem:[#allocation8 + $0xb28] ss:$12 sps:$4 sm:$0xff]  }
 0x279   :  { %8915 = vmatpush2.bf16.msra.mxu1 %v13036_v18  ;;  %8873 = vmatprep.subr.bf16.mxu0 %v13041_v17  ;;  %v13063_v18 = vld [vmem:[#allocation8 + $0x990] ss:$12 sps:$4 sm:$0xff]   ;;  %v14467_v17 = vpack.c.bf16 %v14377_v3, %v14363_v30  ;;  %v13069_v30 = vld [vmem:[#allocation8 + $0x978] ss:$12 sps:$4 sm:$0xff]  }
 0x27a   :  { %8916 = vmatprep.subr.bf16.mxu1 %v13044_v49  ;;  %v13068_v49 = vld [vmem:[#allocation8 + $0xb14] ss:$12 sps:$4 sm:$0xff]   ;;  %v13072_v3 = vld [vmem:[#allocation8 + $0xaf8] ss:$12 sps:$4 sm:$0xff]  }
 0x27c   :  { %8874 = vmatpush2.bf16.msra.mxu0 %v13039_v32  ;;  %v13066_v32 = vld [vmem:[#allocation8 + $0xb10] ss:$12 sps:$4 sm:$0xff]  }
 0x27d   :  { %8917 = vmatpush2.bf16.msra.mxu1 %v13042_v11  ;;  %8875 = vmatprep.subr.bf16.mxu0 %v13047_v22  ;;  %v14472_v11 = vpack.c.bf16 %v14379_v4, %v14365_v31  ;;  %v13071_v22 = vld [vmem:[#allocation8 + $0x97c] ss:$12 sps:$4 sm:$0xff]   ;;  %v13075_v31 = vld [vmem:[#allocation8 + $0x960] ss:$12 sps:$4 sm:$0xff]  }
 0x27e   :  { %8918 = vmatprep.subr.bf16.mxu1 %v13050_v46  ;;  %v13077_v46 = vld [vmem:[#allocation8 + $0x964] ss:$12 sps:$4 sm:$0xff]   ;;  %v13078_v4 = vld [vmem:[#allocation8 + $0xae0] ss:$12 sps:$4 sm:$0xff]  }
 0x280   :  { %8876 = vmatpush2.bf16.msra.mxu0 %v13045_v45  ;;  %v13074_v45 = vld [vmem:[#allocation8 + $0xafc] ss:$12 sps:$4 sm:$0xff]  }
 0x281   :  { %8919 = vmatpush2.bf16.msra.mxu1 %v13048_v50  ;;  %8877 = vmatprep.subr.bf16.mxu0 %v13053_v54  ;;  %v13080_v50 = vld [vmem:[#allocation8 + $0xae4] ss:$12 sps:$4 sm:$0xff]   ;;  %v13083_v54 = vld [vmem:[#allocation8 + $0x94c] ss:$12 sps:$4 sm:$0xff]  }
 0x282   :  { %8920 = vmatprep.subr.bf16.mxu1 %v13056_v57  ;;  %v13086_v57 = vld [vmem:[#allocation8 + $0xacc] ss:$12 sps:$4 sm:$0xff]  }
 0x284   :  { %8878 = vmatpush2.bf16.msra.mxu0 %v13051_v55  ;;  %v13081_v55 = vld [vmem:[#allocation8 + $0x948] ss:$12 sps:$4 sm:$0xff]  }
 0x285   :  { %8921 = vmatpush2.bf16.msra.mxu1 %v13054_v58  ;;  %8933 = vmatprep.subr.bf16.mxu0 %v13059_v14  ;;  %v13084_v58 = vld [vmem:[#allocation8 + $0xac8] ss:$12 sps:$4 sm:$0xff]  }
 0x286   :  { %8976 = vmatprep.subr.bf16.mxu1 %v13062_v10  ;;  %v13089_v14 = vld [vmem:[#allocation8 + $0x934] ss:$12 sps:$4 sm:$0xff]   ;;  %v13087_v10 = vld [vmem:[#allocation8 + $0x930] ss:$12 sps:$4 sm:$0xff]  }
 0x287   :  { %8880 = vmatmul.mubr.bf16.vlgmr.msra.gmra.mxu0 %v14351_v21 }
 0x288   :  { %8923 = vmatmul.mubr.bf16.vlgmr.msra.gmra.mxu1 %v14353_v24  ;;  %8934 = vmatpush1.bf16.msra.mxu0 %v13057_v15  ;;  %v13092_v15 = vld [vmem:[#allocation8 + $0xab4] ss:$12 sps:$4 sm:$0xff]  }
 0x289   :  { %8965 = vmatprep.mubr.bf16.mxu0 %v14467_v17  ;;  %8977 = vmatpush1.bf16.msra.mxu1 %v13060_v5  ;;  %v13090_v5 = vld [vmem:[#allocation8 + $0xab0] ss:$12 sps:$4 sm:$0xff]  }
 0x28a   :  { %9008 = vmatprep.mubr.bf16.mxu1 %v14472_v11  ;;  %8935 = vmatprep.subr.bf16.mxu0 %v13065_v7  ;;  %v13095_v7 = vld [vmem:[#allocation8 + $0x91c] ss:$12 sps:$4 sm:$0xff]  }
 0x28b   :  { %8978 = vmatprep.subr.bf16.mxu1 %v13068_v49  ;;  %v13096_v49 = vld [vmem:[#allocation8 + $0xa98] ss:$12 sps:$4 sm:$0xff]  }
 0x28c   :  { %8936 = vmatpush1.bf16.msra.mxu0 %v13063_v18  ;;  %v13093_v18 = vld [vmem:[#allocation8 + $0x918] ss:$12 sps:$4 sm:$0xff]  }
 0x28d   :  { %8979 = vmatpush1.bf16.msra.mxu1 %v13066_v32  ;;  %8937 = vmatprep.subr.bf16.mxu0 %v13071_v22  ;;  %v13098_v32 = vld [vmem:[#allocation8 + $0xa9c] ss:$12 sps:$4 sm:$0xff]   ;;  %v13101_v22 = vld [vmem:[#allocation8 + $0x904] ss:$12 sps:$4 sm:$0xff]  }
 0x28e   :  { %8980 = vmatprep.subr.bf16.mxu1 %v13074_v45  ;;  %v13099_v45 = vld [vmem:[#allocation8 + $0x900] ss:$12 sps:$4 sm:$0xff]  }
 0x290   :  { %8938 = vmatpush1.bf16.msra.mxu0 %v13069_v30  ;;  %v13104_v30 = vld [vmem:[#allocation8 + $0xa84] ss:$12 sps:$4 sm:$0xff]  }
 0x291   :  { %8981 = vmatpush1.bf16.msra.mxu1 %v13072_v3  ;;  %8939 = vmatprep.subr.bf16.mxu0 %v13077_v46  ;;  %v13102_v3 = vld [vmem:[#allocation8 + $0xa80] ss:$12 sps:$4 sm:$0xff]  }
 0x292   :  { %8982 = vmatprep.subr.bf16.mxu1 %v13080_v50  ;;  %v13107_v46 = vld [vmem:[#allocation8 + $0xa6c] ss:$12 sps:$4 sm:$0xff]   ;;  %v13105_v50 = vld [vmem:[#allocation8 + $0xa68] ss:$12 sps:$4 sm:$0xff]  }
 0x294   :  { %8940 = vmatpush1.bf16.msra.mxu0 %v13075_v31  ;;  %v13110_v31 = vld [vmem:[#allocation8 + $0xbec] ss:$12 sps:$4 sm:$0xff]  }
 0x295   :  { %8983 = vmatpush1.bf16.msra.mxu1 %v13078_v4  ;;  %8941 = vmatprep.subr.bf16.mxu0 %v13083_v54  ;;  %v13108_v4 = vld [vmem:[#allocation8 + $0xbe8] ss:$12 sps:$4 sm:$0xff]  }
 0x296   :  { %8984 = vmatprep.subr.bf16.mxu1 %v13086_v57  ;;  %v13113_v54 = vld [vmem:[#allocation8 + $0xa54] ss:$12 sps:$4 sm:$0xff]  }
 0x297   :  { %v13116_v57 = vld [vmem:[#allocation8 + $0xbd4] ss:$12 sps:$4 sm:$0xff]  }
 0x298   :  { %8942 = vmatpush1.bf16.msra.mxu0 %v13081_v55  ;;  %v13111_v55 = vld [vmem:[#allocation8 + $0xa50] ss:$12 sps:$4 sm:$0xff]  }
 0x299   :  { %8985 = vmatpush1.bf16.msra.mxu1 %v13084_v58  ;;  %8943 = vmatprep.subr.bf16.mxu0 %v13089_v14  ;;  %v13114_v58 = vld [vmem:[#allocation8 + $0xbd0] ss:$12 sps:$4 sm:$0xff]  }
 0x29a   :  { %8986 = vmatprep.subr.bf16.mxu1 %v13092_v15  ;;  %v13119_v14 = vld [vmem:[#allocation8 + $0xa3c] ss:$12 sps:$4 sm:$0xff]  }
 0x29b   :  { %v13122_v15 = vld [vmem:[#allocation8 + $0xbbc] ss:$12 sps:$4 sm:$0xff]  }
 0x29c   :  { %8944 = vmatpush1.bf16.msra.mxu0 %v13087_v10  ;;  %v13117_v10 = vld [vmem:[#allocation8 + $0xa38] ss:$12 sps:$4 sm:$0xff]  }
 0x29d   :  { %8987 = vmatpush1.bf16.msra.mxu1 %v13090_v5  ;;  %8945 = vmatprep.subr.bf16.mxu0 %v13095_v7  ;;  %v13120_v5 = vld [vmem:[#allocation8 + $0xbb8] ss:$12 sps:$4 sm:$0xff]  }
 0x29e   :  { %8988 = vmatprep.subr.bf16.mxu1 %v13098_v32  ;;  %v13125_v7 = vld [vmem:[#allocation8 + $0xa24] ss:$12 sps:$4 sm:$0xff]  }
 0x29f   :  { %v13128_v32 = vld [vmem:[#allocation8 + $0xba4] ss:$12 sps:$4 sm:$0xff]  }
 0x2a0   :  { %8946 = vmatpush1.bf16.msra.mxu0 %v13093_v18  ;;  %v13123_v18 = vld [vmem:[#allocation8 + $0xa20] ss:$12 sps:$4 sm:$0xff]  }
 0x2a1   :  { %8989 = vmatpush1.bf16.msra.mxu1 %v13096_v49  ;;  %8947 = vmatprep.subr.bf16.mxu0 %v13101_v22  ;;  %v13126_v49 = vld [vmem:[#allocation8 + $0xba0] ss:$12 sps:$4 sm:$0xff]  }
 0x2a2   :  { %8990 = vmatprep.subr.bf16.mxu1 %v13104_v30  ;;  %v13131_v22 = vld [vmem:[#allocation8 + $0xa0c] ss:$12 sps:$4 sm:$0xff]  }
 0x2a3   :  { %v13134_v30 = vld [vmem:[#allocation8 + $0xb8c] ss:$12 sps:$4 sm:$0xff]  }
 0x2a4   :  { %8948 = vmatpush1.bf16.msra.mxu0 %v13099_v45  ;;  %v13129_v45 = vld [vmem:[#allocation8 + $0xa08] ss:$12 sps:$4 sm:$0xff]  }
 0x2a5   :  { %8991 = vmatpush1.bf16.msra.mxu1 %v13102_v3  ;;  %8949 = vmatprep.subr.bf16.mxu0 %v13107_v46  ;;  %v13132_v3 = vld [vmem:[#allocation8 + $0xb88] ss:$12 sps:$4 sm:$0xff]  }
 0x2a6   :  { %8992 = vmatprep.subr.bf16.mxu1 %v13110_v31  ;;  %v13137_v46 = vld [vmem:[#allocation8 + $0x9f4] ss:$12 sps:$4 sm:$0xff]  }
 0x2a7   :  { %v13140_v31 = vld [vmem:[#allocation8 + $0xb74] ss:$12 sps:$4 sm:$0xff]  }
 0x2a8   :  { %8950 = vmatpush2.bf16.msra.mxu0 %v13105_v50  ;;  %v13135_v50 = vld [vmem:[#allocation8 + $0x9f0] ss:$12 sps:$4 sm:$0xff]  }
 0x2a9   :  { %8993 = vmatpush2.bf16.msra.mxu1 %v13108_v4  ;;  %8951 = vmatprep.subr.bf16.mxu0 %v13113_v54  ;;  %v14477_v4 = vpop.f32.mrf.mxu0 }
 0x2aa   :  { %8994 = vmatprep.subr.bf16.mxu1 %v13116_v57  ;;  %v13143_v57 = vld [vmem:[#allocation8 + $0x9dc] ss:$12 sps:$4 sm:$0xff]  }
 0x2ab   :  { %v3981_v54 = vpop.f32.mrf.mxu0 }
 0x2ac   :  { %8952 = vmatpush2.bf16.msra.mxu0 %v13111_v55  ;;  %v13138_v55 = vld [vmem:[#allocation8 + $0xb70] ss:$12 sps:$4 sm:$0xff]  }
 0x2ad   :  { %8995 = vmatpush2.bf16.msra.mxu1 %v13114_v58  ;;  %8953 = vmatprep.subr.bf16.mxu0 %v13119_v14  ;;  %v13141_v58 = vld [vmem:[#allocation8 + $0x9d8] ss:$12 sps:$4 sm:$0xff]   ;;  %v13146_v14 = vld [vmem:[#allocation8 + $0xb5c] ss:$12 sps:$4 sm:$0xff]  }
 0x2ae   :  { %8996 = vmatprep.subr.bf16.mxu1 %v13122_v15  ;;  %v13144_v15 = vld [vmem:[#allocation8 + $0xb58] ss:$12 sps:$4 sm:$0xff]  }
 0x2b0   :  { %8954 = vmatpush2.bf16.msra.mxu0 %v13117_v10  ;;  %v14479_v10 = vpop.f32.mrf.mxu0 }
 0x2b1   :  { %8997 = vmatpush2.bf16.msra.mxu1 %v13120_v5  ;;  %8955 = vmatprep.subr.bf16.mxu0 %v13125_v7  ;;  %14871 = vst [vmem:[#allocation27_spill] sm:$0xff] %v14479_v10  ;;  %v13149_v5 = vld [vmem:[#allocation8 + $0x9c4] ss:$12 sps:$4 sm:$0xff]   ;;  %v13147_v7 = vld [vmem:[#allocation8 + $0x9c0] ss:$12 sps:$4 sm:$0xff]  }
 0x2b2   :  { %8998 = vmatprep.subr.bf16.mxu1 %v13128_v32  ;;  %v14481_v32 = vpop.f32.mrf.mxu1 }
 0x2b4   :  { %8956 = vmatpush2.bf16.msra.mxu0 %v13123_v18  ;;  %v13152_v18 = vld [vmem:[#allocation8 + $0xb44] ss:$12 sps:$4 sm:$0xff]  }
 0x2b5   :  { %8999 = vmatpush2.bf16.msra.mxu1 %v13126_v49  ;;  %8957 = vmatprep.subr.bf16.mxu0 %v13131_v22  ;;  %v3987_v49 = vpop.f32.mrf.mxu0  ;;  %v14483_v22 = vpop.f32.mrf.mxu1 }
 0x2b6   :  { %9000 = vmatprep.subr.bf16.mxu1 %v13134_v30  ;;  %14872 = vst [vmem:[#allocation28_spill] sm:$0xff] %v14483_v22  ;;  %v13155_v30 = vld [vmem:[#allocation8 + $0xcac] ss:$12 sps:$4 sm:$0xff]   ;;  %v13162_v22 = vld [vmem:[#allocation8 + $0xe10] ss:$12 sps:$4 sm:$0xff]  }
 0x2b8   :  { %8958 = vmatpush2.bf16.msra.mxu0 %v13129_v45  ;;  %v13150_v45 = vld [vmem:[#allocation8 + $0xb40] ss:$12 sps:$4 sm:$0xff]  }
 0x2b9   :  { %9001 = vmatpush2.bf16.msra.mxu1 %v13132_v3  ;;  %8959 = vmatprep.subr.bf16.mxu0 %v13137_v46  ;;  %v13158_v3 = vld [vmem:[#allocation8 + $0xe2c] ss:$12 sps:$4 sm:$0xff]   ;;  %v13153_v46 = vld [vmem:[#allocation8 + $0xca8] ss:$12 sps:$4 sm:$0xff]  }
 0x2ba   :  { %9002 = vmatprep.subr.bf16.mxu1 %v13140_v31  ;;  %v13156_v31 = vld [vmem:[#allocation8 + $0xe28] ss:$12 sps:$4 sm:$0xff]  }
 0x2bc   :  { %8960 = vmatpush2.bf16.msra.mxu0 %v13135_v50  ;;  %v14485_v50 = vpop.f32.mrf.mxu0 }
 0x2bd   :  { %9003 = vmatpush2.bf16.msra.mxu1 %v13138_v55  ;;  %8961 = vmatprep.subr.bf16.mxu0 %v13143_v57  ;;  %14873 = vst [vmem:[#allocation29_spill] sm:$0xff] %v14485_v50  ;;  %v13161_v55 = vld [vmem:[#allocation8 + $0xc94] ss:$12 sps:$4 sm:$0xff]   ;;  %v14487_v57 = vpop.f32.mrf.mxu1 }
 0x2be   :  { %9004 = vmatprep.subr.bf16.mxu1 %v13146_v14  ;;  %14874 = vst [vmem:[#allocation30_spill] sm:$0xff] %v14487_v57  ;;  %v13164_v14 = vld [vmem:[#allocation8 + $0xe14] ss:$12 sps:$4 sm:$0xff]   ;;  %v13176_v57 = vld [vmem:[#allocation8 + $0xde4] ss:$12 sps:$4 sm:$0xff]  }
 0x2c0   :  { %8962 = vmatpush2.bf16.msra.mxu0 %v13141_v58  ;;  %v14491_v58 = vpack.c.bf16 %v14389_v62, %v14381_v19 }
 0x2c1   :  { %9005 = vmatpush2.bf16.msra.mxu1 %v13144_v15  ;;  %8963 = vmatprep.subr.bf16.mxu0 %v13149_v5 }
 0x2c2   :  { %9006 = vmatprep.subr.bf16.mxu1 %v13152_v18  ;;  %v13159_v18 = vld [vmem:[#allocation8 + $0xc90] ss:$12 sps:$4 sm:$0xff]  }
 0x2c4   :  { %8964 = vmatpush2.bf16.msra.mxu0 %v13147_v7  ;;  %v14496_v7 = vpack.c.bf16 %v14391_v63, %v14383_v20  ;;  %v13165_v63 = vld [vmem:[#allocation8 + $0xc78] ss:$12 sps:$4 sm:$0xff]  }
 0x2c5   :  { %9007 = vmatpush2.bf16.msra.mxu1 %v13150_v45  ;;  %9019 = vmatprep.subr.bf16.mxu0 %v13155_v30  ;;  %v13167_v45 = vld [vmem:[#allocation8 + $0xc7c] ss:$12 sps:$4 sm:$0xff]  }
 0x2c6   :  { %9062 = vmatprep.subr.bf16.mxu1 %v13158_v3  ;;  %v13170_v30 = vld [vmem:[#allocation8 + $0xdfc] ss:$12 sps:$4 sm:$0xff]  }
 0x2c7   :  { %v8709_v15 = vpop.f32.mrf.mxu0  ;;  %v8752_v5 = vpop.f32.mrf.mxu1  ;;  %8966 = vmatmul.mubr.bf16.vlgmr.msra.gmra.mxu0 %v14372_v23 }
 0x2c8   :  { %v8710_v50 = vadd.f32 %v8709_v15, %v3981_v54  ;;  %9009 = vmatmul.mubr.bf16.vlgmr.msra.gmra.mxu1 %v14374_v39  ;;  %9020 = vmatpush1.bf16.msra.mxu0 %v13153_v46  ;;  %v13168_v54 = vld [vmem:[#allocation8 + $0xdf8] ss:$12 sps:$4 sm:$0xff]  }
 0x2c9   :  { %9051 = vmatprep.mubr.bf16.mxu0 %v14491_v58  ;;  %9063 = vmatpush1.bf16.msra.mxu1 %v13156_v31  ;;  %v14500_v19 = vpop.f32.mrf.mxu0  ;;  %v14502_v62 = vpop.f32.mrf.mxu1  ;;  %v13173_v46 = vld [vmem:[#allocation8 + $0xc64] ss:$12 sps:$4 sm:$0xff]  }
 0x2ca   :  { %v14504_v3 = vadd.f32 %v8752_v5, %v8710_v50  ;;  %9094 = vmatprep.mubr.bf16.mxu1 %v14496_v7  ;;  %9021 = vmatprep.subr.bf16.mxu0 %v13161_v55  ;;  %v13171_v50 = vld [vmem:[#allocation8 + $0xc60] ss:$12 sps:$4 sm:$0xff]  }
 0x2cb   :  { %v8713_v20 = vpop.f32.mrf.mxu0  ;;  %9064 = vmatprep.subr.bf16.mxu1 %v13164_v14  ;;  %v8756_v10 = vpop.f32.mrf.mxu1  ;;  %v13174_v5 = vld [vmem:[#allocation8 + $0xde0] ss:$12 sps:$4 sm:$0xff]   ;;  %v13177_v14 = vld [vmem:[#allocation8 + $0xc48] ss:$12 sps:$4 sm:$0xff]  }
 0x2cc   :  { %14875 = vst [vmem:[#allocation31_spill] sm:$0xff] %v14504_v3  ;;  %v8714_v15 = vadd.f32 %v8713_v20, %v3987_v49  ;;  %9022 = vmatpush1.bf16.msra.mxu0 %v13159_v18  ;;  %v13179_v55 = vld [vmem:[#allocation8 + $0xc4c] ss:$12 sps:$4 sm:$0xff]   ;;  %v13180_v49 = vld [vmem:[#allocation8 + $0xdc8] ss:$12 sps:$4 sm:$0xff]  }
 0x2cd   :  { %9065 = vmatpush1.bf16.msra.mxu1 %v13162_v22  ;;  %9023 = vmatprep.subr.bf16.mxu0 %v13167_v45  ;;  %v13182_v3 = vld [vmem:[#allocation8 + $0xdcc] ss:$12 sps:$4 sm:$0xff]   ;;  %v13185_v18 = vld [vmem:[#allocation8 + $0xc34] ss:$12 sps:$4 sm:$0xff]   ;;  %v13183_v22 = vld [vmem:[#allocation8 + $0xc30] ss:$12 sps:$4 sm:$0xff]  }
 0x2ce   :  { %v14507_v31 = vadd.f32 %v8756_v10, %v8714_v15  ;;  %9066 = vmatprep.subr.bf16.mxu1 %v13170_v30  ;;  %v13188_v45 = vld [vmem:[#allocation8 + $0xdb4] ss:$12 sps:$4 sm:$0xff]   ;;  %v13186_v10 = vld [vmem:[#allocation8 + $0xdb0] ss:$12 sps:$4 sm:$0xff]   ;;  %v13189_v20 = vld [vmem:[#allocation8 + $0xc18] ss:$12 sps:$4 sm:$0xff]  }
 0x2cf   :  { %v13191_v30 = vld [vmem:[#allocation8 + $0xc1c] ss:$12 sps:$4 sm:$0xff]   ;;  %v13195_v15 = vld [vmem:[#allocation8 + $0xc00] ss:$12 sps:$4 sm:$0xff]  }
 0x2d0   :  { %9024 = vmatpush1.bf16.msra.mxu0 %v13165_v63  ;;  %v13194_v63 = vld [vmem:[#allocation8 + $0xd9c] ss:$12 sps:$4 sm:$0xff]  }
 0x2d1   :  { %9067 = vmatpush1.bf16.msra.mxu1 %v13168_v54  ;;  %9025 = vmatprep.subr.bf16.mxu0 %v13173_v46  ;;  %v13197_v54 = vld [vmem:[#allocation8 + $0xc04] ss:$12 sps:$4 sm:$0xff]  }
 0x2d2   :  { %9068 = vmatprep.subr.bf16.mxu1 %v13176_v57  ;;  %v13192_v57 = vld [vmem:[#allocation8 + $0xd98] ss:$12 sps:$4 sm:$0xff]  }
 0x2d3   :  { %v13200_v46 = vld [vmem:[#allocation8 + $0xd84] ss:$12 sps:$4 sm:$0xff]  }
 0x2d4   :  { %9026 = vmatpush1.bf16.msra.mxu0 %v13171_v50  ;;  %v13203_v50 = vld [vmem:[#allocation8 + $0xd6c] ss:$12 sps:$4 sm:$0xff]  }
 0x2d5   :  { %9069 = vmatpush1.bf16.msra.mxu1 %v13174_v5  ;;  %9027 = vmatprep.subr.bf16.mxu0 %v13179_v55  ;;  %v13201_v5 = vld [vmem:[#allocation8 + $0xd68] ss:$12 sps:$4 sm:$0xff]   ;;  %v13206_v55 = vld [vmem:[#allocation8 + $0xeec] ss:$12 sps:$4 sm:$0xff]  }
 0x2d6   :  { %9070 = vmatprep.subr.bf16.mxu1 %v13182_v3  ;;  %v13198_v3 = vld [vmem:[#allocation8 + $0xd80] ss:$12 sps:$4 sm:$0xff]  }
 0x2d8   :  { %9028 = vmatpush1.bf16.msra.mxu0 %v13177_v14  ;;  %v13204_v14 = vld [vmem:[#allocation8 + $0xee8] ss:$12 sps:$4 sm:$0xff]  }
 0x2d9   :  { %9071 = vmatpush1.bf16.msra.mxu1 %v13180_v49  ;;  %9029 = vmatprep.subr.bf16.mxu0 %v13185_v18  ;;  %v13209_v49 = vld [vmem:[#allocation8 + $0xd54] ss:$12 sps:$4 sm:$0xff]   ;;  %v13207_v18 = vld [vmem:[#allocation8 + $0xd50] ss:$12 sps:$4 sm:$0xff]  }
 0x2da   :  { %9072 = vmatprep.subr.bf16.mxu1 %v13188_v45  ;;  %v13210_v45 = vld [vmem:[#allocation8 + $0xed0] ss:$12 sps:$4 sm:$0xff]  }
 0x2dc   :  { %9030 = vmatpush1.bf16.msra.mxu0 %v13183_v22  ;;  %v13212_v22 = vld [vmem:[#allocation8 + $0xed4] ss:$12 sps:$4 sm:$0xff]  }
 0x2dd   :  { %9073 = vmatpush1.bf16.msra.mxu1 %v13186_v10  ;;  %9031 = vmatprep.subr.bf16.mxu0 %v13191_v30  ;;  %v13215_v10 = vld [vmem:[#allocation8 + $0xd3c] ss:$12 sps:$4 sm:$0xff]   ;;  %v13213_v30 = vld [vmem:[#allocation8 + $0xd38] ss:$12 sps:$4 sm:$0xff]  }
 0x2de   :  { %9074 = vmatprep.subr.bf16.mxu1 %v13194_v63  ;;  %v13216_v63 = vld [vmem:[#allocation8 + $0xeb8] ss:$12 sps:$4 sm:$0xff]  }
 0x2e0   :  { %9032 = vmatpush1.bf16.msra.mxu0 %v13189_v20  ;;  %v13218_v20 = vld [vmem:[#allocation8 + $0xebc] ss:$12 sps:$4 sm:$0xff]  }
 0x2e1   :  { %9075 = vmatpush1.bf16.msra.mxu1 %v13192_v57  ;;  %9033 = vmatprep.subr.bf16.mxu0 %v13197_v54  ;;  %v13221_v57 = vld [vmem:[#allocation8 + $0xd24] ss:$12 sps:$4 sm:$0xff]   ;;  %v13219_v54 = vld [vmem:[#allocation8 + $0xd20] ss:$12 sps:$4 sm:$0xff]  }
 0x2e2   :  { %9076 = vmatprep.subr.bf16.mxu1 %v13200_v46  ;;  %v13222_v46 = vld [vmem:[#allocation8 + $0xea0] ss:$12 sps:$4 sm:$0xff]  }
 0x2e4   :  { %9034 = vmatpush1.bf16.msra.mxu0 %v13195_v15  ;;  %v13224_v15 = vld [vmem:[#allocation8 + $0xea4] ss:$12 sps:$4 sm:$0xff]  }
 0x2e5   :  { %9077 = vmatpush1.bf16.msra.mxu1 %v13198_v3  ;;  %9035 = vmatprep.subr.bf16.mxu0 %v13203_v50  ;;  %v13227_v3 = vld [vmem:[#allocation8 + $0xd0c] ss:$12 sps:$4 sm:$0xff]   ;;  %v13225_v50 = vld [vmem:[#allocation8 + $0xd08] ss:$12 sps:$4 sm:$0xff]  }
 0x2e6   :  { %9078 = vmatprep.subr.bf16.mxu1 %v13206_v55  ;;  %v13228_v55 = vld [vmem:[#allocation8 + $0xe88] ss:$12 sps:$4 sm:$0xff]  }
 0x2e8   :  { %9036 = vmatpush2.bf16.msra.mxu0 %v13201_v5  ;;  %v13230_v5 = vld [vmem:[#allocation8 + $0xe8c] ss:$12 sps:$4 sm:$0xff]  }
 0x2e9   :  { %9079 = vmatpush2.bf16.msra.mxu1 %v13204_v14  ;;  %9037 = vmatprep.subr.bf16.mxu0 %v13209_v49  ;;  %v13233_v14 = vld [vmem:[#allocation8 + $0xcf4] ss:$12 sps:$4 sm:$0xff]   ;;  %v13231_v49 = vld [vmem:[#allocation8 + $0xcf0] ss:$12 sps:$4 sm:$0xff]  }
 0x2ea   :  { %9080 = vmatprep.subr.bf16.mxu1 %v13212_v22  ;;  %v13234_v22 = vld [vmem:[#allocation8 + $0xe70] ss:$12 sps:$4 sm:$0xff]  }
 0x2ec   :  { %9038 = vmatpush2.bf16.msra.mxu0 %v13207_v18  ;;  %v13236_v18 = vld [vmem:[#allocation8 + $0xe74] ss:$12 sps:$4 sm:$0xff]  }
 0x2ed   :  { %9081 = vmatpush2.bf16.msra.mxu1 %v13210_v45  ;;  %9039 = vmatprep.subr.bf16.mxu0 %v13215_v10  ;;  %v13239_v45 = vld [vmem:[#allocation8 + $0xcdc] ss:$12 sps:$4 sm:$0xff]   ;;  %v13237_v10 = vld [vmem:[#allocation8 + $0xcd8] ss:$12 sps:$4 sm:$0xff]  }
 0x2ee   :  { %9082 = vmatprep.subr.bf16.mxu1 %v13218_v20  ;;  %v13240_v20 = vld [vmem:[#allocation8 + $0xe58] ss:$12 sps:$4 sm:$0xff]  }
 0x2f0   :  { %9040 = vmatpush2.bf16.msra.mxu0 %v13213_v30  ;;  %v13242_v30 = vld [vmem:[#allocation8 + $0xe5c] ss:$12 sps:$4 sm:$0xff]  }
 0x2f1   :  { %9083 = vmatpush2.bf16.msra.mxu1 %v13216_v63  ;;  %9041 = vmatprep.subr.bf16.mxu0 %v13221_v57  ;;  %v13245_v63 = vld [vmem:[#allocation8 + $0xcc4] ss:$12 sps:$4 sm:$0xff]   ;;  %v13243_v57 = vld [vmem:[#allocation8 + $0xcc0] ss:$12 sps:$4 sm:$0xff]  }
 0x2f2   :  { %9084 = vmatprep.subr.bf16.mxu1 %v13224_v15  ;;  %v13246_v15 = vld [vmem:[#allocation8 + $0xe40] ss:$12 sps:$4 sm:$0xff]  }
 0x2f4   :  { %9042 = vmatpush2.bf16.msra.mxu0 %v13219_v54  ;;  %v13248_v54 = vld [vmem:[#allocation8 + $0xe44] ss:$12 sps:$4 sm:$0xff]  }
 0x2f5   :  { %9085 = vmatpush2.bf16.msra.mxu1 %v13222_v46  ;;  %9043 = vmatprep.subr.bf16.mxu0 %v13227_v3  ;;  %v13251_v46 = vld [vmem:[#allocation8 + $0xfac] ss:$12 sps:$4 sm:$0xff]  }
 0x2f6   :  { %9086 = vmatprep.subr.bf16.mxu1 %v13230_v5  ;;  %v13254_v3 = vld [vmem:[#allocation8 + $0x112c] ss:$12 sps:$4 sm:$0xff]   ;;  %v13252_v5 = vld [vmem:[#allocation8 + $0x1128] ss:$12 sps:$4 sm:$0xff]  }
 0x2f8   :  { %9044 = vmatpush2.bf16.msra.mxu0 %v13225_v50  ;;  %v13249_v50 = vld [vmem:[#allocation8 + $0xfa8] ss:$12 sps:$4 sm:$0xff]  }
 0x2f9   :  { %9087 = vmatpush2.bf16.msra.mxu1 %v13228_v55  ;;  %9045 = vmatprep.subr.bf16.mxu0 %v13233_v14  ;;  %v13257_v55 = vld [vmem:[#allocation8 + $0xf94] ss:$12 sps:$4 sm:$0xff]  }
 0x2fa   :  { %9088 = vmatprep.subr.bf16.mxu1 %v13236_v18  ;;  %v13260_v14 = vld [vmem:[#allocation8 + $0x1114] ss:$12 sps:$4 sm:$0xff]   ;;  %v13255_v18 = vld [vmem:[#allocation8 + $0xf90] ss:$12 sps:$4 sm:$0xff]  }
 0x2fc   :  { %9046 = vmatpush2.bf16.msra.mxu0 %v13231_v49  ;;  %v14511_v49 = vpack.c.bf16 %v14417_v8, %v14407_v26  ;;  %v13261_v26 = vld [vmem:[#allocation8 + $0xf78] ss:$12 sps:$4 sm:$0xff]  }
 0x2fd   :  { %9089 = vmatpush2.bf16.msra.mxu1 %v13234_v22  ;;  %9047 = vmatprep.subr.bf16.mxu0 %v13239_v45  ;;  %v13258_v22 = vld [vmem:[#allocation8 + $0x1110] ss:$12 sps:$4 sm:$0xff]   ;;  %v14516_v45 = vpack.c.bf16 %v14419_v16, %v14409_v6  ;;  %v13264_v8 = vld [vmem:[#allocation8 + $0x10f8] ss:$12 sps:$4 sm:$0xff]   ;;  %v13267_v6 = vld [vmem:[#allocation8 + $0xf60] ss:$12 sps:$4 sm:$0xff]  }
 0x2fe   :  { %9090 = vmatprep.subr.bf16.mxu1 %v13242_v30  ;;  %v13266_v30 = vld [vmem:[#allocation8 + $0x10fc] ss:$12 sps:$4 sm:$0xff]   ;;  %v13270_v16 = vld [vmem:[#allocation8 + $0x10e0] ss:$12 sps:$4 sm:$0xff]  }
 0x300   :  { %9048 = vmatpush2.bf16.msra.mxu0 %v13237_v10  ;;  %v13263_v10 = vld [vmem:[#allocation8 + $0xf7c] ss:$12 sps:$4 sm:$0xff]  }
 0x301   :  { %9091 = vmatpush2.bf16.msra.mxu1 %v13240_v20  ;;  %9049 = vmatprep.subr.bf16.mxu0 %v13245_v63  ;;  %v13269_v20 = vld [vmem:[#allocation8 + $0xf64] ss:$12 sps:$4 sm:$0xff]  }
 0x302   :  { %9092 = vmatprep.subr.bf16.mxu1 %v13248_v54  ;;  %v13272_v63 = vld [vmem:[#allocation8 + $0x10e4] ss:$12 sps:$4 sm:$0xff]   ;;  %v13273_v54 = vld [vmem:[#allocation8 + $0xf48] ss:$12 sps:$4 sm:$0xff]  }
 0x304   :  { %9050 = vmatpush2.bf16.msra.mxu0 %v13243_v57  ;;  %v13275_v57 = vld [vmem:[#allocation8 + $0xf4c] ss:$12 sps:$4 sm:$0xff]  }
 0x305   :  { %9093 = vmatpush2.bf16.msra.mxu1 %v13246_v15  ;;  %9105 = vmatprep.subr.bf16.mxu0 %v13251_v46  ;;  %v13278_v15 = vld [vmem:[#allocation8 + $0x10cc] ss:$12 sps:$4 sm:$0xff]   ;;  %v13276_v46 = vld [vmem:[#allocation8 + $0x10c8] ss:$12 sps:$4 sm:$0xff]  }
 0x306   :  { %9148 = vmatprep.subr.bf16.mxu1 %v13254_v3  ;;  %v13281_v3 = vld [vmem:[#allocation8 + $0xf34] ss:$12 sps:$4 sm:$0xff]  }
 0x307   :  { %9052 = vmatmul.mubr.bf16.vlgmr.msra.gmra.mxu0 %v14385_v33 }
 0x308   :  { %9095 = vmatmul.mubr.bf16.vlgmr.msra.gmra.mxu1 %v14387_v38  ;;  %9106 = vmatpush1.bf16.msra.mxu0 %v13249_v50  ;;  %v13279_v50 = vld [vmem:[#allocation8 + $0xf30] ss:$12 sps:$4 sm:$0xff]  }
 0x309   :  { %9137 = vmatprep.mubr.bf16.mxu0 %v14511_v49  ;;  %9149 = vmatpush1.bf16.msra.mxu1 %v13252_v5  ;;  %v13284_v5 = vld [vmem:[#allocation8 + $0x10b4] ss:$12 sps:$4 sm:$0xff]  }
 0x30a   :  { %9180 = vmatprep.mubr.bf16.mxu1 %v14516_v45  ;;  %9107 = vmatprep.subr.bf16.mxu0 %v13257_v55  ;;  %v13282_v55 = vld [vmem:[#allocation8 + $0x10b0] ss:$12 sps:$4 sm:$0xff]  }
 0x30b   :  { %9150 = vmatprep.subr.bf16.mxu1 %v13260_v14  ;;  %v13287_v14 = vld [vmem:[#allocation8 + $0xf1c] ss:$12 sps:$4 sm:$0xff]  }
 0x30c   :  { %9108 = vmatpush1.bf16.msra.mxu0 %v13255_v18  ;;  %v13285_v18 = vld [vmem:[#allocation8 + $0xf18] ss:$12 sps:$4 sm:$0xff]  }
 0x30d   :  { %9151 = vmatpush1.bf16.msra.mxu1 %v13258_v22  ;;  %9109 = vmatprep.subr.bf16.mxu0 %v13263_v10  ;;  %v13290_v22 = vld [vmem:[#allocation8 + $0x109c] ss:$12 sps:$4 sm:$0xff]   ;;  %v13288_v10 = vld [vmem:[#allocation8 + $0x1098] ss:$12 sps:$4 sm:$0xff]  }
 0x30e   :  { %9152 = vmatprep.subr.bf16.mxu1 %v13266_v30  ;;  %v13293_v30 = vld [vmem:[#allocation8 + $0xf04] ss:$12 sps:$4 sm:$0xff]  }
 0x310   :  { %9110 = vmatpush1.bf16.msra.mxu0 %v13261_v26  ;;  %v13291_v26 = vld [vmem:[#allocation8 + $0xf00] ss:$12 sps:$4 sm:$0xff]  }
 0x311   :  { %9153 = vmatpush1.bf16.msra.mxu1 %v13264_v8  ;;  %9111 = vmatprep.subr.bf16.mxu0 %v13269_v20  ;;  %v13296_v8 = vld [vmem:[#allocation8 + $0x1084] ss:$12 sps:$4 sm:$0xff]   ;;  %v13294_v20 = vld [vmem:[#allocation8 + $0x1080] ss:$12 sps:$4 sm:$0xff]  }
 0x312   :  { %9154 = vmatprep.subr.bf16.mxu1 %v13272_v63  ;;  %v13299_v63 = vld [vmem:[#allocation8 + $0x106c] ss:$12 sps:$4 sm:$0xff]  }
 0x314   :  { %9112 = vmatpush1.bf16.msra.mxu0 %v13267_v6  ;;  %v13297_v6 = vld [vmem:[#allocation8 + $0x1068] ss:$12 sps:$4 sm:$0xff]  }
 0x315   :  { %9155 = vmatpush1.bf16.msra.mxu1 %v13270_v16  ;;  %9113 = vmatprep.subr.bf16.mxu0 %v13275_v57  ;;  %v13302_v16 = vld [vmem:[#allocation8 + $0x11ec] ss:$12 sps:$4 sm:$0xff]   ;;  %v13300_v57 = vld [vmem:[#allocation8 + $0x11e8] ss:$12 sps:$4 sm:$0xff]  }
 0x316   :  { %9156 = vmatprep.subr.bf16.mxu1 %v13278_v15  ;;  %v13303_v15 = vld [vmem:[#allocation8 + $0x1050] ss:$12 sps:$4 sm:$0xff]  }
 0x318   :  { %9114 = vmatpush1.bf16.msra.mxu0 %v13273_v54  ;;  %v13305_v54 = vld [vmem:[#allocation8 + $0x1054] ss:$12 sps:$4 sm:$0xff]  }
 0x319   :  { %9157 = vmatpush1.bf16.msra.mxu1 %v13276_v46  ;;  %9115 = vmatprep.subr.bf16.mxu0 %v13281_v3  ;;  %v13308_v46 = vld [vmem:[#allocation8 + $0x11d4] ss:$12 sps:$4 sm:$0xff]   ;;  %v13306_v3 = vld [vmem:[#allocation8 + $0x11d0] ss:$12 sps:$4 sm:$0xff]  }
 0x31a   :  { %9158 = vmatprep.subr.bf16.mxu1 %v13284_v5  ;;  %v13309_v5 = vld [vmem:[#allocation8 + $0x1038] ss:$12 sps:$4 sm:$0xff]  }
 0x31c   :  { %9116 = vmatpush1.bf16.msra.mxu0 %v13279_v50  ;;  %v13311_v50 = vld [vmem:[#allocation8 + $0x103c] ss:$12 sps:$4 sm:$0xff]  }
 0x31d   :  { %9159 = vmatpush1.bf16.msra.mxu1 %v13282_v55  ;;  %9117 = vmatprep.subr.bf16.mxu0 %v13287_v14  ;;  %v13314_v55 = vld [vmem:[#allocation8 + $0x11bc] ss:$12 sps:$4 sm:$0xff]   ;;  %v13312_v14 = vld [vmem:[#allocation8 + $0x11b8] ss:$12 sps:$4 sm:$0xff]  }
 0x31e   :  { %9160 = vmatprep.subr.bf16.mxu1 %v13290_v22  ;;  %v13315_v22 = vld [vmem:[#allocation8 + $0x1020] ss:$12 sps:$4 sm:$0xff]  }
 0x320   :  { %9118 = vmatpush1.bf16.msra.mxu0 %v13285_v18  ;;  %v13317_v18 = vld [vmem:[#allocation8 + $0x1024] ss:$12 sps:$4 sm:$0xff]  }
 0x321   :  { %9161 = vmatpush1.bf16.msra.mxu1 %v13288_v10  ;;  %9119 = vmatprep.subr.bf16.mxu0 %v13293_v30  ;;  %v13320_v10 = vld [vmem:[#allocation8 + $0x11a4] ss:$12 sps:$4 sm:$0xff]   ;;  %v13318_v30 = vld [vmem:[#allocation8 + $0x11a0] ss:$12 sps:$4 sm:$0xff]  }
 0x322   :  { %9162 = vmatprep.subr.bf16.mxu1 %v13296_v8  ;;  %v13321_v8 = vld [vmem:[#allocation8 + $0x1008] ss:$12 sps:$4 sm:$0xff]  }
 0x324   :  { %9120 = vmatpush1.bf16.msra.mxu0 %v13291_v26  ;;  %v13323_v26 = vld [vmem:[#allocation8 + $0x100c] ss:$12 sps:$4 sm:$0xff]  }
 0x325   :  { %9163 = vmatpush1.bf16.msra.mxu1 %v13294_v20  ;;  %9121 = vmatprep.subr.bf16.mxu0 %v13299_v63  ;;  %v13326_v20 = vld [vmem:[#allocation8 + $0x118c] ss:$12 sps:$4 sm:$0xff]   ;;  %v13324_v63 = vld [vmem:[#allocation8 + $0x1188] ss:$12 sps:$4 sm:$0xff]  }
 0x326   :  { %9164 = vmatprep.subr.bf16.mxu1 %v13302_v16  ;;  %v13327_v16 = vld [vmem:[#allocation8 + $0xff0] ss:$12 sps:$4 sm:$0xff]  }
 0x328   :  { %9122 = vmatpush2.bf16.msra.mxu0 %v13297_v6  ;;  %v13329_v6 = vld [vmem:[#allocation8 + $0xff4] ss:$12 sps:$4 sm:$0xff]  }
 0x329   :  { %9165 = vmatpush2.bf16.msra.mxu1 %v13300_v57  ;;  %9123 = vmatprep.subr.bf16.mxu0 %v13305_v54  ;;  %v13332_v57 = vld [vmem:[#allocation8 + $0x1174] ss:$12 sps:$4 sm:$0xff]   ;;  %v13330_v54 = vld [vmem:[#allocation8 + $0x1170] ss:$12 sps:$4 sm:$0xff]  }
 0x32a   :  { %9166 = vmatprep.subr.bf16.mxu1 %v13308_v46  ;;  %v13333_v46 = vld [vmem:[#allocation8 + $0xfd8] ss:$12 sps:$4 sm:$0xff]  }
 0x32c   :  { %9124 = vmatpush2.bf16.msra.mxu0 %v13303_v15  ;;  %v13335_v15 = vld [vmem:[#allocation8 + $0xfdc] ss:$12 sps:$4 sm:$0xff]  }
 0x32d   :  { %9167 = vmatpush2.bf16.msra.mxu1 %v13306_v3  ;;  %9125 = vmatprep.subr.bf16.mxu0 %v13311_v50  ;;  %v13338_v3 = vld [vmem:[#allocation8 + $0x115c] ss:$12 sps:$4 sm:$0xff]   ;;  %v13336_v50 = vld [vmem:[#allocation8 + $0x1158] ss:$12 sps:$4 sm:$0xff]  }
 0x32e   :  { %9168 = vmatprep.subr.bf16.mxu1 %v13314_v55  ;;  %v13339_v55 = vld [vmem:[#allocation8 + $0xfc0] ss:$12 sps:$4 sm:$0xff]  }
 0x330   :  { %9126 = vmatpush2.bf16.msra.mxu0 %v13309_v5  ;;  %v13341_v5 = vld [vmem:[#allocation8 + $0xfc4] ss:$12 sps:$4 sm:$0xff]  }
 0x331   :  { %9169 = vmatpush2.bf16.msra.mxu1 %v13312_v14  ;;  %9127 = vmatprep.subr.bf16.mxu0 %v13317_v18  ;;  %v13344_v14 = vld [vmem:[#allocation8 + $0x1144] ss:$12 sps:$4 sm:$0xff]   ;;  %v13342_v18 = vld [vmem:[#allocation8 + $0x1140] ss:$12 sps:$4 sm:$0xff]  }
 0x332   :  { %9170 = vmatprep.subr.bf16.mxu1 %v13320_v10  ;;  %v13350_v10 = vld [vmem:[#allocation8 + $0x142c] ss:$12 sps:$4 sm:$0xff]  }
 0x334   :  { %9128 = vmatpush2.bf16.msra.mxu0 %v13315_v22  ;;  %v13347_v22 = vld [vmem:[#allocation8 + $0x12ac] ss:$12 sps:$4 sm:$0xff]  }
 0x335   :  { %9171 = vmatpush2.bf16.msra.mxu1 %v13318_v30  ;;  %9129 = vmatprep.subr.bf16.mxu0 %v13323_v26  ;;  %v13345_v30 = vld [vmem:[#allocation8 + $0x12a8] ss:$12 sps:$4 sm:$0xff]  }
 0x336   :  { %9172 = vmatprep.subr.bf16.mxu1 %v13326_v20  ;;  %v13348_v26 = vld [vmem:[#allocation8 + $0x1428] ss:$12 sps:$4 sm:$0xff]  }
 0x337   :  { %v13356_v20 = vld [vmem:[#allocation8 + $0x1414] ss:$12 sps:$4 sm:$0xff]  }
 0x338   :  { %9130 = vmatpush2.bf16.msra.mxu0 %v13321_v8  ;;  %v13353_v8 = vld [vmem:[#allocation8 + $0x1294] ss:$12 sps:$4 sm:$0xff]  }
 0x339   :  { %9173 = vmatpush2.bf16.msra.mxu1 %v13324_v63  ;;  %9131 = vmatprep.subr.bf16.mxu0 %v13329_v6  ;;  %v14523_v63 = vpack.c.bf16 %v14429_v42, %v14421_v40  ;;  %v13351_v6 = vld [vmem:[#allocation8 + $0x1290] ss:$12 sps:$4 sm:$0xff]   ;;  %v13357_v40 = vld [vmem:[#allocation8 + $0x1278] ss:$12 sps:$4 sm:$0xff]  }
 0x33a   :  { %9174 = vmatprep.subr.bf16.mxu1 %v13332_v57  ;;  %v14528_v57 = vpack.c.bf16 %v14431_v43, %v14423_v41  ;;  %v13360_v42 = vld [vmem:[#allocation8 + $0x13f8] ss:$12 sps:$4 sm:$0xff]   ;;  %v13363_v41 = vld [vmem:[#allocation8 + $0x1260] ss:$12 sps:$4 sm:$0xff]  }
 0x33b   :  { %v13366_v43 = vld [vmem:[#allocation8 + $0x13e0] ss:$12 sps:$4 sm:$0xff]  }
 0x33c   :  { %9132 = vmatpush2.bf16.msra.mxu0 %v13327_v16  ;;  %v13354_v16 = vld [vmem:[#allocation8 + $0x1410] ss:$12 sps:$4 sm:$0xff]  }
 0x33d   :  { %9175 = vmatpush2.bf16.msra.mxu1 %v13330_v54  ;;  %9133 = vmatprep.subr.bf16.mxu0 %v13335_v15  ;;  %v13359_v54 = vld [vmem:[#allocation8 + $0x127c] ss:$12 sps:$4 sm:$0xff]  }
 0x33e   :  { %9176 = vmatprep.subr.bf16.mxu1 %v13338_v3  ;;  %v13362_v15 = vld [vmem:[#allocation8 + $0x13fc] ss:$12 sps:$4 sm:$0xff]   ;;  %v13368_v3 = vld [vmem:[#allocation8 + $0x13e4] ss:$12 sps:$4 sm:$0xff]  }
 0x340   :  { %9134 = vmatpush2.bf16.msra.mxu0 %v13333_v46  ;;  %v13365_v46 = vld [vmem:[#allocation8 + $0x1264] ss:$12 sps:$4 sm:$0xff]  }
 0x341   :  { %9177 = vmatpush2.bf16.msra.mxu1 %v13336_v50  ;;  %9135 = vmatprep.subr.bf16.mxu0 %v13341_v5  ;;  %v13371_v50 = vld [vmem:[#allocation8 + $0x124c] ss:$12 sps:$4 sm:$0xff]   ;;  %v13369_v5 = vld [vmem:[#allocation8 + $0x1248] ss:$12 sps:$4 sm:$0xff]  }
 0x342   :  { %9178 = vmatprep.subr.bf16.mxu1 %v13344_v14  ;;  %v13372_v14 = vld [vmem:[#allocation8 + $0x13c8] ss:$12 sps:$4 sm:$0xff]  }
 0x344   :  { %9136 = vmatpush2.bf16.msra.mxu0 %v13339_v55  ;;  %v13374_v55 = vld [vmem:[#allocation8 + $0x13cc] ss:$12 sps:$4 sm:$0xff]  }
 0x345   :  { %9179 = vmatpush2.bf16.msra.mxu1 %v13342_v18  ;;  %9191 = vmatprep.subr.bf16.mxu0 %v13347_v22  ;;  %v13377_v18 = vld [vmem:[#allocation8 + $0x1234] ss:$12 sps:$4 sm:$0xff]   ;;  %v13375_v22 = vld [vmem:[#allocation8 + $0x1230] ss:$12 sps:$4 sm:$0xff]  }
 0x346   :  { %9234 = vmatprep.subr.bf16.mxu1 %v13350_v10  ;;  %v13380_v10 = vld [vmem:[#allocation8 + $0x13b4] ss:$12 sps:$4 sm:$0xff]  }
 0x347   :  { %9138 = vmatmul.mubr.bf16.vlgmr.msra.gmra.mxu0 %v14413_v1 }
 0x348   :  { %9181 = vmatmul.mubr.bf16.vlgmr.msra.gmra.mxu1 %v14415_v2  ;;  %9192 = vmatpush1.bf16.msra.mxu0 %v13345_v30  ;;  %v13378_v30 = vld [vmem:[#allocation8 + $0x13b0] ss:$12 sps:$4 sm:$0xff]  }
 0x349   :  { %9223 = vmatprep.mubr.bf16.mxu0 %v14523_v63  ;;  %9235 = vmatpush1.bf16.msra.mxu1 %v13348_v26  ;;  %v13383_v26 = vld [vmem:[#allocation8 + $0x121c] ss:$12 sps:$4 sm:$0xff]  }
 0x34a   :  { %9266 = vmatprep.mubr.bf16.mxu1 %v14528_v57  ;;  %9193 = vmatprep.subr.bf16.mxu0 %v13353_v8  ;;  %v13381_v8 = vld [vmem:[#allocation8 + $0x1218] ss:$12 sps:$4 sm:$0xff]  }
 0x34b   :  { %9236 = vmatprep.subr.bf16.mxu1 %v13356_v20  ;;  %v13386_v20 = vld [vmem:[#allocation8 + $0x139c] ss:$12 sps:$4 sm:$0xff]  }
 0x34c   :  { %9194 = vmatpush1.bf16.msra.mxu0 %v13351_v6  ;;  %v13384_v6 = vld [vmem:[#allocation8 + $0x1398] ss:$12 sps:$4 sm:$0xff]  }
 0x34d   :  { %9237 = vmatpush1.bf16.msra.mxu1 %v13354_v16  ;;  %9195 = vmatprep.subr.bf16.mxu0 %v13359_v54  ;;  %v13389_v16 = vld [vmem:[#allocation8 + $0x1204] ss:$12 sps:$4 sm:$0xff]   ;;  %v13387_v54 = vld [vmem:[#allocation8 + $0x1200] ss:$12 sps:$4 sm:$0xff]  }
 0x34e   :  { %9238 = vmatprep.subr.bf16.mxu1 %v13362_v15  ;;  %v13392_v15 = vld [vmem:[#allocation8 + $0x1384] ss:$12 sps:$4 sm:$0xff]  }
 0x350   :  { %9196 = vmatpush1.bf16.msra.mxu0 %v13357_v40  ;;  %v13390_v40 = vld [vmem:[#allocation8 + $0x1380] ss:$12 sps:$4 sm:$0xff]  }
 0x351   :  { %9239 = vmatpush1.bf16.msra.mxu1 %v13360_v42  ;;  %9197 = vmatprep.subr.bf16.mxu0 %v13365_v46  ;;  %v13395_v42 = vld [vmem:[#allocation8 + $0x136c] ss:$12 sps:$4 sm:$0xff]   ;;  %v13393_v46 = vld [vmem:[#allocation8 + $0x1368] ss:$12 sps:$4 sm:$0xff]  }
 0x352   :  { %9240 = vmatprep.subr.bf16.mxu1 %v13368_v3  ;;  %v13398_v3 = vld [vmem:[#allocation8 + $0x14ec] ss:$12 sps:$4 sm:$0xff]  }
 0x354   :  { %9198 = vmatpush1.bf16.msra.mxu0 %v13363_v41  ;;  %v13396_v41 = vld [vmem:[#allocation8 + $0x14e8] ss:$12 sps:$4 sm:$0xff]  }
 0x355   :  { %9241 = vmatpush1.bf16.msra.mxu1 %v13366_v43  ;;  %9199 = vmatprep.subr.bf16.mxu0 %v13371_v50  ;;  %v13401_v43 = vld [vmem:[#allocation8 + $0x1354] ss:$12 sps:$4 sm:$0xff]   ;;  %v13399_v50 = vld [vmem:[#allocation8 + $0x1350] ss:$12 sps:$4 sm:$0xff]  }
 0x356   :  { %9242 = vmatprep.subr.bf16.mxu1 %v13374_v55  ;;  %v13402_v55 = vld [vmem:[#allocation8 + $0x14d0] ss:$12 sps:$4 sm:$0xff]  }
 0x358   :  { %9200 = vmatpush1.bf16.msra.mxu0 %v13369_v5  ;;  %v13404_v5 = vld [vmem:[#allocation8 + $0x14d4] ss:$12 sps:$4 sm:$0xff]  }
 0x359   :  { %9243 = vmatpush1.bf16.msra.mxu1 %v13372_v14  ;;  %9201 = vmatprep.subr.bf16.mxu0 %v13377_v18  ;;  %v13407_v14 = vld [vmem:[#allocation8 + $0x133c] ss:$12 sps:$4 sm:$0xff]   ;;  %v13405_v18 = vld [vmem:[#allocation8 + $0x1338] ss:$12 sps:$4 sm:$0xff]  }
 0x35a   :  { %9244 = vmatprep.subr.bf16.mxu1 %v13380_v10  ;;  %v13408_v10 = vld [vmem:[#allocation8 + $0x14b8] ss:$12 sps:$4 sm:$0xff]  }
 0x35c   :  { %9202 = vmatpush1.bf16.msra.mxu0 %v13375_v22  ;;  %v13410_v22 = vld [vmem:[#allocation8 + $0x14bc] ss:$12 sps:$4 sm:$0xff]  }
 0x35d   :  { %9245 = vmatpush1.bf16.msra.mxu1 %v13378_v30  ;;  %9203 = vmatprep.subr.bf16.mxu0 %v13383_v26  ;;  %v13413_v30 = vld [vmem:[#allocation8 + $0x1324] ss:$12 sps:$4 sm:$0xff]   ;;  %v13411_v26 = vld [vmem:[#allocation8 + $0x1320] ss:$12 sps:$4 sm:$0xff]  }
 0x35e   :  { %9246 = vmatprep.subr.bf16.mxu1 %v13386_v20  ;;  %v13414_v20 = vld [vmem:[#allocation8 + $0x14a0] ss:$12 sps:$4 sm:$0xff]  }
 0x360   :  { %9204 = vmatpush1.bf16.msra.mxu0 %v13381_v8  ;;  %v13416_v8 = vld [vmem:[#allocation8 + $0x14a4] ss:$12 sps:$4 sm:$0xff]  }
 0x361   :  { %9247 = vmatpush1.bf16.msra.mxu1 %v13384_v6  ;;  %9205 = vmatprep.subr.bf16.mxu0 %v13389_v16  ;;  %v13419_v6 = vld [vmem:[#allocation8 + $0x130c] ss:$12 sps:$4 sm:$0xff]   ;;  %v13417_v16 = vld [vmem:[#allocation8 + $0x1308] ss:$12 sps:$4 sm:$0xff]  }
 0x362   :  { %9248 = vmatprep.subr.bf16.mxu1 %v13392_v15  ;;  %v13420_v15 = vld [vmem:[#allocation8 + $0x1488] ss:$12 sps:$4 sm:$0xff]  }
 0x364   :  { %9206 = vmatpush1.bf16.msra.mxu0 %v13387_v54  ;;  %v13422_v54 = vld [vmem:[#allocation8 + $0x148c] ss:$12 sps:$4 sm:$0xff]  }
 0x365   :  { %9249 = vmatpush1.bf16.msra.mxu1 %v13390_v40  ;;  %9207 = vmatprep.subr.bf16.mxu0 %v13395_v42  ;;  %v13425_v40 = vld [vmem:[#allocation8 + $0x12f4] ss:$12 sps:$4 sm:$0xff]   ;;  %v13423_v42 = vld [vmem:[#allocation8 + $0x12f0] ss:$12 sps:$4 sm:$0xff]  }
 0x366   :  { %9250 = vmatprep.subr.bf16.mxu1 %v13398_v3  ;;  %v13426_v3 = vld [vmem:[#allocation8 + $0x1470] ss:$12 sps:$4 sm:$0xff]  }
 0x368   :  { %9208 = vmatpush2.bf16.msra.mxu0 %v13393_v46  ;;  %v13428_v46 = vld [vmem:[#allocation8 + $0x1474] ss:$12 sps:$4 sm:$0xff]  }
 0x369   :  { %9251 = vmatpush2.bf16.msra.mxu1 %v13396_v41  ;;  %9209 = vmatprep.subr.bf16.mxu0 %v13401_v43  ;;  %v13431_v41 = vld [vmem:[#allocation8 + $0x12dc] ss:$12 sps:$4 sm:$0xff]   ;;  %v13429_v43 = vld [vmem:[#allocation8 + $0x12d8] ss:$12 sps:$4 sm:$0xff]  }
 0x36a   :  { %9252 = vmatprep.subr.bf16.mxu1 %v13404_v5  ;;  %v13432_v5 = vld [vmem:[#allocation8 + $0x1458] ss:$12 sps:$4 sm:$0xff]  }
 0x36c   :  { %9210 = vmatpush2.bf16.msra.mxu0 %v13399_v50  ;;  %v13434_v50 = vld [vmem:[#allocation8 + $0x145c] ss:$12 sps:$4 sm:$0xff]  }
 0x36d   :  { %9253 = vmatpush2.bf16.msra.mxu1 %v13402_v55  ;;  %9211 = vmatprep.subr.bf16.mxu0 %v13407_v14  ;;  %v13437_v55 = vld [vmem:[#allocation8 + $0x12c4] ss:$12 sps:$4 sm:$0xff]   ;;  %v13435_v14 = vld [vmem:[#allocation8 + $0x12c0] ss:$12 sps:$4 sm:$0xff]  }
 0x36e   :  { %9254 = vmatprep.subr.bf16.mxu1 %v13410_v22  ;;  %v13438_v22 = vld [vmem:[#allocation8 + $0x1440] ss:$12 sps:$4 sm:$0xff]  }
 0x370   :  { %9212 = vmatpush2.bf16.msra.mxu0 %v13405_v18  ;;  %v13440_v18 = vld [vmem:[#allocation8 + $0x1444] ss:$12 sps:$4 sm:$0xff]  }
 0x371   :  { %9255 = vmatpush2.bf16.msra.mxu1 %v13408_v10  ;;  %9213 = vmatprep.subr.bf16.mxu0 %v13413_v30  ;;  %v13443_v10 = vld [vmem:[#allocation8 + $0x15ac] ss:$12 sps:$4 sm:$0xff]  }
 0x372   :  { %9256 = vmatprep.subr.bf16.mxu1 %v13416_v8  ;;  %v13446_v30 = vld [vmem:[#allocation8 + $0x172c] ss:$12 sps:$4 sm:$0xff]   ;;  %v13444_v8 = vld [vmem:[#allocation8 + $0x1728] ss:$12 sps:$4 sm:$0xff]  }
 0x374   :  { %9214 = vmatpush2.bf16.msra.mxu0 %v13411_v26  ;;  %v13441_v26 = vld [vmem:[#allocation8 + $0x15a8] ss:$12 sps:$4 sm:$0xff]  }
 0x375   :  { %9257 = vmatpush2.bf16.msra.mxu1 %v13414_v20  ;;  %9215 = vmatprep.subr.bf16.mxu0 %v13419_v6  ;;  %v13449_v20 = vld [vmem:[#allocation8 + $0x1594] ss:$12 sps:$4 sm:$0xff]  }
 0x376   :  { %9258 = vmatprep.subr.bf16.mxu1 %v13422_v54  ;;  %v13452_v6 = vld [vmem:[#allocation8 + $0x1714] ss:$12 sps:$4 sm:$0xff]   ;;  %v13447_v54 = vld [vmem:[#allocation8 + $0x1590] ss:$12 sps:$4 sm:$0xff]  }
 0x378   :  { %9216 = vmatpush2.bf16.msra.mxu0 %v13417_v16  ;;  %v14535_v16 = vpack.c.bf16 %v14453_v13, %v14438_v51  ;;  %v13453_v51 = vld [vmem:[#allocation8 + $0x1578] ss:$12 sps:$4 sm:$0xff]  }
 0x379   :  { %9259 = vmatpush2.bf16.msra.mxu1 %v13420_v15  ;;  %9217 = vmatprep.subr.bf16.mxu0 %v13425_v40  ;;  %v13450_v15 = vld [vmem:[#allocation8 + $0x1710] ss:$12 sps:$4 sm:$0xff]   ;;  %v14540_v40 = vpack.c.bf16 %v14455_v61, %v14440_v52  ;;  %v13456_v13 = vld [vmem:[#allocation8 + $0x16f8] ss:$12 sps:$4 sm:$0xff]   ;;  %v13459_v52 = vld [vmem:[#allocation8 + $0x1560] ss:$12 sps:$4 sm:$0xff]  }
 0x37a   :  { %9260 = vmatprep.subr.bf16.mxu1 %v13428_v46  ;;  %v13458_v46 = vld [vmem:[#allocation8 + $0x16fc] ss:$12 sps:$4 sm:$0xff]   ;;  %v13462_v61 = vld [vmem:[#allocation8 + $0x16e0] ss:$12 sps:$4 sm:$0xff]  }
 0x37c   :  { %9218 = vmatpush2.bf16.msra.mxu0 %v13423_v42  ;;  %v13455_v42 = vld [vmem:[#allocation8 + $0x157c] ss:$12 sps:$4 sm:$0xff]  }
 0x37d   :  { %9261 = vmatpush2.bf16.msra.mxu1 %v13426_v3  ;;  %9219 = vmatprep.subr.bf16.mxu0 %v13431_v41  ;;  %v13461_v3 = vld [vmem:[#allocation8 + $0x1564] ss:$12 sps:$4 sm:$0xff]  }
 0x37e   :  { %9262 = vmatprep.subr.bf16.mxu1 %v13434_v50  ;;  %v13464_v41 = vld [vmem:[#allocation8 + $0x16e4] ss:$12 sps:$4 sm:$0xff]   ;;  %v13470_v50 = vld [vmem:[#allocation8 + $0x16cc] ss:$12 sps:$4 sm:$0xff]  }
 0x380   :  { %9220 = vmatpush2.bf16.msra.mxu0 %v13429_v43  ;;  %v13467_v43 = vld [vmem:[#allocation8 + $0x154c] ss:$12 sps:$4 sm:$0xff]  }
 0x381   :  { %9263 = vmatpush2.bf16.msra.mxu1 %v13432_v5  ;;  %9221 = vmatprep.subr.bf16.mxu0 %v13437_v55  ;;  %v13465_v5 = vld [vmem:[#allocation8 + $0x1548] ss:$12 sps:$4 sm:$0xff]  }
 0x382   :  { %9264 = vmatprep.subr.bf16.mxu1 %v13440_v18  ;;  %v13468_v55 = vld [vmem:[#allocation8 + $0x16c8] ss:$12 sps:$4 sm:$0xff]  }
 0x383   :  { %v13476_v18 = vld [vmem:[#allocation8 + $0x16b4] ss:$12 sps:$4 sm:$0xff]  }
 0x384   :  { %9222 = vmatpush2.bf16.msra.mxu0 %v13435_v14  ;;  %v13473_v14 = vld [vmem:[#allocation8 + $0x1534] ss:$12 sps:$4 sm:$0xff]  }
 0x385   :  { %9265 = vmatpush2.bf16.msra.mxu1 %v13438_v22  ;;  %9277 = vmatprep.subr.bf16.mxu0 %v13443_v10  ;;  %v13471_v22 = vld [vmem:[#allocation8 + $0x1530] ss:$12 sps:$4 sm:$0xff]  }
 0x386   :  { %9320 = vmatprep.subr.bf16.mxu1 %v13446_v30  ;;  %v13474_v10 = vld [vmem:[#allocation8 + $0x16b0] ss:$12 sps:$4 sm:$0xff]  }
 0x387   :  { %9224 = vmatmul.mubr.bf16.vlgmr.msra.gmra.mxu0 %v14425_v0  ;;  %v13479_v30 = vld [vmem:[#allocation8 + $0x151c] ss:$12 sps:$4 sm:$0xff]  }
 0x388   :  { %9267 = vmatmul.mubr.bf16.vlgmr.msra.gmra.mxu1 %v14427_v44  ;;  %9278 = vmatpush1.bf16.msra.mxu0 %v13441_v26  ;;  %v13482_v26 = vld [vmem:[#allocation8 + $0x169c] ss:$12 sps:$4 sm:$0xff]  }
 0x389   :  { %9309 = vmatprep.mubr.bf16.mxu0 %v14535_v16  ;;  %9321 = vmatpush1.bf16.msra.mxu1 %v13444_v8  ;;  %v13477_v8 = vld [vmem:[#allocation8 + $0x1518] ss:$12 sps:$4 sm:$0xff]  }
 0x38a   :  { %9352 = vmatprep.mubr.bf16.mxu1 %v14540_v40  ;;  %9279 = vmatprep.subr.bf16.mxu0 %v13449_v20  ;;  %v13480_v20 = vld [vmem:[#allocation8 + $0x1698] ss:$12 sps:$4 sm:$0xff]  }
 0x38b   :  { %9322 = vmatprep.subr.bf16.mxu1 %v13452_v6  ;;  %v13485_v6 = vld [vmem:[#allocation8 + $0x1504] ss:$12 sps:$4 sm:$0xff]  }
 0x38c   :  { %9280 = vmatpush1.bf16.msra.mxu0 %v13447_v54  ;;  %v13488_v54 = vld [vmem:[#allocation8 + $0x1684] ss:$12 sps:$4 sm:$0xff]  }
 0x38d   :  { %9323 = vmatpush1.bf16.msra.mxu1 %v13450_v15  ;;  %9281 = vmatprep.subr.bf16.mxu0 %v13455_v42  ;;  %v13483_v15 = vld [vmem:[#allocation8 + $0x1500] ss:$12 sps:$4 sm:$0xff]  }
 0x38e   :  { %9324 = vmatprep.subr.bf16.mxu1 %v13458_v46  ;;  %v13486_v42 = vld [vmem:[#allocation8 + $0x1680] ss:$12 sps:$4 sm:$0xff]  }
 0x38f   :  { %v13491_v46 = vld [vmem:[#allocation8 + $0x166c] ss:$12 sps:$4 sm:$0xff]  }
 0x390   :  { %9282 = vmatpush1.bf16.msra.mxu0 %v13453_v51  ;;  %v13494_v51 = vld [vmem:[#allocation8 + $0x17ec] ss:$12 sps:$4 sm:$0xff]  }
 0x391   :  { %9325 = vmatpush1.bf16.msra.mxu1 %v13456_v13  ;;  %9283 = vmatprep.subr.bf16.mxu0 %v13461_v3  ;;  %v13489_v13 = vld [vmem:[#allocation8 + $0x1668] ss:$12 sps:$4 sm:$0xff]  }
 0x392   :  { %9326 = vmatprep.subr.bf16.mxu1 %v13464_v41  ;;  %v13492_v3 = vld [vmem:[#allocation8 + $0x17e8] ss:$12 sps:$4 sm:$0xff]  }
 0x393   :  { %v13497_v41 = vld [vmem:[#allocation8 + $0x1654] ss:$12 sps:$4 sm:$0xff]  }
 0x394   :  { %9284 = vmatpush1.bf16.msra.mxu0 %v13459_v52  ;;  %v13500_v52 = vld [vmem:[#allocation8 + $0x17d4] ss:$12 sps:$4 sm:$0xff]  }
 0x395   :  { %9327 = vmatpush1.bf16.msra.mxu1 %v13462_v61  ;;  %9285 = vmatprep.subr.bf16.mxu0 %v13467_v43  ;;  %v13495_v61 = vld [vmem:[#allocation8 + $0x1650] ss:$12 sps:$4 sm:$0xff]  }
 0x396   :  { %9328 = vmatprep.subr.bf16.mxu1 %v13470_v50  ;;  %v13498_v43 = vld [vmem:[#allocation8 + $0x17d0] ss:$12 sps:$4 sm:$0xff]  }
 0x397   :  { %v13503_v50 = vld [vmem:[#allocation8 + $0x163c] ss:$12 sps:$4 sm:$0xff]  }
 0x398   :  { %9286 = vmatpush1.bf16.msra.mxu0 %v13465_v5  ;;  %v13506_v5 = vld [vmem:[#allocation8 + $0x17bc] ss:$12 sps:$4 sm:$0xff]  }
 0x399   :  { %9329 = vmatpush1.bf16.msra.mxu1 %v13468_v55  ;;  %9287 = vmatprep.subr.bf16.mxu0 %v13473_v14  ;;  %v13501_v55 = vld [vmem:[#allocation8 + $0x1638] ss:$12 sps:$4 sm:$0xff]  }
 0x39a   :  { %9330 = vmatprep.subr.bf16.mxu1 %v13476_v18  ;;  %v13504_v14 = vld [vmem:[#allocation8 + $0x17b8] ss:$12 sps:$4 sm:$0xff]  }
 0x39b   :  { %v13509_v18 = vld [vmem:[#allocation8 + $0x1624] ss:$12 sps:$4 sm:$0xff]  }
 0x39c   :  { %9288 = vmatpush1.bf16.msra.mxu0 %v13471_v22  ;;  %v13512_v22 = vld [vmem:[#allocation8 + $0x17a4] ss:$12 sps:$4 sm:$0xff]  }
 0x39d   :  { %9331 = vmatpush1.bf16.msra.mxu1 %v13474_v10  ;;  %9289 = vmatprep.subr.bf16.mxu0 %v13479_v30  ;;  %v13507_v10 = vld [vmem:[#allocation8 + $0x1620] ss:$12 sps:$4 sm:$0xff]  }
 0x39e   :  { %9332 = vmatprep.subr.bf16.mxu1 %v13482_v26  ;;  %v13510_v30 = vld [vmem:[#allocation8 + $0x17a0] ss:$12 sps:$4 sm:$0xff]  }
 0x39f   :  { %v13515_v26 = vld [vmem:[#allocation8 + $0x160c] ss:$12 sps:$4 sm:$0xff]  }
 0x3a0   :  { %9290 = vmatpush1.bf16.msra.mxu0 %v13477_v8  ;;  %v13518_v8 = vld [vmem:[#allocation8 + $0x178c] ss:$12 sps:$4 sm:$0xff]  }
 0x3a1   :  { %9333 = vmatpush1.bf16.msra.mxu1 %v13480_v20  ;;  %9291 = vmatprep.subr.bf16.mxu0 %v13485_v6  ;;  %v13513_v20 = vld [vmem:[#allocation8 + $0x1608] ss:$12 sps:$4 sm:$0xff]  }
 0x3a2   :  { %9334 = vmatprep.subr.bf16.mxu1 %v13488_v54  ;;  %v13516_v6 = vld [vmem:[#allocation8 + $0x1788] ss:$12 sps:$4 sm:$0xff]  }
 0x3a3   :  { %v13521_v54 = vld [vmem:[#allocation8 + $0x15f4] ss:$12 sps:$4 sm:$0xff]  }
 0x3a4   :  { %9292 = vmatpush1.bf16.msra.mxu0 %v13483_v15  ;;  %v13524_v15 = vld [vmem:[#allocation8 + $0x1774] ss:$12 sps:$4 sm:$0xff]  }
 0x3a5   :  { %9335 = vmatpush1.bf16.msra.mxu1 %v13486_v42  ;;  %9293 = vmatprep.subr.bf16.mxu0 %v13491_v46  ;;  %v13519_v42 = vld [vmem:[#allocation8 + $0x15f0] ss:$12 sps:$4 sm:$0xff]  }
 0x3a6   :  { %9336 = vmatprep.subr.bf16.mxu1 %v13494_v51  ;;  %v13522_v46 = vld [vmem:[#allocation8 + $0x1770] ss:$12 sps:$4 sm:$0xff]  }
 0x3a7   :  { %v13527_v51 = vld [vmem:[#allocation8 + $0x15dc] ss:$12 sps:$4 sm:$0xff]  }
 0x3a8   :  { %9294 = vmatpush2.bf16.msra.mxu0 %v13489_v13  ;;  %v13530_v13 = vld [vmem:[#allocation8 + $0x175c] ss:$12 sps:$4 sm:$0xff]  }
 0x3a9   :  { %9337 = vmatpush2.bf16.msra.mxu1 %v13492_v3  ;;  %9295 = vmatprep.subr.bf16.mxu0 %v13497_v41  ;;  %v13525_v3 = vld [vmem:[#allocation8 + $0x15d8] ss:$12 sps:$4 sm:$0xff]  }
 0x3aa   :  { %9338 = vmatprep.subr.bf16.mxu1 %v13500_v52  ;;  %v13528_v41 = vld [vmem:[#allocation8 + $0x1758] ss:$12 sps:$4 sm:$0xff]  }
 0x3ab   :  { %v13533_v52 = vld [vmem:[#allocation8 + $0x15c4] ss:$12 sps:$4 sm:$0xff]  }
 0x3ac   :  { %9296 = vmatpush2.bf16.msra.mxu0 %v13495_v61  ;;  %v13536_v61 = vld [vmem:[#allocation8 + $0x1744] ss:$12 sps:$4 sm:$0xff]  }
 0x3ad   :  { %9339 = vmatpush2.bf16.msra.mxu1 %v13498_v43  ;;  %9297 = vmatprep.subr.bf16.mxu0 %v13503_v50  ;;  %v13531_v43 = vld [vmem:[#allocation8 + $0x15c0] ss:$12 sps:$4 sm:$0xff]  }
 0x3ae   :  { %9340 = vmatprep.subr.bf16.mxu1 %v13506_v5  ;;  %v13534_v50 = vld [vmem:[#allocation8 + $0x1740] ss:$12 sps:$4 sm:$0xff]  }
 0x3af   :  { %v13539_v5 = vld [vmem:[#allocation8 + $0x18ac] ss:$12 sps:$4 sm:$0xff]  }
 0x3b0   :  { %9298 = vmatpush2.bf16.msra.mxu0 %v13501_v55  ;;  %v13542_v55 = vld [vmem:[#allocation8 + $0x1a2c] ss:$12 sps:$4 sm:$0xff]  }
 0x3b1   :  { %9341 = vmatpush2.bf16.msra.mxu1 %v13504_v14  ;;  %9299 = vmatprep.subr.bf16.mxu0 %v13509_v18  ;;  %v13537_v14 = vld [vmem:[#allocation8 + $0x18a8] ss:$12 sps:$4 sm:$0xff]  }
 0x3b2   :  { %9342 = vmatprep.subr.bf16.mxu1 %v13512_v22  ;;  %v13540_v18 = vld [vmem:[#allocation8 + $0x1a28] ss:$12 sps:$4 sm:$0xff]  }
 0x3b3   :  { %v13545_v22 = vld [vmem:[#allocation8 + $0x1894] ss:$12 sps:$4 sm:$0xff]  }
 0x3b4   :  { %9300 = vmatpush2.bf16.msra.mxu0 %v13507_v10  ;;  %v14547_v10 = vpack.c.bf16 %v14477_v4, %v14457_v28  ;;  %v13554_v28 = vld [vmem:[#allocation8 + $0x19fc] ss:$12 sps:$4 sm:$0xff]   ;;  %v13549_v4 = vld [vmem:[#allocation8 + $0x1878] ss:$12 sps:$4 sm:$0xff]  }
 0x3b5   :  { %9343 = vmatpush2.bf16.msra.mxu1 %v13510_v30  ;;  %9301 = vmatprep.subr.bf16.mxu0 %v13515_v26  ;;  %v13548_v30 = vld [vmem:[#allocation8 + $0x1a14] ss:$12 sps:$4 sm:$0xff]   ;;  %v14552_v26 = vpack.c.bf16 %v14481_v32, %v14459_v29  ;;  %v13552_v29 = vld [vmem:[#allocation8 + $0x19f8] ss:$12 sps:$4 sm:$0xff]  }
 0x3b6   :  { %9344 = vmatprep.subr.bf16.mxu1 %v13518_v8  ;;  %v13543_v8 = vld [vmem:[#allocation8 + $0x1890] ss:$12 sps:$4 sm:$0xff]  }
 0x3b7   :  { %v13557_v32 = vld [vmem:[#allocation8 + $0x1864] ss:$12 sps:$4 sm:$0xff]  }
 0x3b8   :  { %9302 = vmatpush2.bf16.msra.mxu0 %v13513_v20  ;;  %v13546_v20 = vld [vmem:[#allocation8 + $0x1a10] ss:$12 sps:$4 sm:$0xff]  }
 0x3b9   :  { %9345 = vmatpush2.bf16.msra.mxu1 %v13516_v6  ;;  %9303 = vmatprep.subr.bf16.mxu0 %v13521_v54  ;;  %v13551_v6 = vld [vmem:[#allocation8 + $0x187c] ss:$12 sps:$4 sm:$0xff]   ;;  %v13560_v54 = vld [vmem:[#allocation8 + $0x19e4] ss:$12 sps:$4 sm:$0xff]  }
 0x3ba   :  { %9346 = vmatprep.subr.bf16.mxu1 %v13524_v15  ;;  %v13555_v15 = vld [vmem:[#allocation8 + $0x1860] ss:$12 sps:$4 sm:$0xff]  }
 0x3bc   :  { %9304 = vmatpush2.bf16.msra.mxu0 %v13519_v42  ;;  %v13558_v42 = vld [vmem:[#allocation8 + $0x19e0] ss:$12 sps:$4 sm:$0xff]  }
 0x3bd   :  { %9347 = vmatpush2.bf16.msra.mxu1 %v13522_v46  ;;  %9305 = vmatprep.subr.bf16.mxu0 %v13527_v51  ;;  %v13563_v46 = vld [vmem:[#allocation8 + $0x184c] ss:$12 sps:$4 sm:$0xff]  }
 0x3be   :  { %9348 = vmatprep.subr.bf16.mxu1 %v13530_v13  ;;  %v13566_v51 = vld [vmem:[#allocation8 + $0x19cc] ss:$12 sps:$4 sm:$0xff]   ;;  %v13561_v13 = vld [vmem:[#allocation8 + $0x1848] ss:$12 sps:$4 sm:$0xff]  }
 0x3c0   :  { %9306 = vmatpush2.bf16.msra.mxu0 %v13525_v3  ;;  %v13564_v3 = vld [vmem:[#allocation8 + $0x19c8] ss:$12 sps:$4 sm:$0xff]  }
 0x3c1   :  { %9349 = vmatpush2.bf16.msra.mxu1 %v13528_v41  ;;  %9307 = vmatprep.subr.bf16.mxu0 %v13533_v52  ;;  %v13569_v41 = vld [vmem:[#allocation8 + $0x1834] ss:$12 sps:$4 sm:$0xff]  }
 0x3c2   :  { %9350 = vmatprep.subr.bf16.mxu1 %v13536_v61  ;;  %v13572_v52 = vld [vmem:[#allocation8 + $0x19b4] ss:$12 sps:$4 sm:$0xff]   ;;  %v13567_v61 = vld [vmem:[#allocation8 + $0x1830] ss:$12 sps:$4 sm:$0xff]  }
 0x3c4   :  { %9308 = vmatpush2.bf16.msra.mxu0 %v13531_v43  ;;  %v13570_v43 = vld [vmem:[#allocation8 + $0x19b0] ss:$12 sps:$4 sm:$0xff]  }
 0x3c5   :  { %9351 = vmatpush2.bf16.msra.mxu1 %v13534_v50  ;;  %9363 = vmatprep.subr.bf16.mxu0 %v13539_v5  ;;  %v13575_v50 = vld [vmem:[#allocation8 + $0x181c] ss:$12 sps:$4 sm:$0xff]  }
 0x3c6   :  { %9406 = vmatprep.subr.bf16.mxu1 %v13542_v55  ;;  %v13578_v5 = vld [vmem:[#allocation8 + $0x199c] ss:$12 sps:$4 sm:$0xff]   ;;  %v13573_v55 = vld [vmem:[#allocation8 + $0x1818] ss:$12 sps:$4 sm:$0xff]  }
 0x3c7   :  { %9310 = vmatmul.mubr.bf16.vlgmr.msra.gmra.mxu0 %v14449_v59 }
 0x3c8   :  { %9353 = vmatmul.mubr.bf16.vlgmr.msra.gmra.mxu1 %v14451_v60  ;;  %9364 = vmatpush1.bf16.msra.mxu0 %v13537_v14  ;;  %v13576_v14 = vld [vmem:[#allocation8 + $0x1998] ss:$12 sps:$4 sm:$0xff]  }
 0x3c9   :  { %9395 = vmatprep.mubr.bf16.mxu0 %v14547_v10  ;;  %9407 = vmatpush1.bf16.msra.mxu1 %v13540_v18  ;;  %v13581_v18 = vld [vmem:[#allocation8 + $0x1804] ss:$12 sps:$4 sm:$0xff]  }
 0x3ca   :  { %9438 = vmatprep.mubr.bf16.mxu1 %v14552_v26  ;;  %9365 = vmatprep.subr.bf16.mxu0 %v13545_v22  ;;  %v13584_v22 = vld [vmem:[#allocation8 + $0x1984] ss:$12 sps:$4 sm:$0xff]  }
 0x3cb   :  { %9408 = vmatprep.subr.bf16.mxu1 %v13548_v30  ;;  %v13579_v30 = vld [vmem:[#allocation8 + $0x1800] ss:$12 sps:$4 sm:$0xff]  }
 0x3cc   :  { %9366 = vmatpush1.bf16.msra.mxu0 %v13543_v8  ;;  %v13582_v8 = vld [vmem:[#allocation8 + $0x1980] ss:$12 sps:$4 sm:$0xff]  }
 0x3cd   :  { %9409 = vmatpush1.bf16.msra.mxu1 %v13546_v20  ;;  %9367 = vmatprep.subr.bf16.mxu0 %v13551_v6  ;;  %v13587_v20 = vld [vmem:[#allocation8 + $0x196c] ss:$12 sps:$4 sm:$0xff]  }
 0x3ce   :  { %9410 = vmatprep.subr.bf16.mxu1 %v13554_v28  ;;  %v13590_v6 = vld [vmem:[#allocation8 + $0x1aec] ss:$12 sps:$4 sm:$0xff]   ;;  %v13585_v28 = vld [vmem:[#allocation8 + $0x1968] ss:$12 sps:$4 sm:$0xff]  }
 0x3d0   :  { %9368 = vmatpush1.bf16.msra.mxu0 %v13549_v4  ;;  %v13588_v4 = vld [vmem:[#allocation8 + $0x1ae8] ss:$12 sps:$4 sm:$0xff]  }
 0x3d1   :  { %9411 = vmatpush1.bf16.msra.mxu1 %v13552_v29  ;;  %9369 = vmatprep.subr.bf16.mxu0 %v13557_v32  ;;  %v13593_v29 = vld [vmem:[#allocation8 + $0x1954] ss:$12 sps:$4 sm:$0xff]  }
 0x3d2   :  { %9412 = vmatprep.subr.bf16.mxu1 %v13560_v54  ;;  %v13596_v32 = vld [vmem:[#allocation8 + $0x1ad4] ss:$12 sps:$4 sm:$0xff]   ;;  %v13591_v54 = vld [vmem:[#allocation8 + $0x1950] ss:$12 sps:$4 sm:$0xff]  }
 0x3d4   :  { %9370 = vmatpush1.bf16.msra.mxu0 %v13555_v15  ;;  %v13594_v15 = vld [vmem:[#allocation8 + $0x1ad0] ss:$12 sps:$4 sm:$0xff]  }
 0x3d5   :  { %9413 = vmatpush1.bf16.msra.mxu1 %v13558_v42  ;;  %9371 = vmatprep.subr.bf16.mxu0 %v13563_v46  ;;  %v13599_v42 = vld [vmem:[#allocation8 + $0x193c] ss:$12 sps:$4 sm:$0xff]  }
 0x3d6   :  { %9414 = vmatprep.subr.bf16.mxu1 %v13566_v51  ;;  %v13602_v46 = vld [vmem:[#allocation8 + $0x1abc] ss:$12 sps:$4 sm:$0xff]   ;;  %v13597_v51 = vld [vmem:[#allocation8 + $0x1938] ss:$12 sps:$4 sm:$0xff]  }
 0x3d8   :  { %9372 = vmatpush1.bf16.msra.mxu0 %v13561_v13  ;;  %v13600_v13 = vld [vmem:[#allocation8 + $0x1ab8] ss:$12 sps:$4 sm:$0xff]  }
 0x3d9   :  { %9415 = vmatpush1.bf16.msra.mxu1 %v13564_v3  ;;  %9373 = vmatprep.subr.bf16.mxu0 %v13569_v41  ;;  %v13605_v3 = vld [vmem:[#allocation8 + $0x1924] ss:$12 sps:$4 sm:$0xff]  }
 0x3da   :  { %9416 = vmatprep.subr.bf16.mxu1 %v13572_v52  ;;  %v13608_v41 = vld [vmem:[#allocation8 + $0x1aa4] ss:$12 sps:$4 sm:$0xff]   ;;  %v13603_v52 = vld [vmem:[#allocation8 + $0x1920] ss:$12 sps:$4 sm:$0xff]  }
 0x3dc   :  { %9374 = vmatpush1.bf16.msra.mxu0 %v13567_v61  ;;  %v13606_v61 = vld [vmem:[#allocation8 + $0x1aa0] ss:$12 sps:$4 sm:$0xff]  }
 0x3dd   :  { %9417 = vmatpush1.bf16.msra.mxu1 %v13570_v43  ;;  %9375 = vmatprep.subr.bf16.mxu0 %v13575_v50  ;;  %v13611_v43 = vld [vmem:[#allocation8 + $0x190c] ss:$12 sps:$4 sm:$0xff]  }
 0x3de   :  { %9418 = vmatprep.subr.bf16.mxu1 %v13578_v5  ;;  %v13614_v50 = vld [vmem:[#allocation8 + $0x1a8c] ss:$12 sps:$4 sm:$0xff]   ;;  %v13609_v5 = vld [vmem:[#allocation8 + $0x1908] ss:$12 sps:$4 sm:$0xff]  }
 0x3e0   :  { %9376 = vmatpush1.bf16.msra.mxu0 %v13573_v55  ;;  %v13612_v55 = vld [vmem:[#allocation8 + $0x1a88] ss:$12 sps:$4 sm:$0xff]  }
 0x3e1   :  { %9419 = vmatpush1.bf16.msra.mxu1 %v13576_v14  ;;  %9377 = vmatprep.subr.bf16.mxu0 %v13581_v18  ;;  %v13617_v14 = vld [vmem:[#allocation8 + $0x18f4] ss:$12 sps:$4 sm:$0xff]  }
 0x3e2   :  { %9420 = vmatprep.subr.bf16.mxu1 %v13584_v22  ;;  %v13620_v18 = vld [vmem:[#allocation8 + $0x1a74] ss:$12 sps:$4 sm:$0xff]   ;;  %v13615_v22 = vld [vmem:[#allocation8 + $0x18f0] ss:$12 sps:$4 sm:$0xff]  }
 0x3e4   :  { %9378 = vmatpush1.bf16.msra.mxu0 %v13579_v30  ;;  %v13618_v30 = vld [vmem:[#allocation8 + $0x1a70] ss:$12 sps:$4 sm:$0xff]  }
 0x3e5   :  { %9421 = vmatpush1.bf16.msra.mxu1 %v13582_v8  ;;  %9379 = vmatprep.subr.bf16.mxu0 %v13587_v20  ;;  %v13623_v8 = vld [vmem:[#allocation8 + $0x18dc] ss:$12 sps:$4 sm:$0xff]  }
 0x3e6   :  { %9422 = vmatprep.subr.bf16.mxu1 %v13590_v6  ;;  %v13626_v20 = vld [vmem:[#allocation8 + $0x1a5c] ss:$12 sps:$4 sm:$0xff]   ;;  %v13621_v6 = vld [vmem:[#allocation8 + $0x18d8] ss:$12 sps:$4 sm:$0xff]  }
 0x3e8   :  { %9380 = vmatpush2.bf16.msra.mxu0 %v13585_v28  ;;  %v13624_v28 = vld [vmem:[#allocation8 + $0x1a58] ss:$12 sps:$4 sm:$0xff]  }
 0x3e9   :  { %9423 = vmatpush2.bf16.msra.mxu1 %v13588_v4  ;;  %9381 = vmatprep.subr.bf16.mxu0 %v13593_v29  ;;  %v13629_v4 = vld [vmem:[#allocation8 + $0x18c4] ss:$12 sps:$4 sm:$0xff]  }
 0x3ea   :  { %9424 = vmatprep.subr.bf16.mxu1 %v13596_v32  ;;  %v13632_v29 = vld [vmem:[#allocation8 + $0x1a44] ss:$12 sps:$4 sm:$0xff]   ;;  %v13627_v32 = vld [vmem:[#allocation8 + $0x18c0] ss:$12 sps:$4 sm:$0xff]  }
 0x3ec   :  { %9382 = vmatpush2.bf16.msra.mxu0 %v13591_v54  ;;  %v13630_v54 = vld [vmem:[#allocation8 + $0x1a40] ss:$12 sps:$4 sm:$0xff]  }
 0x3ed   :  { %9425 = vmatpush2.bf16.msra.mxu1 %v13594_v15  ;;  %9383 = vmatprep.subr.bf16.mxu0 %v13599_v42  ;;  %v13633_v15 = vld [vmem:[#allocation8 + $0x170] ss:$12 sps:$4 sm:$0xff]  }
 0x3ee   :  { %9426 = vmatprep.subr.bf16.mxu1 %v13602_v46  ;;  %v13634_v42 = vld [vmem:[#allocation8 + $0x2f0] ss:$12 sps:$4 sm:$0xff]  }
 0x3ef   :  { %v13635_v46 = vld [vmem:[#allocation8 + $0xb0] ss:$12 sps:$4 sm:$0xff]  }
 0x3f0   :  { %9384 = vmatpush2.bf16.msra.mxu0 %v13597_v51  ;;  %v13636_v51 = vld [vmem:[#allocation8 + $0x230] ss:$12 sps:$4 sm:$0xff]  }
 0x3f1   :  { %9427 = vmatpush2.bf16.msra.mxu1 %v13600_v13  ;;  %9385 = vmatprep.subr.bf16.mxu0 %v13605_v3  ;;  %v13637_v13 = vld [vmem:[#allocation8 + $0x158] ss:$12 sps:$4 sm:$0xff]  }
 0x3f2   :  { %9428 = vmatprep.subr.bf16.mxu1 %v13608_v41  ;;  %v13638_v3 = vld [vmem:[#allocation8 + $0x2d8] ss:$12 sps:$4 sm:$0xff]  }
 0x3f3   :  { %v13639_v41 = vld [vmem:[#allocation8 + $0x98] ss:$12 sps:$4 sm:$0xff]  }
 0x3f4   :  { %9386 = vmatpush2.bf16.msra.mxu0 %v13603_v52  ;;  %v13640_v52 = vld [vmem:[#allocation8 + $0x218] ss:$12 sps:$4 sm:$0xff]  }
 0x3f5   :  { %9429 = vmatpush2.bf16.msra.mxu1 %v13606_v61  ;;  %9387 = vmatprep.subr.bf16.mxu0 %v13611_v43  ;;  %v13641_v61 = vld [vmem:[#allocation8 + $0x140] ss:$12 sps:$4 sm:$0xff]  }
 0x3f6   :  { %9430 = vmatprep.subr.bf16.mxu1 %v13614_v50  ;;  %v13642_v43 = vld [vmem:[#allocation8 + $0x2c0] ss:$12 sps:$4 sm:$0xff]  }
 0x3f7   :  { %v13643_v50 = vld [vmem:[#allocation8 + $0x80] ss:$12 sps:$4 sm:$0xff]  }
 0x3f8   :  { %9388 = vmatpush2.bf16.msra.mxu0 %v13609_v5  ;;  %v13644_v5 = vld [vmem:[#allocation8 + $0x200] ss:$12 sps:$4 sm:$0xff]  }
 0x3f9   :  { %9431 = vmatpush2.bf16.msra.mxu1 %v13612_v55  ;;  %9389 = vmatprep.subr.bf16.mxu0 %v13617_v14  ;;  %v13645_v55 = vld [vmem:[#allocation8 + $0x128] ss:$12 sps:$4 sm:$0xff]  }
 0x3fa   :  { %9432 = vmatprep.subr.bf16.mxu1 %v13620_v18  ;;  %v13646_v14 = vld [vmem:[#allocation8 + $0x2a8] ss:$12 sps:$4 sm:$0xff]  }
 0x3fb   :  { %v13647_v18 = vld [vmem:[#allocation8 + $0x68] ss:$12 sps:$4 sm:$0xff]  }
 0x3fc   :  { %9390 = vmatpush2.bf16.msra.mxu0 %v13615_v22  ;;  %v13649_v22 = vld [vmem:[#allocation8 + $0x110] ss:$12 sps:$4 sm:$0xff]  }
 0x3fd   :  { %9433 = vmatpush2.bf16.msra.mxu1 %v13618_v30  ;;  %9391 = vmatprep.subr.bf16.mxu0 %v13623_v8  ;;  %v13650_v30 = vld [vmem:[#allocation8 + $0x290] ss:$12 sps:$4 sm:$0xff]  }
 0x3fe   :  { %9434 = vmatprep.subr.bf16.mxu1 %v13626_v20  ;;  %v13652_v8 = vld [vmem:[#allocation8 + $0x1d0] ss:$12 sps:$4 sm:$0xff]   ;;  %v13653_v20 = vld [vmem:[#allocation8 + $0xf8] ss:$12 sps:$4 sm:$0xff]  }
 0x400   :  { %9392 = vmatpush2.bf16.msra.mxu0 %v13621_v6  ;;  %v13654_v6 = vld [vmem:[#allocation8 + $0x278] ss:$12 sps:$4 sm:$0xff]  }
 0x401   :  { %9435 = vmatpush2.bf16.msra.mxu1 %v13624_v28  ;;  %9393 = vmatprep.subr.bf16.mxu0 %v13629_v4  ;;  %v13655_v28 = vld [vmem:[#allocation8 + $0x38] ss:$12 sps:$4 sm:$0xff]  }
 0x402   :  { %9436 = vmatprep.subr.bf16.mxu1 %v13632_v29  ;;  %v13656_v4 = vld [vmem:[#allocation8 + $0x1b8] ss:$12 sps:$4 sm:$0xff]   ;;  %v13657_v29 = vld [vmem:[#allocation8 + $0xe0] ss:$12 sps:$4 sm:$0xff]  }
 0x404   :  { %9394 = vmatpush2.bf16.msra.mxu0 %v13627_v32  ;;  %v13658_v32 = vld [vmem:[#allocation8 + $0x260] ss:$12 sps:$4 sm:$0xff]  }
 0x405   :  { %9437 = vmatpush2.bf16.msra.mxu1 %v13630_v54  ;;  %11738 = vmatprep.subr.bf16.mxu0 %v13633_v15  ;;  %v13659_v54 = vld [vmem:[#allocation8 + $0x20] ss:$12 sps:$4 sm:$0xff]  }
 0x406   :  { %11760 = vmatprep.subr.bf16.mxu1 %v13634_v42  ;;  %v13660_v15 = vld [vmem:[#allocation8 + $0x1a0] ss:$12 sps:$4 sm:$0xff]   ;;  %v13661_v42 = vld [vmem:[#allocation8 + $0xc8] ss:$12 sps:$4 sm:$0xff]  }
 0x407   :  { %9396 = vmatmul.mubr.bf16.vlgmr.msra.gmra.mxu0 %v14461_v47 }
 0x408   :  { %9439 = vmatmul.mubr.bf16.vlgmr.msra.gmra.mxu1 %v14463_v48  ;;  %11739 = vmatpush3.bf16.msra.mxu0 %v13635_v46  ;;  %v13662_v46 = vld [vmem:[#allocation8 + $0x248] ss:$12 sps:$4 sm:$0xff]  }
 0x409   :  { %9481 = vmatprep.mubr.bf16.mxu0 %v14369_v37  ;;  %11761 = vmatpush3.bf16.msra.mxu1 %v13636_v51  ;;  %v13648_v37 = vld [vmem:[#allocation8 + $0x1e8] ss:$12 sps:$4 sm:$0xff]  }
 0x40a   :  { %9522 = vmatprep.mubr.bf16.mxu1 %v14361_v27  ;;  %11740 = vmatprep.subr.bf16.mxu0 %v13637_v13  ;;  %v13651_v27 = vld [vmem:[#allocation8 + $0x50] ss:$12 sps:$4 sm:$0xff]   ;;  %v13663_v51 = vld [vmem:[#allocation8 + $0x8] ss:$12 sps:$4 sm:$0xff]  }
 0x40b   :  { %11762 = vmatprep.subr.bf16.mxu1 %v13638_v3  ;;  %v13664_v13 = vld [vmem:[#allocation8 + $0x188] ss:$12 sps:$4 sm:$0xff]   ;;  %v13665_v3 = vld [vmem:[#allocation8 + $0x470] ss:$12 sps:$4 sm:$0xff]  }
 0x40c   :  { %11741 = vmatpush3.bf16.msra.mxu0 %v13639_v41  ;;  %v13666_v41 = vld [vmem:[#allocation8 + $0x5f0] ss:$12 sps:$4 sm:$0xff]  }
 0x40d   :  { %11763 = vmatpush3.bf16.msra.mxu1 %v13640_v52  ;;  %11742 = vmatprep.subr.bf16.mxu0 %v13641_v61  ;;  %v13667_v52 = vld [vmem:[#allocation8 + $0x3b0] ss:$12 sps:$4 sm:$0xff]  }
 0x40e   :  { %11764 = vmatprep.subr.bf16.mxu1 %v13642_v43  ;;  %v13668_v61 = vld [vmem:[#allocation8 + $0x530] ss:$12 sps:$4 sm:$0xff]   ;;  %v13669_v43 = vld [vmem:[#allocation8 + $0x458] ss:$12 sps:$4 sm:$0xff]  }
 0x410   :  { %11743 = vmatpush3.bf16.msra.mxu0 %v13643_v50  ;;  %v13670_v50 = vld [vmem:[#allocation8 + $0x5d8] ss:$12 sps:$4 sm:$0xff]  }
 0x411   :  { %11765 = vmatpush3.bf16.msra.mxu1 %v13644_v5  ;;  %11744 = vmatprep.subr.bf16.mxu0 %v13645_v55  ;;  %v13671_v5 = vld [vmem:[#allocation8 + $0x398] ss:$12 sps:$4 sm:$0xff]  }
 0x412   :  { %11766 = vmatprep.subr.bf16.mxu1 %v13646_v14  ;;  %v13672_v55 = vld [vmem:[#allocation8 + $0x518] ss:$12 sps:$4 sm:$0xff]   ;;  %v13673_v14 = vld [vmem:[#allocation8 + $0x440] ss:$12 sps:$4 sm:$0xff]  }
 0x414   :  { %11745 = vmatpush3.bf16.msra.mxu0 %v13647_v18  ;;  %v13674_v18 = vld [vmem:[#allocation8 + $0x5c0] ss:$12 sps:$4 sm:$0xff]  }
 0x415   :  { %11767 = vmatpush3.bf16.msra.mxu1 %v13648_v37  ;;  %11746 = vmatprep.subr.bf16.mxu0 %v13649_v22  ;;  %v13675_v37 = vld [vmem:[#allocation8 + $0x380] ss:$12 sps:$4 sm:$0xff]   ;;  %v13677_v22 = vld [vmem:[#allocation8 + $0x428] ss:$12 sps:$4 sm:$0xff]  }
 0x416   :  { %11768 = vmatprep.subr.bf16.mxu1 %v13650_v30  ;;  %v13679_v30 = vld [vmem:[#allocation8 + $0x368] ss:$12 sps:$4 sm:$0xff]  }
 0x418   :  { %11747 = vmatpush3.bf16.msra.mxu0 %v13651_v27  ;;  %v13681_v27 = vld [vmem:[#allocation8 + $0x410] ss:$12 sps:$4 sm:$0xff]  }
 0x419   :  { %11769 = vmatpush3.bf16.msra.mxu1 %v13652_v8  ;;  %11748 = vmatprep.subr.bf16.mxu0 %v13653_v20  ;;  %v13682_v8 = vld [vmem:[#allocation8 + $0x590] ss:$12 sps:$4 sm:$0xff]  }
 0x41a   :  { %11770 = vmatprep.subr.bf16.mxu1 %v13654_v6  ;;  %v13684_v20 = vld [vmem:[#allocation8 + $0x4d0] ss:$12 sps:$4 sm:$0xff]   ;;  %v13685_v6 = vld [vmem:[#allocation8 + $0x3f8] ss:$12 sps:$4 sm:$0xff]  }
 0x41c   :  { %11749 = vmatpush3.bf16.msra.mxu0 %v13655_v28  ;;  %v13686_v28 = vld [vmem:[#allocation8 + $0x578] ss:$12 sps:$4 sm:$0xff]  }
 0x41d   :  { %11771 = vmatpush3.bf16.msra.mxu1 %v13656_v4  ;;  %11750 = vmatprep.subr.bf16.mxu0 %v13657_v29  ;;  %v13687_v4 = vld [vmem:[#allocation8 + $0x338] ss:$12 sps:$4 sm:$0xff]  }
 0x41e   :  { %11772 = vmatprep.subr.bf16.mxu1 %v13658_v32  ;;  %v13688_v29 = vld [vmem:[#allocation8 + $0x4b8] ss:$12 sps:$4 sm:$0xff]   ;;  %v13689_v32 = vld [vmem:[#allocation8 + $0x3e0] ss:$12 sps:$4 sm:$0xff]  }
 0x420   :  { %11751 = vmatpush3.bf16.msra.mxu0 %v13659_v54  ;;  %v13690_v54 = vld [vmem:[#allocation8 + $0x560] ss:$12 sps:$4 sm:$0xff]  }
 0x421   :  { %11773 = vmatpush3.bf16.msra.mxu1 %v13660_v15  ;;  %11752 = vmatprep.subr.bf16.mxu0 %v13661_v42  ;;  %v13691_v15 = vld [vmem:[#allocation8 + $0x320] ss:$12 sps:$4 sm:$0xff]  }
 0x422   :  { %11774 = vmatprep.subr.bf16.mxu1 %v13662_v46  ;;  %v13692_v42 = vld [vmem:[#allocation8 + $0x4a0] ss:$12 sps:$4 sm:$0xff]   ;;  %v13693_v46 = vld [vmem:[#allocation8 + $0x3c8] ss:$12 sps:$4 sm:$0xff]  }
 0x424   :  { %11753 = vmatpush3.bf16.msra.mxu0 %v13663_v51  ;;  %v13694_v51 = vld [vmem:[#allocation8 + $0x548] ss:$12 sps:$4 sm:$0xff]  }
 0x425   :  { %11775 = vmatpush3.bf16.msra.mxu1 %v13664_v13  ;;  %11782 = vmatprep.subr.bf16.mxu0 %v13665_v3  ;;  %v13695_v13 = vld [vmem:[#allocation8 + $0x308] ss:$12 sps:$4 sm:$0xff]  }
 0x426   :  { %11804 = vmatprep.subr.bf16.mxu1 %v13666_v41  ;;  %v13696_v3 = vld [vmem:[#allocation8 + $0x488] ss:$12 sps:$4 sm:$0xff]   ;;  %v13697_v41 = vld [vmem:[#allocation8 + $0x770] ss:$12 sps:$4 sm:$0xff]  }
 0x427   :  { %9482 = vmatmul.mubr.bf16.vlgmr.msra.gmra.mxu0 %v14395_v9  ;;  %v13676_v9 = vld [vmem:[#allocation8 + $0x500] ss:$12 sps:$4 sm:$0xff]  }
 0x428   :  { %9523 = vmatmul.mubr.bf16.vlgmr.msra.gmra.mxu1 %v14317_v53  ;;  %11783 = vmatpush3.bf16.msra.mxu0 %v13667_v52  ;;  %v13678_v53 = vld [vmem:[#allocation8 + $0x5a8] ss:$12 sps:$4 sm:$0xff]   ;;  %v13698_v52 = vld [vmem:[#allocation8 + $0x8f0] ss:$12 sps:$4 sm:$0xff]  }
 0x429   :  { %9563 = vmatprep.mubr.bf16.mxu0 %v14399_v12  ;;  %11805 = vmatpush3.bf16.msra.mxu1 %v13668_v61  ;;  %v13680_v12 = vld [vmem:[#allocation8 + $0x4e8] ss:$12 sps:$4 sm:$0xff]   ;;  %v13699_v61 = vld [vmem:[#allocation8 + $0x6b0] ss:$12 sps:$4 sm:$0xff]  }
 0x42a   :  { %9604 = vmatprep.mubr.bf16.mxu1 %v14403_v25  ;;  %11784 = vmatprep.subr.bf16.mxu0 %v13669_v43  ;;  %v13683_v25 = vld [vmem:[#allocation8 + $0x350] ss:$12 sps:$4 sm:$0xff]  }
 0x42b   :  { %11806 = vmatprep.subr.bf16.mxu1 %v13670_v50  ;;  %v13700_v43 = vld [vmem:[#allocation8 + $0x830] ss:$12 sps:$4 sm:$0xff]   ;;  %v13701_v50 = vld [vmem:[#allocation8 + $0x758] ss:$12 sps:$4 sm:$0xff]  }
 0x42c   :  { %11785 = vmatpush3.bf16.msra.mxu0 %v13671_v5  ;;  %v13702_v5 = vld [vmem:[#allocation8 + $0x8d8] ss:$12 sps:$4 sm:$0xff]  }
 0x42d   :  { %11807 = vmatpush3.bf16.msra.mxu1 %v13672_v55  ;;  %11786 = vmatprep.subr.bf16.mxu0 %v13673_v14  ;;  %v13703_v55 = vld [vmem:[#allocation8 + $0x698] ss:$12 sps:$4 sm:$0xff]  }
 0x42e   :  { %11808 = vmatprep.subr.bf16.mxu1 %v13674_v18  ;;  %v13704_v14 = vld [vmem:[#allocation8 + $0x818] ss:$12 sps:$4 sm:$0xff]   ;;  %v13705_v18 = vld [vmem:[#allocation8 + $0x740] ss:$12 sps:$4 sm:$0xff]  }
 0x430   :  { %11787 = vmatpush3.bf16.msra.mxu0 %v13675_v37  ;;  %v13706_v37 = vld [vmem:[#allocation8 + $0x8c0] ss:$12 sps:$4 sm:$0xff]  }
 0x431   :  { %11809 = vmatpush3.bf16.msra.mxu1 %v13676_v9  ;;  %11788 = vmatprep.subr.bf16.mxu0 %v13677_v22  ;;  %v13707_v9 = vld [vmem:[#allocation8 + $0x680] ss:$12 sps:$4 sm:$0xff]   ;;  %v13709_v22 = vld [vmem:[#allocation8 + $0x728] ss:$12 sps:$4 sm:$0xff]  }
 0x432   :  { %11810 = vmatprep.subr.bf16.mxu1 %v13678_v53  ;;  %v13711_v53 = vld [vmem:[#allocation8 + $0x668] ss:$12 sps:$4 sm:$0xff]  }
 0x434   :  { %11789 = vmatpush3.bf16.msra.mxu0 %v13679_v30  ;;  %v13713_v30 = vld [vmem:[#allocation8 + $0x710] ss:$12 sps:$4 sm:$0xff]  }
 0x435   :  { %11811 = vmatpush3.bf16.msra.mxu1 %v13680_v12  ;;  %11790 = vmatprep.subr.bf16.mxu0 %v13681_v27  ;;  %v13714_v12 = vld [vmem:[#allocation8 + $0x890] ss:$12 sps:$4 sm:$0xff]  }
 0x436   :  { %11812 = vmatprep.subr.bf16.mxu1 %v13682_v8  ;;  %v13716_v27 = vld [vmem:[#allocation8 + $0x7d0] ss:$12 sps:$4 sm:$0xff]   ;;  %v13717_v8 = vld [vmem:[#allocation8 + $0x6f8] ss:$12 sps:$4 sm:$0xff]  }
 0x438   :  { %11791 = vmatpush3.bf16.msra.mxu0 %v13683_v25  ;;  %v13718_v25 = vld [vmem:[#allocation8 + $0x878] ss:$12 sps:$4 sm:$0xff]  }
 0x439   :  { %11813 = vmatpush3.bf16.msra.mxu1 %v13684_v20  ;;  %11792 = vmatprep.subr.bf16.mxu0 %v13685_v6  ;;  %v13719_v20 = vld [vmem:[#allocation8 + $0x638] ss:$12 sps:$4 sm:$0xff]  }
 0x43a   :  { %11814 = vmatprep.subr.bf16.mxu1 %v13686_v28  ;;  %v13720_v6 = vld [vmem:[#allocation8 + $0x7b8] ss:$12 sps:$4 sm:$0xff]   ;;  %v13721_v28 = vld [vmem:[#allocation8 + $0x6e0] ss:$12 sps:$4 sm:$0xff]  }
 0x43c   :  { %11793 = vmatpush3.bf16.msra.mxu0 %v13687_v4  ;;  %v13722_v4 = vld [vmem:[#allocation8 + $0x860] ss:$12 sps:$4 sm:$0xff]  }
 0x43d   :  { %11815 = vmatpush3.bf16.msra.mxu1 %v13688_v29  ;;  %11794 = vmatprep.subr.bf16.mxu0 %v13689_v32  ;;  %v13723_v29 = vld [vmem:[#allocation8 + $0x620] ss:$12 sps:$4 sm:$0xff]  }
 0x43e   :  { %11816 = vmatprep.subr.bf16.mxu1 %v13690_v54  ;;  %v13724_v32 = vld [vmem:[#allocation8 + $0x7a0] ss:$12 sps:$4 sm:$0xff]   ;;  %v13725_v54 = vld [vmem:[#allocation8 + $0x6c8] ss:$12 sps:$4 sm:$0xff]  }
 0x440   :  { %11795 = vmatpush3.bf16.msra.mxu0 %v13691_v15  ;;  %v13726_v15 = vld [vmem:[#allocation8 + $0x848] ss:$12 sps:$4 sm:$0xff]  }
 0x441   :  { %11817 = vmatpush3.bf16.msra.mxu1 %v13692_v42  ;;  %11796 = vmatprep.subr.bf16.mxu0 %v13693_v46  ;;  %v13727_v42 = vld [vmem:[#allocation8 + $0x608] ss:$12 sps:$4 sm:$0xff]  }
 0x442   :  { %11818 = vmatprep.subr.bf16.mxu1 %v13694_v51  ;;  %v13728_v46 = vld [vmem:[#allocation8 + $0x788] ss:$12 sps:$4 sm:$0xff]   ;;  %v13729_v51 = vld [vmem:[#allocation8 + $0xa70] ss:$12 sps:$4 sm:$0xff]  }
 0x444   :  { %11797 = vmatpush3.bf16.msra.mxu0 %v13695_v13  ;;  %v13730_v13 = vld [vmem:[#allocation8 + $0xbf0] ss:$12 sps:$4 sm:$0xff]  }
 0x445   :  { %11819 = vmatpush3.bf16.msra.mxu1 %v13696_v3  ;;  %11826 = vmatprep.subr.bf16.mxu0 %v13697_v41  ;;  %v13731_v3 = vld [vmem:[#allocation8 + $0x9b0] ss:$12 sps:$4 sm:$0xff]  }
 0x446   :  { %11848 = vmatprep.subr.bf16.mxu1 %v13698_v52  ;;  %v13732_v41 = vld [vmem:[#allocation8 + $0xb30] ss:$12 sps:$4 sm:$0xff]   ;;  %v13733_v52 = vld [vmem:[#allocation8 + $0xa58] ss:$12 sps:$4 sm:$0xff]  }
 0x447   :  { %9564 = vmatmul.mubr.bf16.vlgmr.msra.gmra.mxu0 %v14337_v34  ;;  %v13708_v34 = vld [vmem:[#allocation8 + $0x800] ss:$12 sps:$4 sm:$0xff]  }
 0x448   :  { %9605 = vmatmul.mubr.bf16.vlgmr.msra.gmra.mxu1 %v14339_v36  ;;  %11827 = vmatpush3.bf16.msra.mxu0 %v13699_v61  ;;  %v13710_v36 = vld [vmem:[#allocation8 + $0x8a8] ss:$12 sps:$4 sm:$0xff]   ;;  %v13734_v61 = vld [vmem:[#allocation8 + $0xbd8] ss:$12 sps:$4 sm:$0xff]  }
 0x449   :  { %9645 = vmatprep.mubr.bf16.mxu0 %v14435_v35  ;;  %11849 = vmatpush3.bf16.msra.mxu1 %v13700_v43  ;;  %v13712_v35 = vld [vmem:[#allocation8 + $0x7e8] ss:$12 sps:$4 sm:$0xff]   ;;  %v13735_v43 = vld [vmem:[#allocation8 + $0x998] ss:$12 sps:$4 sm:$0xff]  }
 0x44a   :  { %9686 = vmatprep.mubr.bf16.mxu1 %v14444_v56  ;;  %11828 = vmatprep.subr.bf16.mxu0 %v13701_v50  ;;  %v13715_v56 = vld [vmem:[#allocation8 + $0x650] ss:$12 sps:$4 sm:$0xff]   ;;  %v13736_v50 = vld [vmem:[#allocation8 + $0xb18] ss:$12 sps:$4 sm:$0xff]  }
 0x44b   :  { %11850 = vmatprep.subr.bf16.mxu1 %v13702_v5  ;;  %v13737_v5 = vld [vmem:[#allocation8 + $0xa40] ss:$12 sps:$4 sm:$0xff]  }
 0x44c   :  { %11829 = vmatpush3.bf16.msra.mxu0 %v13703_v55  ;;  %v13738_v55 = vld [vmem:[#allocation8 + $0xbc0] ss:$12 sps:$4 sm:$0xff]  }
 0x44d   :  { %11851 = vmatpush3.bf16.msra.mxu1 %v13704_v14  ;;  %11830 = vmatprep.subr.bf16.mxu0 %v13705_v18  ;;  %v13739_v14 = vld [vmem:[#allocation8 + $0x980] ss:$12 sps:$4 sm:$0xff]   ;;  %v13741_v18 = vld [vmem:[#allocation8 + $0xa28] ss:$12 sps:$4 sm:$0xff]  }
 0x44e   :  { %11852 = vmatprep.subr.bf16.mxu1 %v13706_v37  ;;  %v13743_v37 = vld [vmem:[#allocation8 + $0x968] ss:$12 sps:$4 sm:$0xff]  }
 0x450   :  { %11831 = vmatpush3.bf16.msra.mxu0 %v13707_v9  ;;  %v13745_v9 = vld [vmem:[#allocation8 + $0xa10] ss:$12 sps:$4 sm:$0xff]  }
 0x451   :  { %11853 = vmatpush3.bf16.msra.mxu1 %v13708_v34  ;;  %11832 = vmatprep.subr.bf16.mxu0 %v13709_v22  ;;  %v13746_v34 = vld [vmem:[#allocation8 + $0xb90] ss:$12 sps:$4 sm:$0xff]  }
 0x452   :  { %11854 = vmatprep.subr.bf16.mxu1 %v13710_v36  ;;  %v13748_v22 = vld [vmem:[#allocation8 + $0xad0] ss:$12 sps:$4 sm:$0xff]   ;;  %v13749_v36 = vld [vmem:[#allocation8 + $0x9f8] ss:$12 sps:$4 sm:$0xff]  }
 0x454   :  { %11833 = vmatpush3.bf16.msra.mxu0 %v13711_v53  ;;  %v13750_v53 = vld [vmem:[#allocation8 + $0xb78] ss:$12 sps:$4 sm:$0xff]  }
 0x455   :  { %11855 = vmatpush3.bf16.msra.mxu1 %v13712_v35  ;;  %11834 = vmatprep.subr.bf16.mxu0 %v13713_v30  ;;  %v13751_v35 = vld [vmem:[#allocation8 + $0x938] ss:$12 sps:$4 sm:$0xff]  }
 0x456   :  { %11856 = vmatprep.subr.bf16.mxu1 %v13714_v12  ;;  %v13752_v30 = vld [vmem:[#allocation8 + $0xab8] ss:$12 sps:$4 sm:$0xff]   ;;  %v13753_v12 = vld [vmem:[#allocation8 + $0x9e0] ss:$12 sps:$4 sm:$0xff]  }
 0x458   :  { %11835 = vmatpush3.bf16.msra.mxu0 %v13715_v56  ;;  %v13754_v56 = vld [vmem:[#allocation8 + $0xb60] ss:$12 sps:$4 sm:$0xff]  }
 0x459   :  { %11857 = vmatpush3.bf16.msra.mxu1 %v13716_v27  ;;  %11836 = vmatprep.subr.bf16.mxu0 %v13717_v8  ;;  %v13755_v27 = vld [vmem:[#allocation8 + $0x920] ss:$12 sps:$4 sm:$0xff]  }
 0x45a   :  { %11858 = vmatprep.subr.bf16.mxu1 %v13718_v25  ;;  %v13756_v8 = vld [vmem:[#allocation8 + $0xaa0] ss:$12 sps:$4 sm:$0xff]   ;;  %v13757_v25 = vld [vmem:[#allocation8 + $0x9c8] ss:$12 sps:$4 sm:$0xff]  }
 0x45c   :  { %11837 = vmatpush3.bf16.msra.mxu0 %v13719_v20  ;;  %v13758_v20 = vld [vmem:[#allocation8 + $0xb48] ss:$12 sps:$4 sm:$0xff]  }
 0x45d   :  { %11859 = vmatpush3.bf16.msra.mxu1 %v13720_v6  ;;  %11838 = vmatprep.subr.bf16.mxu0 %v13721_v28  ;;  %v13759_v6 = vld [vmem:[#allocation8 + $0x908] ss:$12 sps:$4 sm:$0xff]  }
 0x45e   :  { %11860 = vmatprep.subr.bf16.mxu1 %v13722_v4  ;;  %v13760_v28 = vld [vmem:[#allocation8 + $0xa88] ss:$12 sps:$4 sm:$0xff]   ;;  %v13761_v4 = vld [vmem:[#allocation8 + $0xd70] ss:$12 sps:$4 sm:$0xff]  }
 0x460   :  { %11839 = vmatpush3.bf16.msra.mxu0 %v13723_v29  ;;  %v13762_v29 = vld [vmem:[#allocation8 + $0xef0] ss:$12 sps:$4 sm:$0xff]  }
 0x461   :  { %11861 = vmatpush3.bf16.msra.mxu1 %v13724_v32  ;;  %11840 = vmatprep.subr.bf16.mxu0 %v13725_v54  ;;  %v13763_v32 = vld [vmem:[#allocation8 + $0xcb0] ss:$12 sps:$4 sm:$0xff]  }
 0x462   :  { %11862 = vmatprep.subr.bf16.mxu1 %v13726_v15  ;;  %v13764_v54 = vld [vmem:[#allocation8 + $0xe30] ss:$12 sps:$4 sm:$0xff]   ;;  %v13765_v15 = vld [vmem:[#allocation8 + $0xd58] ss:$12 sps:$4 sm:$0xff]  }
 0x464   :  { %11841 = vmatpush3.bf16.msra.mxu0 %v13727_v42  ;;  %v13766_v42 = vld [vmem:[#allocation8 + $0xed8] ss:$12 sps:$4 sm:$0xff]  }
 0x465   :  { %11863 = vmatpush3.bf16.msra.mxu1 %v13728_v46  ;;  %11870 = vmatprep.subr.bf16.mxu0 %v13729_v51  ;;  %v13767_v46 = vld [vmem:[#allocation8 + $0xc98] ss:$12 sps:$4 sm:$0xff]  }
 0x466   :  { %11892 = vmatprep.subr.bf16.mxu1 %v13730_v13  ;;  %v13768_v51 = vld [vmem:[#allocation8 + $0xe18] ss:$12 sps:$4 sm:$0xff]   ;;  %v13769_v13 = vld [vmem:[#allocation8 + $0xd40] ss:$12 sps:$4 sm:$0xff]  }
 0x467   :  { %9646 = vmatmul.mubr.bf16.vlgmr.msra.gmra.mxu0 %v14351_v21  ;;  %v13740_v21 = vld [vmem:[#allocation8 + $0xb00] ss:$12 sps:$4 sm:$0xff]  }
 0x468   :  { %9687 = vmatmul.mubr.bf16.vlgmr.msra.gmra.mxu1 %v14353_v24  ;;  %11871 = vmatpush3.bf16.msra.mxu0 %v13731_v3  ;;  %v13742_v24 = vld [vmem:[#allocation8 + $0xba8] ss:$12 sps:$4 sm:$0xff]   ;;  %v13770_v3 = vld [vmem:[#allocation8 + $0xec0] ss:$12 sps:$4 sm:$0xff]  }
 0x469   :  { %9727 = vmatprep.mubr.bf16.mxu0 %v14467_v17  ;;  %11893 = vmatpush3.bf16.msra.mxu1 %v13732_v41  ;;  %v13744_v17 = vld [vmem:[#allocation8 + $0xae8] ss:$12 sps:$4 sm:$0xff]   ;;  %v13771_v41 = vld [vmem:[#allocation8 + $0xc80] ss:$12 sps:$4 sm:$0xff]  }
 0x46a   :  { %9768 = vmatprep.mubr.bf16.mxu1 %v14472_v11  ;;  %11872 = vmatprep.subr.bf16.mxu0 %v13733_v52  ;;  %v13747_v11 = vld [vmem:[#allocation8 + $0x950] ss:$12 sps:$4 sm:$0xff]   ;;  %v13773_v52 = vld [vmem:[#allocation8 + $0xd28] ss:$12 sps:$4 sm:$0xff]  }
 0x46b   :  { %11894 = vmatprep.subr.bf16.mxu1 %v13734_v61  ;;  %v13775_v61 = vld [vmem:[#allocation8 + $0xc68] ss:$12 sps:$4 sm:$0xff]  }
 0x46c   :  { %11873 = vmatpush3.bf16.msra.mxu0 %v13735_v43  ;;  %v13777_v43 = vld [vmem:[#allocation8 + $0xd10] ss:$12 sps:$4 sm:$0xff]  }
 0x46d   :  { %11895 = vmatpush3.bf16.msra.mxu1 %v13736_v50  ;;  %11874 = vmatprep.subr.bf16.mxu0 %v13737_v5  ;;  %v13778_v50 = vld [vmem:[#allocation8 + $0xe90] ss:$12 sps:$4 sm:$0xff]  }
 0x46e   :  { %11896 = vmatprep.subr.bf16.mxu1 %v13738_v55  ;;  %v13780_v5 = vld [vmem:[#allocation8 + $0xdd0] ss:$12 sps:$4 sm:$0xff]   ;;  %v13781_v55 = vld [vmem:[#allocation8 + $0xcf8] ss:$12 sps:$4 sm:$0xff]  }
 0x470   :  { %11875 = vmatpush3.bf16.msra.mxu0 %v13739_v14  ;;  %v13782_v14 = vld [vmem:[#allocation8 + $0xe78] ss:$12 sps:$4 sm:$0xff]  }
 0x471   :  { %11897 = vmatpush3.bf16.msra.mxu1 %v13740_v21  ;;  %11876 = vmatprep.subr.bf16.mxu0 %v13741_v18  ;;  %v13783_v21 = vld [vmem:[#allocation8 + $0xc38] ss:$12 sps:$4 sm:$0xff]  }
 0x472   :  { %11898 = vmatprep.subr.bf16.mxu1 %v13742_v24  ;;  %v13784_v18 = vld [vmem:[#allocation8 + $0xdb8] ss:$12 sps:$4 sm:$0xff]   ;;  %v13785_v24 = vld [vmem:[#allocation8 + $0xce0] ss:$12 sps:$4 sm:$0xff]  }
 0x474   :  { %11877 = vmatpush3.bf16.msra.mxu0 %v13743_v37  ;;  %v13786_v37 = vld [vmem:[#allocation8 + $0xe60] ss:$12 sps:$4 sm:$0xff]  }
 0x475   :  { %11899 = vmatpush3.bf16.msra.mxu1 %v13744_v17  ;;  %11878 = vmatprep.subr.bf16.mxu0 %v13745_v9  ;;  %v13787_v17 = vld [vmem:[#allocation8 + $0xc20] ss:$12 sps:$4 sm:$0xff]  }
 0x476   :  { %11900 = vmatprep.subr.bf16.mxu1 %v13746_v34  ;;  %v13788_v9 = vld [vmem:[#allocation8 + $0xda0] ss:$12 sps:$4 sm:$0xff]   ;;  %v13789_v34 = vld [vmem:[#allocation8 + $0xcc8] ss:$12 sps:$4 sm:$0xff]  }
 0x478   :  { %11879 = vmatpush3.bf16.msra.mxu0 %v13747_v11  ;;  %v13790_v11 = vld [vmem:[#allocation8 + $0xe48] ss:$12 sps:$4 sm:$0xff]  }
 0x479   :  { %11901 = vmatpush3.bf16.msra.mxu1 %v13748_v22  ;;  %11880 = vmatprep.subr.bf16.mxu0 %v13749_v36  ;;  %v13791_v22 = vld [vmem:[#allocation8 + $0xc08] ss:$12 sps:$4 sm:$0xff]  }
 0x47a   :  { %11902 = vmatprep.subr.bf16.mxu1 %v13750_v53  ;;  %v13792_v36 = vld [vmem:[#allocation8 + $0xd88] ss:$12 sps:$4 sm:$0xff]   ;;  %v13793_v53 = vld [vmem:[#allocation8 + $0x1070] ss:$12 sps:$4 sm:$0xff]  }
 0x47c   :  { %11881 = vmatpush3.bf16.msra.mxu0 %v13751_v35  ;;  %v13794_v35 = vld [vmem:[#allocation8 + $0x11f0] ss:$12 sps:$4 sm:$0xff]  }
 0x47d   :  { %11903 = vmatpush3.bf16.msra.mxu1 %v13752_v30  ;;  %11882 = vmatprep.subr.bf16.mxu0 %v13753_v12  ;;  %v13795_v30 = vld [vmem:[#allocation8 + $0xfb0] ss:$12 sps:$4 sm:$0xff]  }
 0x47e   :  { %11904 = vmatprep.subr.bf16.mxu1 %v13754_v56  ;;  %v13796_v12 = vld [vmem:[#allocation8 + $0x1130] ss:$12 sps:$4 sm:$0xff]   ;;  %v13797_v56 = vld [vmem:[#allocation8 + $0x1058] ss:$12 sps:$4 sm:$0xff]  }
 0x480   :  { %11883 = vmatpush3.bf16.msra.mxu0 %v13755_v27  ;;  %v13798_v27 = vld [vmem:[#allocation8 + $0x11d8] ss:$12 sps:$4 sm:$0xff]  }
 0x481   :  { %11905 = vmatpush3.bf16.msra.mxu1 %v13756_v8  ;;  %11884 = vmatprep.subr.bf16.mxu0 %v13757_v25  ;;  %v13799_v8 = vld [vmem:[#allocation8 + $0xf98] ss:$12 sps:$4 sm:$0xff]  }
 0x482   :  { %11906 = vmatprep.subr.bf16.mxu1 %v13758_v20  ;;  %v13800_v25 = vld [vmem:[#allocation8 + $0x1118] ss:$12 sps:$4 sm:$0xff]   ;;  %v13801_v20 = vld [vmem:[#allocation8 + $0x1040] ss:$12 sps:$4 sm:$0xff]  }
 0x484   :  { %11885 = vmatpush3.bf16.msra.mxu0 %v13759_v6  ;;  %v13802_v6 = vld [vmem:[#allocation8 + $0x11c0] ss:$12 sps:$4 sm:$0xff]  }
 0x485   :  { %11907 = vmatpush3.bf16.msra.mxu1 %v13760_v28  ;;  %11914 = vmatprep.subr.bf16.mxu0 %v13761_v4  ;;  %v13803_v28 = vld [vmem:[#allocation8 + $0xf80] ss:$12 sps:$4 sm:$0xff]   ;;  %v13805_v4 = vld [vmem:[#allocation8 + $0x1028] ss:$12 sps:$4 sm:$0xff]  }
 0x486   :  { %11936 = vmatprep.subr.bf16.mxu1 %v13762_v29  ;;  %v14581_v29 = vpop.f32.mrf.mxu0 }
 0x487   :  { %9728 = vmatmul.mubr.bf16.vlgmr.msra.gmra.mxu0 %v14372_v23  ;;  %v13772_v23 = vld [vmem:[#allocation8 + $0xe00] ss:$12 sps:$4 sm:$0xff]  }
 0x488   :  { %9769 = vmatmul.mubr.bf16.vlgmr.msra.gmra.mxu1 %v14374_v39  ;;  %11915 = vmatpush3.bf16.msra.mxu0 %v13763_v32  ;;  %v13774_v39 = vld [vmem:[#allocation8 + $0xea8] ss:$12 sps:$4 sm:$0xff]  }
 0x489   :  { %9809 = vmatprep.mubr.bf16.mxu0 %v14491_v58  ;;  %11937 = vmatpush3.bf16.msra.mxu1 %v13764_v54  ;;  %v13776_v58 = vld [vmem:[#allocation8 + $0xde8] ss:$12 sps:$4 sm:$0xff]   ;;  %v13809_v54 = vld [vmem:[#allocation8 + $0x1010] ss:$12 sps:$4 sm:$0xff]  }
 0x48a   :  { %9850 = vmatprep.mubr.bf16.mxu1 %v14496_v7  ;;  %11916 = vmatprep.subr.bf16.mxu0 %v13765_v15  ;;  %v13779_v7 = vld [vmem:[#allocation8 + $0xc50] ss:$12 sps:$4 sm:$0xff]   ;;  %v13808_v32 = vld [vmem:[#allocation8 + $0x10e8] ss:$12 sps:$4 sm:$0xff]  }
 0x48b   :  { %11938 = vmatprep.subr.bf16.mxu1 %v13766_v42  ;;  %v13810_v15 = vld [vmem:[#allocation8 + $0x1190] ss:$12 sps:$4 sm:$0xff]  }
 0x48c   :  { %11917 = vmatpush3.bf16.msra.mxu0 %v13767_v46  ;;  %v13811_v42 = vld [vmem:[#allocation8 + $0xf50] ss:$12 sps:$4 sm:$0xff]  }
 0x48d   :  { %11939 = vmatpush3.bf16.msra.mxu1 %v13768_v51  ;;  %11918 = vmatprep.subr.bf16.mxu0 %v13769_v13  ;;  %v13812_v46 = vld [vmem:[#allocation8 + $0x10d0] ss:$12 sps:$4 sm:$0xff]   ;;  %v13813_v51 = vld [vmem:[#allocation8 + $0xff8] ss:$12 sps:$4 sm:$0xff]   ;;  %v14585_v13 = vpop.f32.mrf.mxu1 }
 0x48e   :  { %11940 = vmatprep.subr.bf16.mxu1 %v13770_v3 }
 0x490   :  { %11919 = vmatpush3.bf16.msra.mxu0 %v13771_v41  ;;  %v13814_v41 = vld [vmem:[#allocation8 + $0x1178] ss:$12 sps:$4 sm:$0xff]  }
 0x491   :  { %11941 = vmatpush3.bf16.msra.mxu1 %v13772_v23  ;;  %11920 = vmatprep.subr.bf16.mxu0 %v13773_v52  ;;  %v14589_v23 = vpop.f32.mrf.mxu1  ;;  %v13815_v52 = vld [vmem:[#allocation8 + $0xf38] ss:$12 sps:$4 sm:$0xff]  }
 0x492   :  { %11942 = vmatprep.subr.bf16.mxu1 %v13774_v39  ;;  %v13816_v39 = vld [vmem:[#allocation8 + $0x10b8] ss:$12 sps:$4 sm:$0xff]  }
 0x494   :  { %11921 = vmatpush3.bf16.msra.mxu0 %v13775_v61  ;;  %v13817_v61 = vld [vmem:[#allocation8 + $0xfe0] ss:$12 sps:$4 sm:$0xff]  }
 0x495   :  { %11943 = vmatpush3.bf16.msra.mxu1 %v13776_v58  ;;  %11922 = vmatprep.subr.bf16.mxu0 %v13777_v43  ;;  %v13818_v43 = vld [vmem:[#allocation8 + $0x1160] ss:$12 sps:$4 sm:$0xff]  }
 0x496   :  { %11944 = vmatprep.subr.bf16.mxu1 %v13778_v50  ;;  %v14593_v50 = vpop.f32.mrf.mxu1 }
 0x498   :  { %11923 = vmatpush3.bf16.msra.mxu0 %v13779_v7  ;;  %v13819_v7 = vld [vmem:[#allocation8 + $0xf20] ss:$12 sps:$4 sm:$0xff]  }
 0x499   :  { %11945 = vmatpush3.bf16.msra.mxu1 %v13780_v5  ;;  %11924 = vmatprep.subr.bf16.mxu0 %v13781_v55  ;;  %v13820_v5 = vld [vmem:[#allocation8 + $0x10a0] ss:$12 sps:$4 sm:$0xff]   ;;  %v13821_v55 = vld [vmem:[#allocation8 + $0xfc8] ss:$12 sps:$4 sm:$0xff]  }
 0x49a   :  { %11946 = vmatprep.subr.bf16.mxu1 %v13782_v14 }
 0x49c   :  { %11925 = vmatpush3.bf16.msra.mxu0 %v13783_v21  ;;  %v13822_v21 = vld [vmem:[#allocation8 + $0x1148] ss:$12 sps:$4 sm:$0xff]  }
 0x49d   :  { %11947 = vmatpush3.bf16.msra.mxu1 %v13784_v18  ;;  %11926 = vmatprep.subr.bf16.mxu0 %v13785_v24  ;;  %v14597_v18 = vpop.f32.mrf.mxu1 }
 0x49e   :  { %11948 = vmatprep.subr.bf16.mxu1 %v13786_v37  ;;  %v13823_v37 = vld [vmem:[#allocation8 + $0xf08] ss:$12 sps:$4 sm:$0xff]  }
 0x4a0   :  { %11927 = vmatpush3.bf16.msra.mxu0 %v13787_v17  ;;  %v13824_v17 = vld [vmem:[#allocation8 + $0x1088] ss:$12 sps:$4 sm:$0xff]  }
 0x4a1   :  { %11949 = vmatpush3.bf16.msra.mxu1 %v13788_v9  ;;  %11928 = vmatprep.subr.bf16.mxu0 %v13789_v34  ;;  %v13825_v9 = vld [vmem:[#allocation8 + $0x1370] ss:$12 sps:$4 sm:$0xff]  }
 0x4a2   :  { %11950 = vmatprep.subr.bf16.mxu1 %v13790_v11  ;;  %v13826_v34 = vld [vmem:[#allocation8 + $0x14f0] ss:$12 sps:$4 sm:$0xff]   ;;  %v14601_v11 = vpop.f32.mrf.mxu1 }
 0x4a4   :  { %11929 = vmatpush3.bf16.msra.mxu0 %v13791_v22 }
 0x4a5   :  { %11951 = vmatpush3.bf16.msra.mxu1 %v13792_v36  ;;  %11958 = vmatprep.subr.bf16.mxu0 %v13793_v53  ;;  %v13827_v36 = vld [vmem:[#allocation8 + $0x12b0] ss:$12 sps:$4 sm:$0xff]  }
 0x4a6   :  { %11980 = vmatprep.subr.bf16.mxu1 %v13794_v35  ;;  %v13828_v53 = vld [vmem:[#allocation8 + $0x1430] ss:$12 sps:$4 sm:$0xff]   ;;  %v14605_v35 = vpop.f32.mrf.mxu1 }
 0x4a7   :  { %9810 = vmatmul.mubr.bf16.vlgmr.msra.gmra.mxu0 %v14385_v33  ;;  %v13804_v33 = vld [vmem:[#allocation8 + $0x1100] ss:$12 sps:$4 sm:$0xff]  }
 0x4a8   :  { %9851 = vmatmul.mubr.bf16.vlgmr.msra.gmra.mxu1 %v14387_v38  ;;  %11959 = vmatpush3.bf16.msra.mxu0 %v13795_v30  ;;  %v13806_v38 = vld [vmem:[#allocation8 + $0x11a8] ss:$12 sps:$4 sm:$0xff]   ;;  %v13829_v30 = vld [vmem:[#allocation8 + $0x1358] ss:$12 sps:$4 sm:$0xff]  }
 0x4a9   :  { %9891 = vmatprep.mubr.bf16.mxu0 %v14511_v49  ;;  %11981 = vmatpush3.bf16.msra.mxu1 %v13796_v12  ;;  %v13807_v49 = vld [vmem:[#allocation8 + $0xf68] ss:$12 sps:$4 sm:$0xff]   ;;  %v13830_v12 = vld [vmem:[#allocation8 + $0x14d8] ss:$12 sps:$4 sm:$0xff]  }
 0x4aa   :  { %9932 = vmatprep.mubr.bf16.mxu1 %v14516_v45  ;;  %11960 = vmatprep.subr.bf16.mxu0 %v13797_v56  ;;  %v14583_v45 = vpop.f32.mrf.mxu0 }
 0x4ab   :  { %11982 = vmatprep.subr.bf16.mxu1 %v13798_v27  ;;  %v13831_v27 = vld [vmem:[#allocation8 + $0x1298] ss:$12 sps:$4 sm:$0xff]  }
 0x4ac   :  { %11961 = vmatpush3.bf16.msra.mxu0 %v13799_v8  ;;  %v14587_v3 = vpop.f32.mrf.mxu0  ;;  %v13832_v8 = vld [vmem:[#allocation8 + $0x1418] ss:$12 sps:$4 sm:$0xff]  }
 0x4ad   :  { %11983 = vmatpush3.bf16.msra.mxu1 %v13800_v25  ;;  %11962 = vmatprep.subr.bf16.mxu0 %v13801_v20  ;;  %v13833_v25 = vld [vmem:[#allocation8 + $0x1340] ss:$12 sps:$4 sm:$0xff]   ;;  %v14612_v20 = vpop.f32.mrf.mxu1 }
 0x4ae   :  { %11984 = vmatprep.subr.bf16.mxu1 %v13802_v6  ;;  %v14591_v58 = vpop.f32.mrf.mxu0  ;;  %v13834_v6 = vld [vmem:[#allocation8 + $0x14c0] ss:$12 sps:$4 sm:$0xff]  }
 0x4b0   :  { %11963 = vmatpush3.bf16.msra.mxu0 %v13803_v28  ;;  %v14595_v14 = vpop.f32.mrf.mxu0  ;;  %v13835_v28 = vld [vmem:[#allocation8 + $0x1280] ss:$12 sps:$4 sm:$0xff]  }
 0x4b1   :  { %11985 = vmatpush3.bf16.msra.mxu1 %v13804_v33  ;;  %11964 = vmatprep.subr.bf16.mxu0 %v13805_v4  ;;  %v13837_v33 = vld [vmem:[#allocation8 + $0x1328] ss:$12 sps:$4 sm:$0xff]   ;;  %v14617_v4 = vpop.f32.mrf.mxu1 }
 0x4b2   :  { %11986 = vmatprep.subr.bf16.mxu1 %v13806_v38  ;;  %v14599_v24 = vpop.f32.mrf.mxu0  ;;  %v13838_v38 = vld [vmem:[#allocation8 + $0x14a8] ss:$12 sps:$4 sm:$0xff]  }
 0x4b4   :  { %11965 = vmatpush3.bf16.msra.mxu0 %v13807_v49  ;;  %v14603_v22 = vpop.f32.mrf.mxu0  ;;  %v13839_v49 = vld [vmem:[#allocation8 + $0x1268] ss:$12 sps:$4 sm:$0xff]  }
 0x4b5   :  { %11987 = vmatpush3.bf16.msra.mxu1 %v13808_v32  ;;  %11966 = vmatprep.subr.bf16.mxu0 %v13809_v54  ;;  %v13841_v32 = vld [vmem:[#allocation8 + $0x1310] ss:$12 sps:$4 sm:$0xff]   ;;  %v14621_v54 = vpop.f32.mrf.mxu1 }
 0x4b6   :  { %11988 = vmatprep.subr.bf16.mxu1 %v13810_v15  ;;  %v14608_v56 = vpop.f32.mrf.mxu0 }
 0x4b8   :  { %11967 = vmatpush3.bf16.msra.mxu0 %v13811_v42  ;;  %v13842_v42 = vld [vmem:[#allocation8 + $0x1490] ss:$12 sps:$4 sm:$0xff]  }
 0x4b9   :  { %11989 = vmatpush3.bf16.msra.mxu1 %v13812_v46  ;;  %11968 = vmatprep.subr.bf16.mxu0 %v13813_v51  ;;  %v14625_v46 = vpop.f32.mrf.mxu1  ;;  %v13843_v51 = vld [vmem:[#allocation8 + $0x1250] ss:$12 sps:$4 sm:$0xff]  }
 0x4ba   :  { %11990 = vmatprep.subr.bf16.mxu1 %v13814_v41  ;;  %v13844_v41 = vld [vmem:[#allocation8 + $0x13d0] ss:$12 sps:$4 sm:$0xff]  }
 0x4bc   :  { %11969 = vmatpush3.bf16.msra.mxu0 %v13815_v52  ;;  %v13845_v52 = vld [vmem:[#allocation8 + $0x12f8] ss:$12 sps:$4 sm:$0xff]  }
 0x4bd   :  { %11991 = vmatpush3.bf16.msra.mxu1 %v13816_v39  ;;  %11970 = vmatprep.subr.bf16.mxu0 %v13817_v61  ;;  %v13846_v61 = vld [vmem:[#allocation8 + $0x1478] ss:$12 sps:$4 sm:$0xff]  }
 0x4be   :  { %11992 = vmatprep.subr.bf16.mxu1 %v13818_v43  ;;  %v14629_v43 = vpop.f32.mrf.mxu1 }
 0x4c0   :  { %11971 = vmatpush3.bf16.msra.mxu0 %v13819_v7  ;;  %v13847_v7 = vld [vmem:[#allocation8 + $0x1238] ss:$12 sps:$4 sm:$0xff]  }
 0x4c1   :  { %11993 = vmatpush3.bf16.msra.mxu1 %v13820_v5  ;;  %11972 = vmatprep.subr.bf16.mxu0 %v13821_v55  ;;  %v13848_v5 = vld [vmem:[#allocation8 + $0x13b8] ss:$12 sps:$4 sm:$0xff]   ;;  %v13849_v55 = vld [vmem:[#allocation8 + $0x12e0] ss:$12 sps:$4 sm:$0xff]  }
 0x4c2   :  { %11994 = vmatprep.subr.bf16.mxu1 %v13822_v21 }
 0x4c4   :  { %11973 = vmatpush3.bf16.msra.mxu0 %v13823_v37  ;;  %v13850_v37 = vld [vmem:[#allocation8 + $0x1460] ss:$12 sps:$4 sm:$0xff]  }
 0x4c5   :  { %11995 = vmatpush3.bf16.msra.mxu1 %v13824_v17  ;;  %12002 = vmatprep.subr.bf16.mxu0 %v13825_v9  ;;  %v14633_v17 = vpop.f32.mrf.mxu1 }
 0x4c6   :  { %12024 = vmatprep.subr.bf16.mxu1 %v13826_v34  ;;  %v13851_v34 = vld [vmem:[#allocation8 + $0x1220] ss:$12 sps:$4 sm:$0xff]  }
 0x4c7   :  { %9892 = vmatmul.mubr.bf16.vlgmr.msra.gmra.mxu0 %v14413_v1  ;;  %v14615_v1 = vpop.f32.mrf.mxu0 }
 0x4c8   :  { %9933 = vmatmul.mubr.bf16.vlgmr.msra.gmra.mxu1 %v14415_v2  ;;  %12003 = vmatpush3.bf16.msra.mxu0 %v13827_v36  ;;  %v13836_v2 = vld [vmem:[#allocation8 + $0x1400] ss:$12 sps:$4 sm:$0xff]  }
 0x4c9   :  { %9973 = vmatprep.mubr.bf16.mxu0 %v14523_v63  ;;  %12025 = vmatpush3.bf16.msra.mxu1 %v13828_v53  ;;  %v14619_v63 = vpop.f32.mrf.mxu0  ;;  %v13852_v36 = vld [vmem:[#allocation8 + $0x13a0] ss:$12 sps:$4 sm:$0xff]   ;;  %v13853_v53 = vld [vmem:[#allocation8 + $0x12c8] ss:$12 sps:$4 sm:$0xff]  }
 0x4ca   :  { %10014 = vmatprep.mubr.bf16.mxu1 %v14528_v57  ;;  %12004 = vmatprep.subr.bf16.mxu0 %v13829_v30  ;;  %v13840_v57 = vld [vmem:[#allocation8 + $0x13e8] ss:$12 sps:$4 sm:$0xff]  }
 0x4cb   :  { %12026 = vmatprep.subr.bf16.mxu1 %v13830_v12  ;;  %v14623_v15 = vpop.f32.mrf.mxu0  ;;  %v13854_v30 = vld [vmem:[#allocation8 + $0x1448] ss:$12 sps:$4 sm:$0xff]   ;;  %v14637_v12 = vpop.f32.mrf.mxu1 }
 0x4cc   :  { %12005 = vmatpush3.bf16.msra.mxu0 %v13831_v27 }
 0x4cd   :  { %12027 = vmatpush3.bf16.msra.mxu1 %v13832_v8  ;;  %12006 = vmatprep.subr.bf16.mxu0 %v13833_v25  ;;  %v14627_v39 = vpop.f32.mrf.mxu0  ;;  %v13855_v8 = vld [vmem:[#allocation8 + $0x1208] ss:$12 sps:$4 sm:$0xff]  }
 0x4ce   :  { %12028 = vmatprep.subr.bf16.mxu1 %v13834_v6  ;;  %v13856_v25 = vld [vmem:[#allocation8 + $0x1388] ss:$12 sps:$4 sm:$0xff]   ;;  %v13857_v6 = vld [vmem:[#allocation8 + $0x1670] ss:$12 sps:$4 sm:$0xff]  }
 0x4cf   :  { %v14631_v21 = vpop.f32.mrf.mxu0 }
 0x4d0   :  { %12007 = vmatpush3.bf16.msra.mxu0 %v13835_v28  ;;  %v14641_v28 = vpop.f32.mrf.mxu1 }
 0x4d1   :  { %12029 = vmatpush3.bf16.msra.mxu1 %v13836_v2  ;;  %12008 = vmatprep.subr.bf16.mxu0 %v13837_v33  ;;  %v14635_v9 = vpop.f32.mrf.mxu0  ;;  %v13858_v2 = vld [vmem:[#allocation8 + $0x17f0] ss:$12 sps:$4 sm:$0xff]  }
 0x4d2   :  { %12030 = vmatprep.subr.bf16.mxu1 %v13838_v38  ;;  %v13859_v38 = vld [vmem:[#allocation8 + $0x15b0] ss:$12 sps:$4 sm:$0xff]  }
 0x4d3   :  { %v14639_v27 = vpop.f32.mrf.mxu0 }
 0x4d4   :  { %12009 = vmatpush3.bf16.msra.mxu0 %v13839_v49  ;;  %v13860_v49 = vld [vmem:[#allocation8 + $0x1730] ss:$12 sps:$4 sm:$0xff]  }
 0x4d5   :  { %12031 = vmatpush3.bf16.msra.mxu1 %v13840_v57  ;;  %12010 = vmatprep.subr.bf16.mxu0 %v13841_v32  ;;  %v14643_v33 = vpop.f32.mrf.mxu0  ;;  %v14645_v57 = vpop.f32.mrf.mxu1  ;;  %v13861_v32 = vld [vmem:[#allocation8 + $0x1658] ss:$12 sps:$4 sm:$0xff]  }
 0x4d6   :  { %12032 = vmatprep.subr.bf16.mxu1 %v13842_v42  ;;  %v13862_v42 = vld [vmem:[#allocation8 + $0x17d8] ss:$12 sps:$4 sm:$0xff]  }
 0x4d8   :  { %12011 = vmatpush3.bf16.msra.mxu0 %v13843_v51  ;;  %v14648_v51 = vpop.f32.mrf.mxu0 }
 0x4d9   :  { %12033 = vmatpush3.bf16.msra.mxu1 %v13844_v41  ;;  %12012 = vmatprep.subr.bf16.mxu0 %v13845_v52  ;;  %v13863_v41 = vld [vmem:[#allocation8 + $0x1598] ss:$12 sps:$4 sm:$0xff]  }
 0x4da   :  { %12034 = vmatprep.subr.bf16.mxu1 %v13846_v61  ;;  %v13864_v52 = vld [vmem:[#allocation8 + $0x1718] ss:$12 sps:$4 sm:$0xff]   ;;  %v13865_v61 = vld [vmem:[#allocation8 + $0x1640] ss:$12 sps:$4 sm:$0xff]  }
 0x4dc   :  { %12013 = vmatpush3.bf16.msra.mxu0 %v13847_v7  ;;  %v14652_v7 = vpop.f32.mrf.mxu1 }
 0x4dd   :  { %12035 = vmatpush3.bf16.msra.mxu1 %v13848_v5  ;;  %12014 = vmatprep.subr.bf16.mxu0 %v13849_v55  ;;  %v14654_v5 = vpop.f32.mrf.mxu0  ;;  %v14876_v55 = vld [vmem:[#allocation27_spill] sm:$0xff] }
 0x4de   :  { %12036 = vmatprep.subr.bf16.mxu1 %v13850_v37  ;;  %v8712_v37 = vadd.f32 %v14500_v19, %v14876_v55 }
 0x4e0   :  { %12015 = vmatpush3.bf16.msra.mxu0 %v13851_v34  ;;  %v13869_v34 = vld [vmem:[#allocation8 + $0x1628] ss:$12 sps:$4 sm:$0xff]  }
 0x4e1   :  { %12037 = vmatpush3.bf16.msra.mxu1 %v13852_v36  ;;  %12016 = vmatprep.subr.bf16.mxu0 %v13853_v53  ;;  %v14659_v36 = vpop.f32.mrf.mxu1  ;;  %v14661_v53 = vpop.f32.mrf.mxu0 }
 0x4e2   :  { %12038 = vmatprep.subr.bf16.mxu1 %v13854_v30  ;;  %v13870_v30 = vld [vmem:[#allocation8 + $0x17a8] ss:$12 sps:$4 sm:$0xff]  }
 0x4e4   :  { %12017 = vmatpush3.bf16.msra.mxu0 %v13855_v8  ;;  %v14664_v8 = vpop.f32.mrf.mxu1 }
 0x4e5   :  { %12039 = vmatpush3.bf16.msra.mxu1 %v13856_v25  ;;  %12046 = vmatprep.subr.bf16.mxu0 %v13857_v6  ;;  %v13871_v25 = vld [vmem:[#allocation8 + $0x1568] ss:$12 sps:$4 sm:$0xff]  }
 0x4e6   :  { %12068 = vmatprep.subr.bf16.mxu1 %v13858_v2  ;;  %v13872_v6 = vld [vmem:[#allocation8 + $0x16e8] ss:$12 sps:$4 sm:$0xff]   ;;  %v13873_v2 = vld [vmem:[#allocation8 + $0x1610] ss:$12 sps:$4 sm:$0xff]  }
 0x4e7   :  { %9974 = vmatmul.mubr.bf16.vlgmr.msra.gmra.mxu0 %v14425_v0  ;;  %v13866_v0 = vld [vmem:[#allocation8 + $0x17c0] ss:$12 sps:$4 sm:$0xff]  }
 0x4e8   :  { %10015 = vmatmul.mubr.bf16.vlgmr.msra.gmra.mxu1 %v14427_v44  ;;  %12047 = vmatpush3.bf16.msra.mxu0 %v13859_v38  ;;  %v13867_v44 = vld [vmem:[#allocation8 + $0x1580] ss:$12 sps:$4 sm:$0xff]   ;;  %v14667_v38 = vpop.f32.mrf.mxu0 }
 0x4e9   :  { %10055 = vmatprep.mubr.bf16.mxu0 %v14535_v16  ;;  %12069 = vmatpush3.bf16.msra.mxu1 %v13860_v49  ;;  %v13868_v16 = vld [vmem:[#allocation8 + $0x1700] ss:$12 sps:$4 sm:$0xff]   ;;  %v13874_v49 = vld [vmem:[#allocation8 + $0x1790] ss:$12 sps:$4 sm:$0xff]  }
 0x4ea   :  { %10096 = vmatprep.mubr.bf16.mxu1 %v14540_v40  ;;  %12048 = vmatprep.subr.bf16.mxu0 %v13861_v32  ;;  %v8755_v40 = vadd.f32 %v14502_v62, %v8712_v37  ;;  %v14669_v32 = vpop.f32.mrf.mxu1 }
 0x4eb   :  { %12070 = vmatprep.subr.bf16.mxu1 %v13862_v42  ;;  %v13875_v42 = vld [vmem:[#allocation8 + $0x1550] ss:$12 sps:$4 sm:$0xff]  }
 0x4ec   :  { %12049 = vmatpush3.bf16.msra.mxu0 %v13863_v41  ;;  %v8798_v19 = vadd.f32 %v14587_v3, %v8755_v40  ;;  %v13876_v41 = vld [vmem:[#allocation8 + $0x16d0] ss:$12 sps:$4 sm:$0xff]   ;;  %v13878_v3 = vld [vmem:[#allocation8 + $0x1778] ss:$12 sps:$4 sm:$0xff]   ;;  %v14675_v55 = vpop.f32.mrf.mxu1 }
 0x4ed   :  { %12071 = vmatpush3.bf16.msra.mxu1 %v13864_v52  ;;  %12050 = vmatprep.subr.bf16.mxu0 %v13865_v61  ;;  %v13877_v52 = vld [vmem:[#allocation8 + $0x15f8] ss:$12 sps:$4 sm:$0xff]   ;;  %v14672_v61 = vpop.f32.mrf.mxu0 }
 0x4ee   :  { %12072 = vmatprep.subr.bf16.mxu1 %v13866_v0  ;;  %v8841_v62 = vadd.f32 %v14593_v50, %v8798_v19  ;;  %v13881_v50 = vld [vmem:[#allocation8 + $0x15e0] ss:$12 sps:$4 sm:$0xff]   ;;  %v14680_v40 = vpop.f32.mrf.mxu1 }
 0x4ef   :  { %v14677_v37 = vpop.f32.mrf.mxu0 }
 0x4f0   :  { %12051 = vmatpush3.bf16.msra.mxu0 %v13867_v44  ;;  %v8884_v0 = vadd.f32 %v14603_v22, %v8841_v62  ;;  %v13879_v44 = vld [vmem:[#allocation8 + $0x1538] ss:$12 sps:$4 sm:$0xff]   ;;  %v13883_v22 = vld [vmem:[#allocation8 + $0x1520] ss:$12 sps:$4 sm:$0xff]  }
 0x4f1   :  { %12073 = vmatpush3.bf16.msra.mxu1 %v13868_v16  ;;  %12052 = vmatprep.subr.bf16.mxu0 %v13869_v34  ;;  %v13880_v16 = vld [vmem:[#allocation8 + $0x16b8] ss:$12 sps:$4 sm:$0xff]   ;;  %v13882_v34 = vld [vmem:[#allocation8 + $0x1760] ss:$12 sps:$4 sm:$0xff]  }
 0x4f2   :  { %12074 = vmatprep.subr.bf16.mxu1 %v13870_v30  ;;  %v8927_v30 = vadd.f32 %v14612_v20, %v8884_v0  ;;  %v13887_v20 = vld [vmem:[#allocation8 + $0x1508] ss:$12 sps:$4 sm:$0xff]  }
 0x4f4   :  { %12053 = vmatpush3.bf16.msra.mxu0 %v13871_v25  ;;  %v14682_v25 = vpop.f32.mrf.mxu0  ;;  %v8970_v19 = vadd.f32 %v14623_v15, %v8927_v30  ;;  %v13890_v15 = vld [vmem:[#allocation8 + $0x1af0] ss:$12 sps:$4 sm:$0xff]  }
 0x4f5   :  { %12075 = vmatpush3.bf16.msra.mxu1 %v13872_v6  ;;  %12054 = vmatprep.subr.bf16.mxu0 %v13873_v2  ;;  %v13884_v6 = vld [vmem:[#allocation8 + $0x16a0] ss:$12 sps:$4 sm:$0xff]   ;;  %v13885_v2 = vld [vmem:[#allocation8 + $0x15c8] ss:$12 sps:$4 sm:$0xff]  }
 0x4f6   :  { %12076 = vmatprep.subr.bf16.mxu1 %v13874_v49  ;;  %v14685_v49 = vpop.f32.mrf.mxu1  ;;  %v14687_v62 = vpop.f32.mrf.mxu0 }
 0x4f8   :  { %12055 = vmatpush3.bf16.msra.mxu0 %v13875_v42  ;;  %v13886_v42 = vld [vmem:[#allocation8 + $0x1748] ss:$12 sps:$4 sm:$0xff]   ;;  %v9270_v0 = vpop.f32.mrf.mxu1 }
 0x4f9   :  { %12077 = vmatpush3.bf16.msra.mxu1 %v13876_v41  ;;  %12056 = vmatprep.subr.bf16.mxu0 %v13877_v52  ;;  %v9013_v41 = vadd.f32 %v14629_v43, %v8970_v19  ;;  %v13888_v52 = vld [vmem:[#allocation8 + $0x1688] ss:$12 sps:$4 sm:$0xff]   ;;  %v13893_v43 = vld [vmem:[#allocation8 + $0x1958] ss:$12 sps:$4 sm:$0xff]  }
 0x4fa   :  { %12078 = vmatprep.subr.bf16.mxu1 %v13878_v3  ;;  %v13889_v3 = vld [vmem:[#allocation8 + $0x1970] ss:$12 sps:$4 sm:$0xff]   ;;  %v14693_v30 = vpop.f32.mrf.mxu1 }
 0x4fc   :  { %12057 = vmatpush3.bf16.msra.mxu0 %v13879_v44  ;;  %v9056_v44 = vadd.f32 %v14639_v27, %v9013_v41  ;;  %v13895_v27 = vld [vmem:[#allocation8 + $0x1898] ss:$12 sps:$4 sm:$0xff]   ;;  %v14877_v41 = vld [vmem:[#allocation29_spill] sm:$0xff] }
 0x4fd   :  { %12079 = vmatpush3.bf16.msra.mxu1 %v13880_v16  ;;  %12058 = vmatprep.subr.bf16.mxu0 %v13881_v50  ;;  %v14691_v16 = vpop.f32.mrf.mxu0  ;;  %v13891_v50 = vld [vmem:[#allocation8 + $0x18b0] ss:$12 sps:$4 sm:$0xff]  }
 0x4fe   :  { %12080 = vmatprep.subr.bf16.mxu1 %v13882_v34  ;;  %v13892_v34 = vld [vmem:[#allocation8 + $0x1a30] ss:$12 sps:$4 sm:$0xff]   ;;  %v9099_v19 = vadd.f32 %v14645_v57, %v9056_v44  ;;  %v13901_v44 = vld [vmem:[#allocation8 + $0x1928] ss:$12 sps:$4 sm:$0xff]  }
 0x500   :  { %12059 = vmatpush3.bf16.msra.mxu0 %v13883_v22  ;;  %v14695_v22 = vpop.f32.mrf.mxu0 }
 0x501   :  { %12081 = vmatpush3.bf16.msra.mxu1 %v13884_v6  ;;  %12060 = vmatprep.subr.bf16.mxu0 %v13885_v2  ;;  %v13894_v6 = vld [vmem:[#allocation8 + $0x1ad8] ss:$12 sps:$4 sm:$0xff]   ;;  %v9142_v2 = vadd.f32 %v14661_v53, %v9099_v19  ;;  %v13899_v53 = vld [vmem:[#allocation8 + $0x1880] ss:$12 sps:$4 sm:$0xff]  }
 0x502   :  { %12082 = vmatprep.subr.bf16.mxu1 %v13886_v42  ;;  %v13896_v42 = vld [vmem:[#allocation8 + $0x1a18] ss:$12 sps:$4 sm:$0xff]   ;;  %v9313_v57 = vpop.f32.mrf.mxu0 }
 0x504   :  { %12061 = vmatpush3.bf16.msra.mxu0 %v13887_v20  ;;  %v13897_v20 = vld [vmem:[#allocation8 + $0x1940] ss:$12 sps:$4 sm:$0xff]  }
 0x505   :  { %12083 = vmatpush3.bf16.msra.mxu1 %v13888_v52  ;;  %12090 = vmatprep.subr.bf16.mxu0 %v13889_v3  ;;  %v8716_v52 = vadd.f32 %v14581_v29, %v14877_v41  ;;  %v14704_v3 = vpop.f32.mrf.mxu1 }
 0x506   :  { %12112 = vmatprep.subr.bf16.mxu1 %v13890_v15  ;;  %v13900_v15 = vld [vmem:[#allocation8 + $0x1a00] ss:$12 sps:$4 sm:$0xff]  }
 0x507   :  { %10056 = vmatmul.mubr.bf16.vlgmr.msra.gmra.mxu0 %v14449_v59  ;;  %v13898_v59 = vld [vmem:[#allocation8 + $0x1ac0] ss:$12 sps:$4 sm:$0xff]   ;;  %v8759_v29 = vadd.f32 %v14585_v13, %v8716_v52  ;;  %v13906_v13 = vld [vmem:[#allocation8 + $0x1a90] ss:$12 sps:$4 sm:$0xff]  }
 0x508   :  { %10097 = vmatmul.mubr.bf16.vlgmr.msra.gmra.mxu1 %v14451_v60  ;;  %12091 = vmatpush3.bf16.msra.mxu0 %v13891_v50  ;;  %v14707_v60 = vpop.f32.mrf.mxu1  ;;  %v14711_v50 = vpop.f32.mrf.mxu0 }
 0x509   :  { %10137 = vmatprep.mubr.bf16.mxu0 %v14547_v10  ;;  %12113 = vmatpush3.bf16.msra.mxu1 %v13892_v34  ;;  %v9185_v10 = vadd.f32 %v14669_v32, %v9142_v2  ;;  %v13902_v34 = vld [vmem:[#allocation8 + $0x1aa8] ss:$12 sps:$4 sm:$0xff]  }
 0x50a   :  { %10178 = vmatprep.mubr.bf16.mxu1 %v14552_v26  ;;  %12092 = vmatprep.subr.bf16.mxu0 %v13893_v43  ;;  %v14878_v26 = vld [vmem:[#allocation31_spill] sm:$0xff]  ;;  %v13903_v32 = vld [vmem:[#allocation8 + $0x1868] ss:$12 sps:$4 sm:$0xff]  }
 0x50b   :  { %12114 = vmatprep.subr.bf16.mxu1 %v13894_v6  ;;  %v8796_v43 = vadd.f32 %v14583_v45, %v14878_v26  ;;  %v9228_v19 = vadd.f32 %v14682_v25, %v9185_v10  ;;  %v8802_v6 = vadd.f32 %v14595_v14, %v8759_v29  ;;  %v13904_v2 = vld [vmem:[#allocation8 + $0x19e8] ss:$12 sps:$4 sm:$0xff]   ;;  %v8800_v45 = vadd.f32 %v14591_v58, %v14507_v31  ;;  %v13908_v29 = vld [vmem:[#allocation8 + $0x19d0] ss:$12 sps:$4 sm:$0xff]   ;;  %v13910_v31 = vld [vmem:[#allocation8 + $0x1a78] ss:$12 sps:$4 sm:$0xff]  }
 0x50c   :  { %12093 = vmatpush3.bf16.msra.mxu0 %v13895_v27  ;;  %v9356_v27 = vpop.f32.mrf.mxu1  ;;  %v13911_v26 = vld [vmem:[#allocation8 + $0x1838] ss:$12 sps:$4 sm:$0xff]  }
 0x50d   :  { %12115 = vmatpush3.bf16.msra.mxu1 %v13896_v42  ;;  %12094 = vmatprep.subr.bf16.mxu0 %v13897_v20  ;;  %v13905_v42 = vld [vmem:[#allocation8 + $0x1910] ss:$12 sps:$4 sm:$0xff]   ;;  %v14717_v20 = vpop.f32.mrf.mxu0  ;;  %v8839_v41 = vadd.f32 %v14589_v23, %v8796_v43  ;;  %v9271_v52 = vadd.f32 %v9270_v0, %v9228_v19  ;;  %v8845_v25 = vadd.f32 %v14601_v11, %v8802_v6  ;;  %v13909_v23 = vld [vmem:[#allocation8 + $0x18f8] ss:$12 sps:$4 sm:$0xff]  }
 0x50e   :  { %12116 = vmatprep.subr.bf16.mxu1 %v13898_v59  ;;  %v14723_v14 = vpop.f32.mrf.mxu1  ;;  %v8843_v58 = vadd.f32 %v14597_v18, %v8800_v45  ;;  %v13912_v6 = vld [vmem:[#allocation8 + $0x19b8] ss:$12 sps:$4 sm:$0xff]   ;;  %v13914_v18 = vld [vmem:[#allocation8 + $0x1a60] ss:$12 sps:$4 sm:$0xff]  }
 0x50f   :  { %v14725_v59 = vpop.f32.mrf.mxu0  ;;  %v8882_v10 = vadd.f32 %v14599_v24, %v8839_v41  ;;  %v13916_v45 = vld [vmem:[#allocation8 + $0x19a0] ss:$12 sps:$4 sm:$0xff]  }
 0x510   :  { %12095 = vmatpush3.bf16.msra.mxu0 %v13899_v53  ;;  %v13907_v53 = vld [vmem:[#allocation8 + $0x1850] ss:$12 sps:$4 sm:$0xff]   ;;  %v14730_v11 = vpop.f32.mrf.mxu1  ;;  %v8886_v24 = vadd.f32 %v14608_v56, %v8843_v58 }
 0x511   :  { %12117 = vmatpush3.bf16.msra.mxu1 %v13900_v15  ;;  %12096 = vmatprep.subr.bf16.mxu0 %v13901_v44  ;;  %v9314_v15 = vadd.f32 %v9313_v57, %v9271_v52  ;;  %v10189_v44 = vlaneseq  ;;  %v9399_v0 = vpop.f32.mrf.mxu0  ;;  %v8925_v43 = vadd.f32 %v14605_v35, %v8882_v10  ;;  %v13917_v52 = vld [vmem:[#allocation8 + $0x18c8] ss:$12 sps:$4 sm:$0xff]  }
 0x512   :  { %12118 = vmatprep.subr.bf16.mxu1 %v13902_v34  ;;  %v8888_v34 = vadd.f32 %v14615_v1, %v8845_v25  ;;  %v13913_v1 = vld [vmem:[#allocation8 + $0x18e0] ss:$12 sps:$4 sm:$0xff]   ;;  %v8929_v41 = vadd.f32 %v14617_v4, %v8886_v24  ;;  %v13919_v4 = vld [vmem:[#allocation8 + $0x1808] ss:$12 sps:$4 sm:$0xff]  }
 0x513   :  { %v9357_v57 = vadd.f32 %v9356_v27, %v9314_v15  ;;  %v14734_v19 = vshrl.u32 %v10189_v44, 7  ;;  %v13915_v27 = vld [vmem:[#allocation8 + $0x1820] ss:$12 sps:$4 sm:$0xff]   ;;  %v10230_v24 = vld [vmem:[#allocation13 + $0x70] sm:$0xff] }
 0x514   :  { %12097 = vmatpush3.bf16.msra.mxu0 %v13903_v32  ;;  %v8931_v32 = vadd.f32 %v14621_v54, %v8888_v34  ;;  %v14743_v54 = vld [vmem:[#allocation11] sm:$0x7]  ;;  %v8972_v10 = vadd.f32 %v14627_v39, %v8929_v41  ;;  %v10224_v41 = vld [vmem:[#allocation13 + $0x40] sm:$0xff] }
 0x515   :  { %12119 = vmatpush3.bf16.msra.mxu1 %v13904_v2  ;;  %12098 = vmatprep.subr.bf16.mxu0 %v13905_v42  ;;  %v14737_v2 = vpop.f32.mrf.mxu1  ;;  %v8968_v42 = vadd.f32 %v14619_v63, %v8925_v43  ;;  %v10195_v35 = vsub.s32 1, %v14734_v19 }
 0x516   :  { %12120 = vmatprep.subr.bf16.mxu1 %v13906_v13  ;;  %v9400_v13 = vadd.f32 %v9399_v0, %v9357_v57  ;;  %v8974_v56 = vadd.f32 %v14631_v21, %v8931_v32  ;;  %v10231_v0 = vld [vmem:[#allocation13 + $0x78] sm:$0xff]  ;;  %v10229_v57 = vld [vmem:[#allocation13 + $0x68] sm:$0xff] }
 0x517   :  { %v9442_v25 = vpop.f32.mrf.mxu1  ;;  %v9011_v63 = vadd.f32 %v14625_v46, %v8968_v42  ;;  %v14748_v21 = vrot.slane %v14743_v54, %v10195_v35  ;;  %v9015_v46 = vadd.f32 %v14633_v17, %v8972_v10  ;;  %v10227_v32 = vld [vmem:[#allocation13 + $0x58] sm:$0xff]  ;;  %v10225_v35 = vld [vmem:[#allocation13 + $0x48] sm:$0xff] }
 0x518   :  { %12099 = vmatpush3.bf16.msra.mxu0 %v13907_v53  ;;  %v13918_v53 = vld [vmem:[#allocation8 + $0x1a48] ss:$12 sps:$4 sm:$0xff]   ;;  %v9443_v15 = vadd.f32 %v9442_v25, %v9400_v13  ;;  %v9017_v44 = vadd.f32 %v14637_v12, %v8974_v56  ;;  %v10237_v10 = vld [vmem:[#allocation13 + $0xa8] sm:$0xff] }
 0x519   :  { %12121 = vmatpush3.bf16.msra.mxu1 %v13908_v29  ;;  %12100 = vmatprep.subr.bf16.mxu0 %v13909_v23  ;;  %v9054_v29 = vadd.f32 %v14635_v9, %v9011_v63  ;;  %v13920_v23 = vld [vmem:[#allocation8 + $0x1988] ss:$12 sps:$4 sm:$0xff]   ;;  %v9058_v12 = vadd.f32 %v14643_v33, %v9015_v46  ;;  %v10219_v46 = vld [vmem:[#allocation13 + $0x18] sm:$0xff] }
 0x51a   :  { %12122 = vmatprep.subr.bf16.mxu1 %v13910_v31  ;;  %v9060_v34 = vadd.f32 %v14648_v51, %v9017_v44  ;;  %v10247_v31 = vld [vmem:[#allocation13 + $0xf8] sm:$0xff]  ;;  %v10205_v39 = vadd.f32 %v14748_v21, %v9443_v15  ;;  %v10240_v56 = vld [vmem:[#allocation13 + $0xc0] sm:$0xff]  ;;  %v10191_v15 = vsub.s32 0, %v14734_v19  ;;  %v10221_v44 = vld [vmem:[#allocation13 + $0x28] sm:$0xff] }
 0x51b   :  { %v9097_v58 = vadd.f32 %v14641_v28, %v9054_v29  ;;  %v10245_v28 = vld [vmem:[#allocation13 + $0xe8] sm:$0xff]  ;;  %v9101_v33 = vadd.f32 %v14652_v7, %v9058_v12  ;;  %v10236_v29 = vld [vmem:[#allocation13 + $0xa0] sm:$0xff]  ;;  %v10218_v12 = vld [vmem:[#allocation13 + $0x10] sm:$0xff] }
 0x51c   :  { %12101 = vmatpush3.bf16.msra.mxu0 %v13911_v26  ;;  %v9103_v9 = vadd.f32 %v14659_v36, %v9060_v34  ;;  %v10246_v26 = vld [vmem:[#allocation13 + $0xf0] sm:$0xff]  ;;  %v10211_v51 = vmax.f32 %v10205_v39, 0.0  ;;  %v10244_v36 = vld [vmem:[#allocation13 + $0xe0] sm:$0xff]  ;;  %v10192_v34 = vrot.slane %v14743_v54, %v10191_v15 }
 0x51d   :  { %12123 = vmatpush3.bf16.msra.mxu1 %v13912_v6  ;;  %12102 = vmatprep.subr.bf16.mxu0 %v13913_v1  ;;  %v9140_v43 = vadd.f32 %v14654_v5, %v9097_v58  ;;  %v9144_v5 = vadd.f32 %v14667_v38, %v9101_v33  ;;  %v10241_v38 = vld [vmem:[#allocation13 + $0xc8] sm:$0xff]  ;;  %v10234_v58 = vld [vmem:[#allocation13 + $0x90] sm:$0xff] }
 0x51e   :  { %12124 = vmatprep.subr.bf16.mxu1 %v13914_v18  ;;  %v9146_v17 = vadd.f32 %v14672_v61, %v9103_v9  ;;  %v10243_v61 = vld [vmem:[#allocation13 + $0xd8] sm:$0xff]  ;;  %v10242_v18 = vld [vmem:[#allocation13 + $0xd0] sm:$0xff] }
 0x51f   :  { %v9183_v6 = vadd.f32 %v14664_v8, %v9140_v43  ;;  %v9187_v42 = vadd.f32 %v14675_v55, %v9144_v5  ;;  %v10226_v8 = vld [vmem:[#allocation13 + $0x50] sm:$0xff]  ;;  %v10259_v5 = vld [vmem:[#allocation13 + $0x158] sm:$0xff] }
 0x520   :  { %12103 = vmatpush3.bf16.msra.mxu0 %v13915_v27  ;;  %v9189_v1 = vadd.f32 %v14680_v40, %v9146_v17  ;;  %v9401_v27 = vpop.f32.mrf.mxu0 }
 0x521   :  { %12125 = vmatpush3.bf16.msra.mxu1 %v13916_v45  ;;  %12104 = vmatprep.subr.bf16.mxu0 %v13917_v52  ;;  %v9230_v40 = vadd.f32 %v14687_v62, %v9187_v42  ;;  %v10239_v45 = vld [vmem:[#allocation13 + $0xb8] sm:$0xff]  ;;  %v10238_v62 = vld [vmem:[#allocation13 + $0xb0] sm:$0xff] }
 0x522   :  { %12126 = vmatprep.subr.bf16.mxu1 %v13918_v53  ;;  %v9232_v7 = vadd.f32 %v14691_v16, %v9189_v1  ;;  %v9403_v53 = vpop.f32.mrf.mxu0  ;;  %v10257_v1 = vld [vmem:[#allocation13 + $0x148] sm:$0xff]  ;;  %v10251_v42 = vld [vmem:[#allocation13 + $0x118] sm:$0xff] }
 0x523   :  { %v9273_v52 = vadd.f32 %v14693_v30, %v9230_v40  ;;  %v9444_v30 = vpop.f32.mrf.mxu1  ;;  %v10248_v40 = vld [vmem:[#allocation13 + $0x100] sm:$0xff] }
 0x524   :  { %12105 = vmatpush3.bf16.msra.mxu0 %v13919_v4 }
 0x525   :  { %12127 = vmatpush3.bf16.msra.mxu1 %v13920_v23  ;;  %12134 = vmatprep.subr.mxu0 %v10247_v31  ;;  %v10235_v23 = vld [vmem:[#allocation13 + $0x98] sm:$0xff] }
 0x527   :  { %10138 = vmatmul.mubr.bf16.vlgmr.msra.gmra.mxu0 %v14461_v47  ;;  %v10228_v47 = vld [vmem:[#allocation13 + $0x60] sm:$0xff] }
 0x528   :  { %10179 = vmatmul.mubr.bf16.vlgmr.msra.gmra.mxu1 %v14463_v48  ;;  %12135 = vmatpush3.msra.mxu0 %v10231_v0  ;;  %v9226_v48 = vadd.f32 %v14677_v37, %v9183_v6  ;;  %v9275_v37 = vadd.f32 %v14704_v3, %v9232_v7  ;;  %v9316_v3 = vadd.f32 %v14711_v50, %v9273_v52  ;;  %v10220_v50 = vld [vmem:[#allocation13 + $0x20] sm:$0xff]  ;;  %v10233_v0 = vld [vmem:[#allocation13 + $0x88] sm:$0xff] }
 0x529   :  { %10335 = vmatprep.mubr.f32.mxu0 %v10211_v51  ;;  %12136 = vmatprep.subr.mxu0 %v10246_v26  ;;  %v10217_v26 = vld [vmem:[#allocation13 + $0x8] sm:$0xff]  ;;  %v10216_v51 = vld [vmem:[#allocation13] sm:$0xff] }
 0x52a   :  { %12137 = vmatpush3.msra.mxu0 %v10230_v24  ;;  %v9269_v13 = vadd.f32 %v14685_v49, %v9226_v48  ;;  %v9318_v55 = vadd.f32 %v14717_v20, %v9275_v37  ;;  %v10223_v49 = vld [vmem:[#allocation13 + $0x38] sm:$0xff]  ;;  %v10261_v6 = vld [vmem:[#allocation13 + $0x168] sm:$0xff] }
 0x52b   :  { %12138 = vmatprep.subr.mxu0 %v10245_v28  ;;  %v10255_v48 = vld [vmem:[#allocation13 + $0x138] sm:$0xff]  ;;  %v10253_v7 = vld [vmem:[#allocation13 + $0x128] sm:$0xff] }
 0x52c   :  { %12139 = vmatpush3.msra.mxu0 %v10229_v57  ;;  %v9312_v16 = vadd.f32 %v14695_v22, %v9269_v13  ;;  %v10222_v22 = vld [vmem:[#allocation13 + $0x30] sm:$0xff]  ;;  %v9361_v63 = vadd.f32 %v14730_v11, %v9318_v55  ;;  %v10263_v57 = vld [vmem:[#allocation13 + $0x178] sm:$0xff]  ;;  %v10249_v13 = vld [vmem:[#allocation13 + $0x108] sm:$0xff] }
 0x52d   :  { %12140 = vmatprep.subr.mxu0 %v10244_v36  ;;  %v10262_v36 = vld [vmem:[#allocation13 + $0x170] sm:$0xff]  ;;  %12243 = vmatprep.subr.mxu1 %v10263_v57 }
 0x52e   :  { %12141 = vmatpush3.msra.mxu0 %v10228_v47  ;;  %v9355_v25 = vadd.f32 %v14707_v60, %v9312_v16  ;;  %v9404_v4 = vadd.f32 %v9403_v53, %v9361_v63  ;;  %v9359_v60 = vadd.f32 %v14723_v14, %v9316_v3  ;;  %12244 = vmatpush3.msra.mxu1 %v10263_v57  ;;  %v10258_v47 = vld [vmem:[#allocation13 + $0x150] sm:$0xff]  ;;  %v10438_v53 = vld [vmem:[#allocation16 + $0x78] sm:$0xff] }
 0x52f   :  { %12142 = vmatprep.subr.mxu0 %v10243_v61  ;;  %12245 = vmatprep.subr.mxu1 %v10262_v36  ;;  %v10256_v61 = vld [vmem:[#allocation13 + $0x140] sm:$0xff] }
 0x530   :  { %12143 = vmatpush3.msra.mxu0 %v10227_v32  ;;  %v9398_v20 = vadd.f32 %v14725_v59, %v9355_v25  ;;  %v9402_v31 = vadd.f32 %v9401_v27, %v9359_v60  ;;  %v9446_v59 = vpop.f32.mrf.mxu1  ;;  %12246 = vmatpush3.msra.mxu1 %v10262_v36  ;;  %v10254_v32 = vld [vmem:[#allocation13 + $0x130] sm:$0xff] }
 0x531   :  { %12144 = vmatprep.subr.mxu0 %v10242_v18  ;;  %v9447_v39 = vadd.f32 %v9446_v59, %v9404_v4  ;;  %12247 = vmatprep.subr.mxu1 %v10261_v6  ;;  %v10252_v18 = vld [vmem:[#allocation13 + $0x120] sm:$0xff]  ;;  %v10433_v60 = vld [vmem:[#allocation16 + $0x50] sm:$0xff] }
 0x532   :  { %12145 = vmatpush3.msra.mxu0 %v10226_v8  ;;  %v9441_v11 = vadd.f32 %v14737_v2, %v9398_v20  ;;  %v9445_v9 = vadd.f32 %v9444_v30, %v9402_v31  ;;  %v10232_v2 = vld [vmem:[#allocation13 + $0x80] sm:$0xff]  ;;  %12248 = vmatpush3.msra.mxu1 %v10261_v6  ;;  %v10250_v8 = vld [vmem:[#allocation13 + $0x110] sm:$0xff] }
 0x533   :  { %12146 = vmatprep.subr.mxu0 %v10241_v38  ;;  %v10208_v43 = vadd.f32 %v14748_v21, %v9447_v39  ;;  %v10260_v21 = vld [vmem:[#allocation13 + $0x160] sm:$0xff]  ;;  %v14784_v38 = vpop.f32.mrf.mxu0  ;;  %v10429_v39 = vld [vmem:[#allocation16 + $0x30] sm:$0xff] }
 0x534   :  { %12147 = vmatpush3.msra.mxu0 %v10225_v35  ;;  %v10204_v14 = vadd.f32 %v10192_v34, %v9441_v11  ;;  %v10207_v17 = vadd.f32 %v10192_v34, %v9445_v9  ;;  %12249 = vmatprep.subr.mxu1 %v10260_v21  ;;  %v14786_v35 = vpop.f32.mrf.mxu1  ;;  %v10435_v30 = vld [vmem:[#allocation16 + $0x60] sm:$0xff]  ;;  %v10434_v4 = vld [vmem:[#allocation16 + $0x58] sm:$0xff] }
 0x535   :  { %12148 = vmatprep.subr.mxu0 %v10240_v56  ;;  %v10214_v28 = vmax.f32 %v10208_v43, 0.0  ;;  %12250 = vmatpush3.msra.mxu1 %v10260_v21  ;;  %v14788_v37 = vpop.f32.mrf.mxu0  ;;  %v10431_v34 = vld [vmem:[#allocation16 + $0x40] sm:$0xff]  ;;  %v10430_v59 = vld [vmem:[#allocation16 + $0x38] sm:$0xff] }
 0x536   :  { %12149 = vmatpush3.msra.mxu0 %v10224_v41  ;;  %v10210_v24 = vmax.f32 %v10204_v14, 0.0  ;;  %v10213_v33 = vmax.f32 %v10207_v17, 0.0  ;;  %12251 = vmatprep.subr.mxu1 %v10259_v5  ;;  %v14790_v56 = vpop.f32.mrf.mxu1  ;;  %v10427_v9 = vld [vmem:[#allocation16 + $0x20] sm:$0xff]  ;;  %v11756_v21 = vadd.f32 %v14788_v37, %v14784_v38 }
 0x537   :  { %12150 = vmatprep.subr.mxu0 %v10239_v45  ;;  %12252 = vmatpush3.msra.mxu1 %v10259_v5  ;;  %v14792_v16 = vpop.f32.mrf.mxu0 }
 0x538   :  { %12151 = vmatpush3.msra.mxu0 %v10223_v49  ;;  %12253 = vmatprep.subr.mxu1 %v10258_v47  ;;  %v14794_v27 = vpop.f32.mrf.mxu1 }
 0x539   :  { %12152 = vmatprep.subr.mxu0 %v10238_v62  ;;  %12254 = vmatpush3.msra.mxu1 %v10258_v47  ;;  %v14796_v41 = vpop.f32.mrf.mxu0 }
 0x53a   :  { %12153 = vmatpush3.msra.mxu0 %v10222_v22  ;;  %12255 = vmatprep.subr.mxu1 %v10257_v1  ;;  %v14800_v45 = vpop.f32.mrf.mxu1  ;;  %v10437_v22 = vld [vmem:[#allocation16 + $0x70] sm:$0xff] }
 0x53b   :  { %12154 = vmatprep.subr.mxu0 %v10237_v10  ;;  %12256 = vmatpush3.msra.mxu1 %v10257_v1  ;;  %v14798_v55 = vpop.f32.mrf.mxu0  ;;  %v10436_v10 = vld [vmem:[#allocation16 + $0x68] sm:$0xff]  ;;  %v11781_v37 = vadd.f32 %v14800_v45, %v14794_v27 }
 0x53c   :  { %12155 = vmatpush3.msra.mxu0 %v10221_v44  ;;  %12257 = vmatprep.subr.mxu1 %v10256_v61  ;;  %v14802_v52 = vpop.f32.mrf.mxu1 }
 0x53d   :  { %12156 = vmatprep.subr.mxu0 %v10236_v29  ;;  %12258 = vmatpush3.msra.mxu1 %v10256_v61  ;;  %v14804_v49 = vpop.f32.mrf.mxu0  ;;  %v14879_v61 = vld [vmem:[#allocation30_spill] sm:$0xff] }
 0x53e   :  { %12157 = vmatpush3.msra.mxu0 %v10220_v50  ;;  %12259 = vmatprep.subr.mxu1 %v10255_v48  ;;  %v14806_v62 = vpop.f32.mrf.mxu1 }
 0x53f   :  { %12158 = vmatprep.subr.mxu0 %v10235_v23  ;;  %12260 = vmatpush3.msra.mxu1 %v10255_v48  ;;  %v14808_v25 = vpop.f32.mrf.mxu0  ;;  %v10432_v23 = vld [vmem:[#allocation16 + $0x48] sm:$0xff]  ;;  %v9484_v48 = vadd.f32 %v11756_v21, %v14879_v61 }
 0x540   :  { %12159 = vmatpush3.msra.mxu0 %v10219_v46  ;;  %12261 = vmatprep.subr.mxu1 %v10254_v32  ;;  %v14810_v3 = vpop.f32.mrf.mxu1 }
 0x541   :  { %12160 = vmatprep.subr.mxu0 %v10234_v58  ;;  %12262 = vmatpush3.msra.mxu1 %v10254_v32  ;;  %v14812_v63 = vpop.f32.mrf.mxu0  ;;  %v11759_v32 = vadd.f32 %v14796_v41, %v14792_v16 }
 0x542   :  { %12161 = vmatpush3.msra.mxu0 %v10218_v12  ;;  %12263 = vmatprep.subr.mxu1 %v10253_v7  ;;  %v14816_v15 = vpop.f32.mrf.mxu1 }
 0x543   :  { %12162 = vmatprep.subr.mxu0 %v10233_v0  ;;  %12264 = vmatpush3.msra.mxu1 %v10253_v7  ;;  %v14814_v20 = vpop.f32.mrf.mxu0  ;;  %v10428_v0 = vld [vmem:[#allocation16 + $0x28] sm:$0xff]  ;;  %v11825_v27 = vadd.f32 %v14816_v15, %v14810_v3 }
 0x544   :  { %12163 = vmatpush3.msra.mxu0 %v10217_v26  ;;  %12265 = vmatprep.subr.mxu1 %v10252_v18  ;;  %v14818_v44 = vpop.f32.mrf.mxu1 }
 0x545   :  { %12164 = vmatprep.subr.mxu0 %v10232_v2  ;;  %12266 = vmatpush3.msra.mxu1 %v10252_v18  ;;  %v14820_v29 = vpop.f32.mrf.mxu0  ;;  %v11778_v18 = vadd.f32 %v14790_v56, %v14786_v35  ;;  %v11822_v35 = vadd.f32 %v14806_v62, %v14802_v52 }
 0x546   :  { %12165 = vmatpush3.msra.mxu0 %v10216_v51  ;;  %12267 = vmatprep.subr.mxu1 %v10251_v42  ;;  %v14822_v50 = vpop.f32.mrf.mxu1  ;;  %v11844_v56 = vadd.f32 %v14820_v29, %v14814_v20 }
 0x547   :  { %10336 = vmatmul.mubr.f32.vlgmr.msra.gmra.mxu0 %v10210_v24  ;;  %12268 = vmatpush3.msra.mxu1 %v10251_v42  ;;  %v14824_v11 = vpop.f32.mrf.mxu0  ;;  %v11800_v42 = vadd.f32 %v14804_v49, %v14798_v55 }
 0x548   :  { %10340 = vmatprep.mubr.f32.mxu0 %v10214_v28  ;;  %12269 = vmatprep.subr.mxu1 %v10250_v8  ;;  %v14826_v31 = vpop.f32.mrf.mxu1 }
 0x549   :  { %12270 = vmatpush3.msra.mxu1 %v10250_v8  ;;  %12278 = vmatprep.subr.mxu0 %v10438_v53  ;;  %v11846_v46 = vpop.f32.mrf.mxu0 }
 0x54a   :  { %12271 = vmatprep.subr.mxu1 %v10249_v13  ;;  %12279 = vmatpush3.msra.mxu0 %v10438_v53  ;;  %v11868_v12 = vpop.f32.mrf.mxu1  ;;  %v14880_v53 = vld [vmem:[#allocation28_spill] sm:$0xff] }
 0x54b   :  { %10341 = vmatmul.mubr.f32.gmra.mxu0 %v10213_v33  ;;  %12272 = vmatpush3.msra.mxu1 %v10249_v13  ;;  %v11886_v58 = vpop.f32.mrf.mxu0  ;;  %v9487_v38 = vadd.f32 %v14880_v53, %v11759_v32 }
 0x54c   :  { %12273 = vmatprep.subr.mxu1 %v10248_v40  ;;  %12280 = vmatprep.subr.mxu0 %v10437_v22  ;;  %v11908_v14 = vpop.f32.mrf.mxu1 }
 0x54d   :  { %12274 = vmatpush3.msra.mxu1 %v10248_v40  ;;  %12281 = vmatpush3.msra.mxu0 %v10437_v22  ;;  %v11887_v26 = vpop.f32.mrf.mxu0  ;;  %v9525_v40 = vadd.f32 %v11778_v18, %v9484_v48 }
 0x54e   :  { %12282 = vmatprep.subr.mxu0 %v10436_v10  ;;  %v11909_v43 = vpop.f32.mrf.mxu1 }
 0x54f   :  { %12283 = vmatpush3.msra.mxu0 %v10436_v10  ;;  %v11889_v2 = vpop.f32.mrf.mxu0  ;;  %v9566_v22 = vadd.f32 %v11800_v42, %v9525_v40  ;;  %v11803_v10 = vadd.f32 %v14812_v63, %v14808_v25  ;;  %v11910_v3 = vadd.f32 %v11909_v43, %v11908_v14 }
 0x550   :  { %12284 = vmatprep.subr.mxu0 %v10435_v30  ;;  %v11911_v51 = vpop.f32.mrf.mxu1 }
 0x551   :  { %12285 = vmatpush3.msra.mxu0 %v10435_v30  ;;  %v11890_v24 = vpop.f32.mrf.mxu0  ;;  %v9528_v30 = vadd.f32 %v11781_v37, %v9487_v38  ;;  %v9607_v55 = vadd.f32 %v11822_v35, %v9566_v22 }
 0x552   :  { %12286 = vmatprep.subr.mxu0 %v10434_v4  ;;  %v11912_v28 = vpop.f32.mrf.mxu1  ;;  %v11891_v21 = vadd.f32 %v11890_v24, %v11889_v2 }
 0x553   :  { %12287 = vmatpush3.msra.mxu0 %v10434_v4  ;;  %v9569_v49 = vadd.f32 %v11803_v10, %v9528_v30  ;;  %v9648_v45 = vadd.f32 %v11844_v56, %v9607_v55  ;;  %v11913_v18 = vadd.f32 %v11912_v28, %v11911_v51 }
 0x554   :  { %12288 = vmatprep.subr.mxu0 %v10433_v60 }
 0x555   :  { %12289 = vmatpush3.msra.mxu0 %v10433_v60  ;;  %v9610_v63 = vadd.f32 %v11825_v27, %v9569_v49 }
 0x556   :  { %12290 = vmatprep.subr.mxu0 %v10432_v23 }
 0x557   :  { %12291 = vmatpush3.msra.mxu0 %v10432_v23  ;;  %v11847_v23 = vadd.f32 %v11846_v46, %v14824_v11 }
 0x558   :  { %12292 = vmatprep.subr.mxu0 %v10431_v34 }
 0x559   :  { %12293 = vmatpush3.msra.mxu0 %v10431_v34  ;;  %v11866_v34 = vadd.f32 %v14822_v50, %v14818_v44 }
 0x55a   :  { %12294 = vmatprep.subr.mxu0 %v10430_v59 }
 0x55b   :  { %12295 = vmatpush3.msra.mxu0 %v10430_v59  ;;  %v11888_v59 = vadd.f32 %v11887_v26, %v11886_v58  ;;  %v9689_v62 = vadd.f32 %v11866_v34, %v9648_v45 }
 0x55c   :  { %12296 = vmatprep.subr.mxu0 %v10429_v39 }
 0x55d   :  { %12297 = vmatpush3.msra.mxu0 %v10429_v39  ;;  %v9651_v39 = vadd.f32 %v11847_v23, %v9610_v63 }
 0x55e   :  { %12298 = vmatprep.subr.mxu0 %v10428_v0 }
 0x55f   :  { %12299 = vmatpush3.msra.mxu0 %v10428_v0  ;;  %v11869_v0 = vadd.f32 %v11868_v12, %v14826_v31 }
 0x560   :  { %12300 = vmatprep.subr.mxu0 %v10427_v9 }
 0x561   :  { %12301 = vmatpush3.msra.mxu0 %v10427_v9  ;;  %v9730_v9 = vadd.f32 %v11888_v59, %v9689_v62  ;;  %v9692_v61 = vadd.f32 %v11869_v0, %v9651_v39 }
 0x563   :  { %v9771_v46 = vadd.f32 %v11910_v3, %v9730_v9  ;;  %v9733_v32 = vadd.f32 %v11891_v21, %v9692_v61 }
 0x565   :  { %v9774_v26 = vadd.f32 %v11913_v18, %v9733_v32 }
 0x567   :  { %v11930_v17 = vpop.f32.mrf.mxu0 }
 0x568   :  { %v11952_v33 = vpop.f32.mrf.mxu1 }
 0x569   :  { %v11931_v57 = vpop.f32.mrf.mxu0 }
 0x56a   :  { %v11953_v36 = vpop.f32.mrf.mxu1  ;;  %v11932_v15 = vadd.f32 %v11931_v57, %v11930_v17 }
 0x56b   :  { %v11933_v6 = vpop.f32.mrf.mxu0  ;;  %v11954_v40 = vadd.f32 %v11953_v36, %v11952_v33 }
 0x56c   :  { %v11955_v5 = vpop.f32.mrf.mxu1  ;;  %v9812_v42 = vadd.f32 %v11932_v15, %v9771_v46 }
 0x56d   :  { %v11934_v47 = vpop.f32.mrf.mxu0 }
 0x56e   :  { %v11956_v7 = vpop.f32.mrf.mxu1  ;;  %v11935_v44 = vadd.f32 %v11934_v47, %v11933_v6  ;;  %v9853_v37 = vadd.f32 %v11954_v40, %v9812_v42 }
 0x56f   :  { %v11957_v2 = vadd.f32 %v11956_v7, %v11955_v5 }
 0x570   :  { %v9815_v31 = vadd.f32 %v11935_v44, %v9774_v26  ;;  %v10423_v26 = vld [vmem:[#allocation16] sm:$0xff] }
 0x572   :  { %v9856_v57 = vadd.f32 %v11957_v2, %v9815_v31  ;;  %v11718_v2 = vld [vmem:[#allocation14] ss:$0 sm:$0xff] }
 0x587   :  { %v11974_v1 = vpop.f32.mrf.mxu0 }
 0x588   :  { %v11996_v8 = vpop.f32.mrf.mxu1 }
 0x589   :  { %v11975_v13 = vpop.f32.mrf.mxu0 }
 0x58a   :  { %v11997_v16 = vpop.f32.mrf.mxu1  ;;  %v11976_v53 = vadd.f32 %v11975_v13, %v11974_v1 }
 0x58b   :  { %v11977_v41 = vpop.f32.mrf.mxu0  ;;  %v11998_v22 = vadd.f32 %v11997_v16, %v11996_v8 }
 0x58c   :  { %v11999_v4 = vpop.f32.mrf.mxu1  ;;  %v9894_v24 = vadd.f32 %v11976_v53, %v9853_v37 }
 0x58d   :  { %v11978_v60 = vpop.f32.mrf.mxu0 }
 0x58e   :  { %v12000_v52 = vpop.f32.mrf.mxu1  ;;  %v11979_v14 = vadd.f32 %v11978_v60, %v11977_v41  ;;  %v9935_v51 = vadd.f32 %v11998_v22, %v9894_v24 }
 0x58f   :  { %v12001_v30 = vadd.f32 %v12000_v52, %v11999_v4 }
 0x590   :  { %v9897_v28 = vadd.f32 %v11979_v14, %v9856_v57 }
 0x592   :  { %v9938_v36 = vadd.f32 %v12001_v30, %v9897_v28  ;;  %v11719_v28 = vld [vmem:[#allocation17] ss:$0 sm:$0xff] }
 0x5a7   :  { %v12018_v25 = vpop.f32.mrf.mxu0 }
 0x5a8   :  { %v12040_v20 = vpop.f32.mrf.mxu1 }
 0x5a9   :  { %v12019_v29 = vpop.f32.mrf.mxu0 }
 0x5aa   :  { %v12041_v48 = vpop.f32.mrf.mxu1  ;;  %v12020_v10 = vadd.f32 %v12019_v29, %v12018_v25  ;;  %v10199_v25 = vsub.s32 2, %v14734_v19 }
 0x5ab   :  { %v12021_v11 = vpop.f32.mrf.mxu0  ;;  %v12042_v1 = vadd.f32 %v12041_v48, %v12040_v20 }
 0x5ac   :  { %v12043_v50 = vpop.f32.mrf.mxu1  ;;  %v9976_v35 = vadd.f32 %v12020_v10, %v9935_v51  ;;  %v10200_v9 = vrot.slane %v14743_v54, %v10199_v25  ;;  %v10424_v54 = vld [vmem:[#allocation16 + $0x8] sm:$0xff] }
 0x5ad   :  { %v12022_v58 = vpop.f32.mrf.mxu0 }
 0x5ae   :  { %v12044_v12 = vpop.f32.mrf.mxu1  ;;  %v12023_v33 = vadd.f32 %v12022_v58, %v12021_v11  ;;  %v10017_v5 = vadd.f32 %v12042_v1, %v9976_v35  ;;  %v10425_v58 = vld [vmem:[#allocation16 + $0x10] sm:$0xff] }
 0x5af   :  { %v12045_v41 = vadd.f32 %v12044_v12, %v12043_v50  ;;  %v10426_v50 = vld [vmem:[#allocation16 + $0x18] sm:$0xff] }
 0x5b0   :  { %v9979_v7 = vadd.f32 %v12023_v33, %v9938_v36  ;;  %12302 = vmatprep.subr.mxu0 %v10426_v50 }
 0x5b1   :  { %12303 = vmatpush3.msra.mxu0 %v10426_v50 }
 0x5b2   :  { %v10020_v16 = vadd.f32 %v12045_v41, %v9979_v7  ;;  %12304 = vmatprep.subr.mxu0 %v10425_v58 }
 0x5b3   :  { %12305 = vmatpush3.msra.mxu0 %v10425_v58 }
 0x5b4   :  { %12306 = vmatprep.subr.mxu0 %v10424_v54 }
 0x5b5   :  { %12307 = vmatpush3.msra.mxu0 %v10424_v54 }
 0x5b6   :  { %12308 = vmatprep.subr.mxu0 %v10423_v26 }
 0x5b7   :  { %12309 = vmatpush3.msra.mxu0 %v10423_v26 }
 0x5c7   :  { %v12062_v38 = vpop.f32.mrf.mxu0 }
 0x5c8   :  { %v12084_v43 = vpop.f32.mrf.mxu1 }
 0x5c9   :  { %v12063_v17 = vpop.f32.mrf.mxu0 }
 0x5ca   :  { %v12085_v6 = vpop.f32.mrf.mxu1  ;;  %v12064_v13 = vadd.f32 %v12063_v17, %v12062_v38 }
 0x5cb   :  { %v12065_v47 = vpop.f32.mrf.mxu0  ;;  %v12086_v45 = vadd.f32 %v12085_v6, %v12084_v43 }
 0x5cc   :  { %v12087_v56 = vpop.f32.mrf.mxu1  ;;  %v10058_v49 = vadd.f32 %v12064_v13, %v10017_v5 }
 0x5cd   :  { %v12066_v55 = vpop.f32.mrf.mxu0 }
 0x5ce   :  { %v12067_v60 = vadd.f32 %v12066_v55, %v12065_v47  ;;  %v12088_v27 = vpop.f32.mrf.mxu1  ;;  %v10099_v63 = vadd.f32 %v12086_v45, %v10058_v49 }
 0x5cf   :  { %v12089_v39 = vadd.f32 %v12088_v27, %v12087_v56 }
 0x5d0   :  { %v10061_v34 = vadd.f32 %v12067_v60, %v10020_v16 }
 0x5d2   :  { %v10102_v61 = vadd.f32 %v12089_v39, %v10061_v34 }
 0x5e7   :  { %v12106_v8 = vpop.f32.mrf.mxu0 }
 0x5e8   :  { %v12128_v23 = vpop.f32.mrf.mxu1 }
 0x5e9   :  { %v12107_v4 = vpop.f32.mrf.mxu0 }
 0x5ea   :  { %v12108_v59 = vadd.f32 %v12107_v4, %v12106_v8  ;;  %v12129_v52 = vpop.f32.mrf.mxu1 }
 0x5eb   :  { %v12109_v62 = vpop.f32.mrf.mxu0  ;;  %v12130_v29 = vadd.f32 %v12129_v52, %v12128_v23 }
 0x5ec   :  { %v10140_v20 = vadd.f32 %v12108_v59, %v10099_v63  ;;  %v12131_v0 = vpop.f32.mrf.mxu1 }
 0x5ed   :  { %v12110_v21 = vpop.f32.mrf.mxu0 }
 0x5ee   :  { %v10181_v3 = vadd.f32 %v12130_v29, %v10140_v20  ;;  %v12111_v15 = vadd.f32 %v12110_v21, %v12109_v62  ;;  %v12132_v48 = vpop.f32.mrf.mxu1 }
 0x5ef   :  { %v12133_v46 = vadd.f32 %v12132_v48, %v12131_v0 }
 0x5f0   :  { %v10143_v11 = vadd.f32 %v12111_v15, %v10102_v61  ;;  %v10206_v19 = vadd.f32 %v10200_v9, %v10181_v3 }
 0x5f2   :  { %v10184_v32 = vadd.f32 %v12133_v46, %v10143_v11  ;;  %v10212_v18 = vmax.f32 %v10206_v19, 0.0 }
 0x5f4   :  { %v10209_v42 = vadd.f32 %v10200_v9, %v10184_v32  ;;  %12275 = vmatprep.mubr.f32.mxu1 %v10212_v18 }
 0x5f6   :  { %v10215_v44 = vmax.f32 %v10209_v42, 0.0 }
 0x5f8   :  { %12276 = vmatmul.mubr.f32.vlgmr.msra.gmra.mxu1 %v10215_v44 }
 0x607   :  { %v12166_v40 = vpop.f32.mrf.mxu0 }
 0x609   :  { %v12167_v53 = vpop.f32.mrf.mxu0 }
 0x60a   :  { %v12168_v12 = vadd.f32 %v12167_v53, %v12166_v40 }
 0x60b   :  { %v12169_v38 = vpop.f32.mrf.mxu0 }
 0x60c   :  { %v10338_v43 = vadd.f32 %v12168_v12, %v11718_v2 }
 0x60d   :  { %v12170_v37 = vpop.f32.mrf.mxu0 }
 0x60e   :  { %v12171_v31 = vadd.f32 %v12170_v37, %v12169_v38 }
 0x610   :  { %v10343_v24 = vadd.f32 %v12171_v31, %v11718_v2 }
 0x6b8   :  { %v12277_v14 = vpop.f32.mrf.mxu1 }
 0x6b9   :  { %v10418_v17 = vadd.f32 %v12277_v14, %v10343_v24 }
 0x6ba   :  { %v10412_v57 = vpop.f32.mrf.mxu1 }
 0x6bb   :  { %v10413_v22 = vadd.f32 %v10412_v57, %v10338_v43  ;;  %v10422_v51 = vmax.f32 %v10418_v17, 0.0 }
 0x6bd   :  { %v10421_v10 = vmax.f32 %v10413_v22, 0.0 }
 0x6bf   :  { %12310 = vmatprep.mubr.f32.mxu0 %v10421_v10 }
 0x6c0   :  { %12311 = vmatmul.mubr.f32.vlgmr.msra.gmra.mxu0 %v10422_v51 }
 0x780   :  { %v12312_v6 = vpop.f32.mrf.mxu0 }
 0x781   :  { %v10518_v47 = vadd.f32 %v12312_v6, %v11719_v28 }
 0x782   :  { %v10512_v30 = vpop.f32.mrf.mxu0 }
 0x783   :  { %v10522_v35 = vand.u32 2147483647, %v10518_v47  ;;  %v10513_v33 = vadd.f32 %v11719_v28, %v10512_v30  ;;  %vm10530_vm0 = vcmp.ge.f32.partialorder %v10518_v47, 0.0 }
 0x785   :  { %v10524_v36 = vsub.f32 0.0, %v10522_v35  ;;  %v10521_v1 = vand.u32 2147483647, %v10513_v33  ;;  %vm10529_vm1 = vcmp.ge.f32.partialorder %v10513_v33, 0.0 }
 0x787   :  { %v10527_v13 = vmul.f32 1.442695, %v10524_v36  ;;  %v10523_v56 = vsub.f32 0.0, %v10521_v1 }
 0x789   :  { %13921 = vpow2.f32 %v10527_v13  ;;  %v10525_v55 = vmul.f32 1.442695, %v10523_v56 }
 0x78b   :  { %13923 = vpow2.f32 %v10525_v55 }
 0x796   :  { %v13922_v5 = vpop.eup %13921 }
 0x797   :  { %v10532_v7 = vadd.f32 1.0, %v13922_v5 }
 0x798   :  { %v13924_v41 = vpop.eup %13923 }
 0x799   :  { %13925 = vrcp.f32 %v10532_v7  ;;  %v10531_v49 = vadd.f32 1.0, %v13924_v41 }
 0x79b   :  { %13927 = vrcp.f32 %v10531_v49 }
 0x7a6   :  { %v13926_v60 = vpop.eup %13925 }
 0x7a7   :  { %v10538_v27 = vmul.f32 %v13926_v60, %v13922_v5 }
 0x7a8   :  { %v13928_v8 = vpop.eup %13927 }
 0x7a9   :  { %v10537_v16 = vmul.f32 %v13928_v8, %v13924_v41  ;;  %v10540_v45 = vsel %vm10530_vm0, %v13926_v60, %v10538_v27 }
 0x7aa   :  { %10542 = vst [vmem:[#allocation19 + $0x8] sm:$0xff] %v10540_v45 }
 0x7ab   :  { %v10539_v23 = vsel %vm10529_vm1, %v13928_v8, %v10537_v16 }
 0x7ac   :  { %10541 = vst [vmem:[#allocation19] sm:$0xff] %v10539_v23 }
 0x7ad   :  { %14141 = shalt.err (!%p14138_p12)
}
 0x7ae   :  { %10554 = dma.vmem_to_hbm [thread:$0]  %s10549_s9, 256, %s14870_s10, [#allocation4], %s14176_s25, %s14176_s25, %s14177_s26  }
 0x7af   :  { %14162 = dma.done.wait [#allocation4], 256  }
 0x7b0   :  { %14163 = vsyncadd [#allocation4], 4294967040 }
 0x7b1   :  { %10558 = vsyncpa [#allocation3], 1 }
 0x7b2   :  { %10559 = vsyncpa [#allocation6], 1 }
 0x7b3   :  { %10560 = vsyncpa [#allocation9], 1 }
 0x7b4   :  { %10561 = vsyncpa [#allocation12], 1 }
 0x7b5   :  { %10562 = vsyncpa [#allocation15], 1 }
 0x7b6   :  { %10563 = vsyncpa [#allocation18], 1 }
 0x7b7   :  { %10564 = vsyncpa [#allocation4], 1 }

</bundles_post_ra>
